<compile_context>
chip_gen: v6e
topology: v6e:2x2x1
jax: 0.10.0
libtpu: 0.0.40
codegen_flags: <defaults>
</compile_context>

<pallas_src>
import jax
import jax.numpy as jnp
from jax import lax
from jax.experimental import pallas as pl
from jax.experimental.pallas import tpu as pltpu

BN_EPS = 1e-5


def residual_block_kernel(x_ref, w1_ref, w2_ref, b1_ref, b2_ref, out_ref, p_ref):
    """One grid step processes B batch elements.

    x_ref  : (B, H, W, C)     f32   input activations (NHWC)
    w1_ref : (9, C, C)        bf16  conv1 weights with BN1 scale folded in
    w2_ref : (9, C, C)        bf16  conv2 weights with BN2 scale folded in
    b1_ref : (1, C)           f32   folded BN1 bias
    b2_ref : (1, C)           f32   folded BN2 bias
    out_ref: (B, H, W, C)     f32
    p_ref  : (B, H+2, W+2, C) f32   VMEM scratch: zero-padded plane, reused
             for both convs (borders stay zero, centre overwritten each time).
    """
    B, H, W, C = x_ref.shape
    Co = w1_ref.shape[2]
    S = B * H * W

    def conv3x3(w_ref, bias):
        # 3x3 conv = 9 shifted (S, C) @ (C, Co) MXU matmuls over the padded
        # plane currently held in p_ref.  bf16 operands, f32 accumulation.
        # Accumulator starts at the folded-BN bias (one hoisted broadcast).
        acc = jnp.broadcast_to(bias, (S, Co)).astype(jnp.float32)
        for t in range(9):
            ky, kx = t // 3, t % 3
            patch = p_ref[:, ky:ky + H, kx:kx + W, :]          # (B, H, W, C)
            lhs = patch.reshape(S, C).astype(jnp.bfloat16)
            acc = acc + jnp.dot(lhs, w_ref[t],
                                preferred_element_type=jnp.float32)
        return acc                                             # (S, Co) f32

    # Stage the zero-padded input plane: zero the scratch (trivial: ~100 KB of
    # vst, keeps the kernel safe under megacore grid sharding), then place x
    # in the centre.  Borders stay zero for both convs.
    p_ref[...] = jnp.zeros_like(p_ref)
    p_ref[:, 1:H + 1, 1:W + 1, :] = x_ref[...]

    # conv1 + (folded) bn1 + relu
    h = jnp.maximum(conv3x3(w1_ref, b1_ref[...]), 0.0)         # (S, C)

    # stage hidden activations back into the padded scratch (borders still 0)
    p_ref[:, 1:H + 1, 1:W + 1, :] = h.reshape(B, H, W, Co)

    # conv2 + (folded) bn2 + identity residual + relu
    y = conv3x3(w2_ref, b2_ref[...]) + x_ref[...].reshape(S, C)
    out_ref[...] = jnp.maximum(y, 0.0).reshape(B, H, W, Co).astype(out_ref.dtype)


def _fold_bn_into_conv(w_oihw, gamma, beta, mean, var, eps=BN_EPS):
    """Fold eval-mode BatchNorm into the preceding bias-free 3x3 conv.

    Returns (w_tap, bias): w_tap is (9, Cin, Cout), tap-major (t = ky*3 + kx);
    bias is (Cout,).
    """
    scale = gamma / jnp.sqrt(var + eps)                        # (Cout,)
    w_f = w_oihw * scale[:, None, None, None]                  # (Cout, Cin, 3, 3)
    bias = beta - mean * scale                                 # (Cout,)
    w_tap = jnp.transpose(w_f, (2, 3, 1, 0)).reshape(
        9, w_oihw.shape[1], w_oihw.shape[0])
    return w_tap, bias


def residual_block_forward(x_nchw, conv1_w, bn1, conv2_w, bn2, *, block_b=2):
    """ResidualBlock forward (stride=1, downsample=None, eval-mode BN).

    x_nchw : (N, C, H, W) f32
    conv*_w: (C, C, 3, 3) PyTorch OIHW layout (bias-free convs)
    bn*    : (gamma, beta, running_mean, running_var), each (C,)
    """
    N, C, H, W = x_nchw.shape
    assert conv1_w.shape == (C, C, 3, 3) and conv2_w.shape == (C, C, 3, 3)
    # TODO(synk): stride > 1 and the optional `downsample` branch are not
    # implemented; this covers the module's default identity-residual config.
    # TODO(synk): BatchNorm uses running statistics (eval mode); training-mode
    # batch statistics would need an extra cross-batch reduction pass.

    w1_tap, b1 = _fold_bn_into_conv(conv1_w, *bn1)
    w2_tap, b2 = _fold_bn_into_conv(conv2_w, *bn2)

    B = block_b
    assert N % B == 0, "batch must be divisible by the batch block"

    # layout: NCHW -> NHWC so C (=128) is the lane dimension.
    x_nhwc = jnp.transpose(x_nchw, (0, 2, 3, 1)).astype(jnp.float32)

    out = pl.pallas_call(
        residual_block_kernel,
        out_shape=jax.ShapeDtypeStruct((N, H, W, C), jnp.float32),
        grid_spec=pltpu.PrefetchScalarGridSpec(
            num_scalar_prefetch=0,
            grid=(N // B,),
            in_specs=[
                pl.BlockSpec((B, H, W, C), lambda n: (n, 0, 0, 0)),
                pl.BlockSpec((9, C, C), lambda n: (0, 0, 0)),
                pl.BlockSpec((9, C, C), lambda n: (0, 0, 0)),
                pl.BlockSpec((1, C), lambda n: (0, 0)),
                pl.BlockSpec((1, C), lambda n: (0, 0)),
            ],
            out_specs=pl.BlockSpec((B, H, W, C), lambda n: (n, 0, 0, 0)),
            scratch_shapes=[pltpu.VMEM((B, H + 2, W + 2, C), jnp.float32)],
        ),
        compiler_params=pltpu.CompilerParams(
            dimension_semantics=("parallel",)),
    )(
        x_nhwc,
        w1_tap.astype(jnp.bfloat16),
        w2_tap.astype(jnp.bfloat16),
        b1.reshape(1, C).astype(jnp.float32),
        b2.reshape(1, C).astype(jnp.float32),
    )

    # glue: NHWC -> NCHW to match the PyTorch module's output layout.
    return jnp.transpose(out, (0, 3, 1, 2))


def residual_block_reference(x_nchw, conv1_w, bn1, conv2_w, bn2, eps=BN_EPS):
    """Pure-JAX f32 reference mirroring the PyTorch forward (eval-mode BN)."""
    def conv(x, w):
        return lax.conv_general_dilated(
            x, w, window_strides=(1, 1), padding=((1, 1), (1, 1)),
            dimension_numbers=("NCHW", "OIHW", "NCHW"))

    def bn(x, params):
        gamma, beta, mean, var = params
        s = gamma / jnp.sqrt(var + eps)
        return x * s[None, :, None, None] + (beta - mean * s)[None, :, None, None]

    out = jnp.maximum(bn(conv(x_nchw, conv1_w), bn1), 0.0)
    out = bn(conv(out, conv2_w), bn2) + x_nchw
    return jnp.maximum(out, 0.0)


if __name__ == "__main__":
    key = jax.random.PRNGKey(0)
    ks = jax.random.split(key, 5)

    # Small shapes; C=128 keeps the lane dimension dense, B=2 per grid step
    # gives a 128-row MXU matmul per tap and a grid of length 2 (megacore).
    N, C, H, W = 4, 128, 8, 8

    x = jax.random.normal(ks[0], (N, C, H, W), dtype=jnp.float32)

    w_std = (2.0 / (C * 9)) ** 0.5
    conv1_w = w_std * jax.random.normal(ks[1], (C, C, 3, 3), dtype=jnp.float32)
    conv2_w = w_std * jax.random.normal(ks[2], (C, C, 3, 3), dtype=jnp.float32)

    def make_bn(k):
        k1, k2, k3, k4 = jax.random.split(k, 4)
        gamma = jax.random.uniform(k1, (C,), minval=0.5, maxval=1.5)
        beta = 0.1 * jax.random.normal(k2, (C,))
        mean = 0.1 * jax.random.normal(k3, (C,))
        var = jax.random.uniform(k4, (C,), minval=0.5, maxval=1.5)
        return (gamma, beta, mean, var)

    bn1 = make_bn(ks[3])
    bn2 = make_bn(ks[4])

    out = residual_block_forward(x, conv1_w, bn1, conv2_w, bn2, block_b=2)
    out = jax.block_until_ready(out)

    ref = residual_block_reference(x, conv1_w, bn1, conv2_w, bn2)

    assert out.shape == ref.shape == (N, C, H, W)
    err = float(jnp.max(jnp.abs(out - ref)))
    scale = float(jnp.max(jnp.abs(ref)))
    # bf16 matmul operands (f32 accumulation) -> allow small relative drift.
    assert err <= 5e-2 * scale + 1e-3, f"max abs err {err} vs ref scale {scale}"

    print("KERNEL_OK")
</pallas_src>

<mosaic_0001>
module attributes {stable_mosaic.version = 11 : i64} {
  func.func @residual_block_kernel(%arg0: i32, %arg1: memref<2x8x8x128xf32, #tpu.memory_space<vmem>>, %arg2: memref<9x128x128xbf16, #tpu.memory_space<vmem>>, %arg3: memref<9x128x128xbf16, #tpu.memory_space<vmem>>, %arg4: memref<1x128xf32, #tpu.memory_space<vmem>>, %arg5: memref<1x128xf32, #tpu.memory_space<vmem>>, %arg6: memref<2x8x8x128xf32, #tpu.memory_space<vmem>>, %arg7: memref<2x10x10x128xf32, #tpu.memory_space<vmem>>) attributes {dimension_semantics = [#tpu.dimension_semantics<parallel>], iteration_bounds = array<i64: 2>, scalar_prefetch = 0 : i64, scratch_operands = 1 : i64, tpu.core_type = #tpu.core_type<tc>, window_params = [{transform_indices = @transform_0, window_bounds = array<i64: 2, 8, 8, 128>}, {pipeline_mode = #tpu.pipeline_mode<synchronous>, transform_indices = @transform_1, window_bounds = array<i64: 9, 128, 128>}, {pipeline_mode = #tpu.pipeline_mode<synchronous>, transform_indices = @transform_2, window_bounds = array<i64: 9, 128, 128>}, {pipeline_mode = #tpu.pipeline_mode<synchronous>, transform_indices = @transform_3, window_bounds = array<i64: 1, 128>}, {pipeline_mode = #tpu.pipeline_mode<synchronous>, transform_indices = @transform_4, window_bounds = array<i64: 1, 128>}, {transform_indices = @transform_5, window_bounds = array<i64: 2, 8, 8, 128>}]} {
    %cst = arith.constant 0.000000e+00 : f32
    %0 = vector.broadcast %cst : f32 to vector<2x10x10x128xf32>
    %c0 = arith.constant 0 : index
    %c0_0 = arith.constant 0 : index
    %c0_1 = arith.constant 0 : index
    %c0_2 = arith.constant 0 : index
    %1 = vector.load %arg7[%c0, %c0_0, %c0_1, %c0_2] : memref<2x10x10x128xf32, #tpu.memory_space<vmem>>, vector<2x10x10x128xf32>
    tpu.vector_store %arg7[%c0, %c0_0, %c0_1, %c0_2], %0 {strides = array<i32>} : memref<2x10x10x128xf32, #tpu.memory_space<vmem>>, vector<2x10x10x128xf32>,
    %c0_3 = arith.constant 0 : index
    %c0_4 = arith.constant 0 : index
    %c0_5 = arith.constant 0 : index
    %c0_6 = arith.constant 0 : index
    %2 = vector.load %arg1[%c0_3, %c0_4, %c0_5, %c0_6] : memref<2x8x8x128xf32, #tpu.memory_space<vmem>>, vector<2x8x8x128xf32>
    %c0_7 = arith.constant 0 : index
    %c1 = arith.constant 1 : index
    %c1_8 = arith.constant 1 : index
    %c0_9 = arith.constant 0 : index
    %3 = vector.load %arg7[%c0_7, %c1, %c1_8, %c0_9] : memref<2x10x10x128xf32, #tpu.memory_space<vmem>>, vector<2x8x8x128xf32>
    tpu.vector_store %arg7[%c0_7, %c1, %c1_8, %c0_9], %2 {strides = array<i32>} : memref<2x10x10x128xf32, #tpu.memory_space<vmem>>, vector<2x8x8x128xf32>,
    %c0_10 = arith.constant 0 : index
    %c0_11 = arith.constant 0 : index
    %4 = vector.load %arg4[%c0_10, %c0_11] : memref<1x128xf32, #tpu.memory_space<vmem>>, vector<1x128xf32>
    %5 = vector.shape_cast %4 : vector<1x128xf32> to vector<1x128xf32>
    %6 = vector.broadcast %5 : vector<1x128xf32> to vector<128x128xf32>
    %c0_12 = arith.constant 0 : index
    %c0_13 = arith.constant 0 : index
    %c0_14 = arith.constant 0 : index
    %c0_15 = arith.constant 0 : index
    %7 = vector.load %arg7[%c0_12, %c0_13, %c0_14, %c0_15] : memref<2x10x10x128xf32, #tpu.memory_space<vmem>>, vector<2x8x8x128xf32>
    %8 = vector.shape_cast %7 : vector<2x8x8x128xf32> to vector<128x128xf32>
    %9 = arith.truncf %8 : vector<128x128xf32> to vector<128x128xbf16>
    %c0_16 = arith.constant 0 : index
    %c0_17 = arith.constant 0 : index
    %c0_18 = arith.constant 0 : index
    %10 = vector.load %arg2[%c0_16, %c0_17, %c0_18] : memref<9x128x128xbf16, #tpu.memory_space<vmem>>, vector<1x128x128xbf16>
    %11 = vector.shape_cast %10 : vector<1x128x128xbf16> to vector<128x128xbf16>
    %cst_19 = arith.constant dense<0.000000e+00> : vector<128x128xf32>
    %12 = tpu.matmul %9, %11, %cst_19 {dimension_numbers = #tpu.dot_dimension_numbers<[1], [0], [0], [1], [0, 0, 1, 1], [], []>} : vector<128x128xbf16>, vector<128x128xbf16>, vector<128x128xf32> -> vector<128x128xf32>
    %13 = arith.addf %6, %12 : vector<128x128xf32>
    %c0_20 = arith.constant 0 : index
    %c0_21 = arith.constant 0 : index
    %c1_22 = arith.constant 1 : index
    %c0_23 = arith.constant 0 : index
    %14 = vector.load %arg7[%c0_20, %c0_21, %c1_22, %c0_23] : memref<2x10x10x128xf32, #tpu.memory_space<vmem>>, vector<2x8x8x128xf32>
    %15 = vector.shape_cast %14 : vector<2x8x8x128xf32> to vector<128x128xf32>
    %16 = arith.truncf %15 : vector<128x128xf32> to vector<128x128xbf16>
    %c1_24 = arith.constant 1 : index
    %c0_25 = arith.constant 0 : index
    %c0_26 = arith.constant 0 : index
    %17 = vector.load %arg2[%c1_24, %c0_25, %c0_26] : memref<9x128x128xbf16, #tpu.memory_space<vmem>>, vector<1x128x128xbf16>
    %18 = vector.shape_cast %17 : vector<1x128x128xbf16> to vector<128x128xbf16>
    %cst_27 = arith.constant dense<0.000000e+00> : vector<128x128xf32>
    %19 = tpu.matmul %16, %18, %cst_27 {dimension_numbers = #tpu.dot_dimension_numbers<[1], [0], [0], [1], [0, 0, 1, 1], [], []>} : vector<128x128xbf16>, vector<128x128xbf16>, vector<128x128xf32> -> vector<128x128xf32>
    %20 = arith.addf %13, %19 : vector<128x128xf32>
    %c0_28 = arith.constant 0 : index
    %c0_29 = arith.constant 0 : index
    %c2 = arith.constant 2 : index
    %c0_30 = arith.constant 0 : index
    %21 = vector.load %arg7[%c0_28, %c0_29, %c2, %c0_30] : memref<2x10x10x128xf32, #tpu.memory_space<vmem>>, vector<2x8x8x128xf32>
    %22 = vector.shape_cast %21 : vector<2x8x8x128xf32> to vector<128x128xf32>
    %23 = arith.truncf %22 : vector<128x128xf32> to vector<128x128xbf16>
    %c2_31 = arith.constant 2 : index
    %c0_32 = arith.constant 0 : index
    %c0_33 = arith.constant 0 : index
    %24 = vector.load %arg2[%c2_31, %c0_32, %c0_33] : memref<9x128x128xbf16, #tpu.memory_space<vmem>>, vector<1x128x128xbf16>
    %25 = vector.shape_cast %24 : vector<1x128x128xbf16> to vector<128x128xbf16>
    %cst_34 = arith.constant dense<0.000000e+00> : vector<128x128xf32>
    %26 = tpu.matmul %23, %25, %cst_34 {dimension_numbers = #tpu.dot_dimension_numbers<[1], [0], [0], [1], [0, 0, 1, 1], [], []>} : vector<128x128xbf16>, vector<128x128xbf16>, vector<128x128xf32> -> vector<128x128xf32>
    %27 = arith.addf %20, %26 : vector<128x128xf32>
    %c0_35 = arith.constant 0 : index
    %c1_36 = arith.constant 1 : index
    %c0_37 = arith.constant 0 : index
    %c0_38 = arith.constant 0 : index
    %28 = vector.load %arg7[%c0_35, %c1_36, %c0_37, %c0_38] : memref<2x10x10x128xf32, #tpu.memory_space<vmem>>, vector<2x8x8x128xf32>
    %29 = vector.shape_cast %28 : vector<2x8x8x128xf32> to vector<128x128xf32>
    %30 = arith.truncf %29 : vector<128x128xf32> to vector<128x128xbf16>
    %c3 = arith.constant 3 : index
    %c0_39 = arith.constant 0 : index
    %c0_40 = arith.constant 0 : index
    %31 = vector.load %arg2[%c3, %c0_39, %c0_40] : memref<9x128x128xbf16, #tpu.memory_space<vmem>>, vector<1x128x128xbf16>
    %32 = vector.shape_cast %31 : vector<1x128x128xbf16> to vector<128x128xbf16>
    %cst_41 = arith.constant dense<0.000000e+00> : vector<128x128xf32>
    %33 = tpu.matmul %30, %32, %cst_41 {dimension_numbers = #tpu.dot_dimension_numbers<[1], [0], [0], [1], [0, 0, 1, 1], [], []>} : vector<128x128xbf16>, vector<128x128xbf16>, vector<128x128xf32> -> vector<128x128xf32>
    %34 = arith.addf %27, %33 : vector<128x128xf32>
    %c0_42 = arith.constant 0 : index
    %c1_43 = arith.constant 1 : index
    %c1_44 = arith.constant 1 : index
    %c0_45 = arith.constant 0 : index
    %35 = vector.load %arg7[%c0_42, %c1_43, %c1_44, %c0_45] : memref<2x10x10x128xf32, #tpu.memory_space<vmem>>, vector<2x8x8x128xf32>
    %36 = vector.shape_cast %35 : vector<2x8x8x128xf32> to vector<128x128xf32>
    %37 = arith.truncf %36 : vector<128x128xf32> to vector<128x128xbf16>
    %c4 = arith.constant 4 : index
    %c0_46 = arith.constant 0 : index
    %c0_47 = arith.constant 0 : index
    %38 = vector.load %arg2[%c4, %c0_46, %c0_47] : memref<9x128x128xbf16, #tpu.memory_space<vmem>>, vector<1x128x128xbf16>
    %39 = vector.shape_cast %38 : vector<1x128x128xbf16> to vector<128x128xbf16>
    %cst_48 = arith.constant dense<0.000000e+00> : vector<128x128xf32>
    %40 = tpu.matmul %37, %39, %cst_48 {dimension_numbers = #tpu.dot_dimension_numbers<[1], [0], [0], [1], [0, 0, 1, 1], [], []>} : vector<128x128xbf16>, vector<128x128xbf16>, vector<128x128xf32> -> vector<128x128xf32>
    %41 = arith.addf %34, %40 : vector<128x128xf32>
    %c0_49 = arith.constant 0 : index
    %c1_50 = arith.constant 1 : index
    %c2_51 = arith.constant 2 : index
    %c0_52 = arith.constant 0 : index
    %42 = vector.load %arg7[%c0_49, %c1_50, %c2_51, %c0_52] : memref<2x10x10x128xf32, #tpu.memory_space<vmem>>, vector<2x8x8x128xf32>
    %43 = vector.shape_cast %42 : vector<2x8x8x128xf32> to vector<128x128xf32>
    %44 = arith.truncf %43 : vector<128x128xf32> to vector<128x128xbf16>
    %c5 = arith.constant 5 : index
    %c0_53 = arith.constant 0 : index
    %c0_54 = arith.constant 0 : index
    %45 = vector.load %arg2[%c5, %c0_53, %c0_54] : memref<9x128x128xbf16, #tpu.memory_space<vmem>>, vector<1x128x128xbf16>
    %46 = vector.shape_cast %45 : vector<1x128x128xbf16> to vector<128x128xbf16>
    %cst_55 = arith.constant dense<0.000000e+00> : vector<128x128xf32>
    %47 = tpu.matmul %44, %46, %cst_55 {dimension_numbers = #tpu.dot_dimension_numbers<[1], [0], [0], [1], [0, 0, 1, 1], [], []>} : vector<128x128xbf16>, vector<128x128xbf16>, vector<128x128xf32> -> vector<128x128xf32>
    %48 = arith.addf %41, %47 : vector<128x128xf32>
    %c0_56 = arith.constant 0 : index
    %c2_57 = arith.constant 2 : index
    %c0_58 = arith.constant 0 : index
    %c0_59 = arith.constant 0 : index
    %49 = vector.load %arg7[%c0_56, %c2_57, %c0_58, %c0_59] : memref<2x10x10x128xf32, #tpu.memory_space<vmem>>, vector<2x8x8x128xf32>
    %50 = vector.shape_cast %49 : vector<2x8x8x128xf32> to vector<128x128xf32>
    %51 = arith.truncf %50 : vector<128x128xf32> to vector<128x128xbf16>
    %c6 = arith.constant 6 : index
    %c0_60 = arith.constant 0 : index
    %c0_61 = arith.constant 0 : index
    %52 = vector.load %arg2[%c6, %c0_60, %c0_61] : memref<9x128x128xbf16, #tpu.memory_space<vmem>>, vector<1x128x128xbf16>
    %53 = vector.shape_cast %52 : vector<1x128x128xbf16> to vector<128x128xbf16>
    %cst_62 = arith.constant dense<0.000000e+00> : vector<128x128xf32>
    %54 = tpu.matmul %51, %53, %cst_62 {dimension_numbers = #tpu.dot_dimension_numbers<[1], [0], [0], [1], [0, 0, 1, 1], [], []>} : vector<128x128xbf16>, vector<128x128xbf16>, vector<128x128xf32> -> vector<128x128xf32>
    %55 = arith.addf %48, %54 : vector<128x128xf32>
    %c0_63 = arith.constant 0 : index
    %c2_64 = arith.constant 2 : index
    %c1_65 = arith.constant 1 : index
    %c0_66 = arith.constant 0 : index
    %56 = vector.load %arg7[%c0_63, %c2_64, %c1_65, %c0_66] : memref<2x10x10x128xf32, #tpu.memory_space<vmem>>, vector<2x8x8x128xf32>
    %57 = vector.shape_cast %56 : vector<2x8x8x128xf32> to vector<128x128xf32>
    %58 = arith.truncf %57 : vector<128x128xf32> to vector<128x128xbf16>
    %c7 = arith.constant 7 : index
    %c0_67 = arith.constant 0 : index
    %c0_68 = arith.constant 0 : index
    %59 = vector.load %arg2[%c7, %c0_67, %c0_68] : memref<9x128x128xbf16, #tpu.memory_space<vmem>>, vector<1x128x128xbf16>
    %60 = vector.shape_cast %59 : vector<1x128x128xbf16> to vector<128x128xbf16>
    %cst_69 = arith.constant dense<0.000000e+00> : vector<128x128xf32>
    %61 = tpu.matmul %58, %60, %cst_69 {dimension_numbers = #tpu.dot_dimension_numbers<[1], [0], [0], [1], [0, 0, 1, 1], [], []>} : vector<128x128xbf16>, vector<128x128xbf16>, vector<128x128xf32> -> vector<128x128xf32>
    %62 = arith.addf %55, %61 : vector<128x128xf32>
    %c0_70 = arith.constant 0 : index
    %c2_71 = arith.constant 2 : index
    %c2_72 = arith.constant 2 : index
    %c0_73 = arith.constant 0 : index
    %63 = vector.load %arg7[%c0_70, %c2_71, %c2_72, %c0_73] : memref<2x10x10x128xf32, #tpu.memory_space<vmem>>, vector<2x8x8x128xf32>
    %64 = vector.shape_cast %63 : vector<2x8x8x128xf32> to vector<128x128xf32>
    %65 = arith.truncf %64 : vector<128x128xf32> to vector<128x128xbf16>
    %c8 = arith.constant 8 : index
    %c0_74 = arith.constant 0 : index
    %c0_75 = arith.constant 0 : index
    %66 = vector.load %arg2[%c8, %c0_74, %c0_75] : memref<9x128x128xbf16, #tpu.memory_space<vmem>>, vector<1x128x128xbf16>
    %67 = vector.shape_cast %66 : vector<1x128x128xbf16> to vector<128x128xbf16>
    %cst_76 = arith.constant dense<0.000000e+00> : vector<128x128xf32>
    %68 = tpu.matmul %65, %67, %cst_76 {dimension_numbers = #tpu.dot_dimension_numbers<[1], [0], [0], [1], [0, 0, 1, 1], [], []>} : vector<128x128xbf16>, vector<128x128xbf16>, vector<128x128xf32> -> vector<128x128xf32>
    %69 = arith.addf %62, %68 : vector<128x128xf32>
    %cst_77 = arith.constant 0.000000e+00 : f32
    %70 = vector.broadcast %cst_77 : f32 to vector<128x128xf32>
    %71 = arith.maximumf %69, %70 : vector<128x128xf32>
    %72 = vector.shape_cast %71 : vector<128x128xf32> to vector<2x8x8x128xf32>
    %c0_78 = arith.constant 0 : index
    %c1_79 = arith.constant 1 : index
    %c1_80 = arith.constant 1 : index
    %c0_81 = arith.constant 0 : index
    %73 = vector.load %arg7[%c0_78, %c1_79, %c1_80, %c0_81] : memref<2x10x10x128xf32, #tpu.memory_space<vmem>>, vector<2x8x8x128xf32>
    tpu.vector_store %arg7[%c0_78, %c1_79, %c1_80, %c0_81], %72 {strides = array<i32>} : memref<2x10x10x128xf32, #tpu.memory_space<vmem>>, vector<2x8x8x128xf32>,
    %c0_82 = arith.constant 0 : index
    %c0_83 = arith.constant 0 : index
    %74 = vector.load %arg5[%c0_82, %c0_83] : memref<1x128xf32, #tpu.memory_space<vmem>>, vector<1x128xf32>
    %75 = vector.shape_cast %74 : vector<1x128xf32> to vector<1x128xf32>
    %76 = vector.broadcast %75 : vector<1x128xf32> to vector<128x128xf32>
    %c0_84 = arith.constant 0 : index
    %c0_85 = arith.constant 0 : index
    %c0_86 = arith.constant 0 : index
    %c0_87 = arith.constant 0 : index
    %77 = vector.load %arg7[%c0_84, %c0_85, %c0_86, %c0_87] : memref<2x10x10x128xf32, #tpu.memory_space<vmem>>, vector<2x8x8x128xf32>
    %78 = vector.shape_cast %77 : vector<2x8x8x128xf32> to vector<128x128xf32>
    %79 = arith.truncf %78 : vector<128x128xf32> to vector<128x128xbf16>
    %c0_88 = arith.constant 0 : index
    %c0_89 = arith.constant 0 : index
    %c0_90 = arith.constant 0 : index
    %80 = vector.load %arg3[%c0_88, %c0_89, %c0_90] : memref<9x128x128xbf16, #tpu.memory_space<vmem>>, vector<1x128x128xbf16>
    %81 = vector.shape_cast %80 : vector<1x128x128xbf16> to vector<128x128xbf16>
    %cst_91 = arith.constant dense<0.000000e+00> : vector<128x128xf32>
    %82 = tpu.matmul %79, %81, %cst_91 {dimension_numbers = #tpu.dot_dimension_numbers<[1], [0], [0], [1], [0, 0, 1, 1], [], []>} : vector<128x128xbf16>, vector<128x128xbf16>, vector<128x128xf32> -> vector<128x128xf32>
    %83 = arith.addf %76, %82 : vector<128x128xf32>
    %c0_92 = arith.constant 0 : index
    %c0_93 = arith.constant 0 : index
    %c1_94 = arith.constant 1 : index
    %c0_95 = arith.constant 0 : index
    %84 = vector.load %arg7[%c0_92, %c0_93, %c1_94, %c0_95] : memref<2x10x10x128xf32, #tpu.memory_space<vmem>>, vector<2x8x8x128xf32>
    %85 = vector.shape_cast %84 : vector<2x8x8x128xf32> to vector<128x128xf32>
    %86 = arith.truncf %85 : vector<128x128xf32> to vector<128x128xbf16>
    %c1_96 = arith.constant 1 : index
    %c0_97 = arith.constant 0 : index
    %c0_98 = arith.constant 0 : index
    %87 = vector.load %arg3[%c1_96, %c0_97, %c0_98] : memref<9x128x128xbf16, #tpu.memory_space<vmem>>, vector<1x128x128xbf16>
    %88 = vector.shape_cast %87 : vector<1x128x128xbf16> to vector<128x128xbf16>
    %cst_99 = arith.constant dense<0.000000e+00> : vector<128x128xf32>
    %89 = tpu.matmul %86, %88, %cst_99 {dimension_numbers = #tpu.dot_dimension_numbers<[1], [0], [0], [1], [0, 0, 1, 1], [], []>} : vector<128x128xbf16>, vector<128x128xbf16>, vector<128x128xf32> -> vector<128x128xf32>
    %90 = arith.addf %83, %89 : vector<128x128xf32>
    %c0_100 = arith.constant 0 : index
    %c0_101 = arith.constant 0 : index
    %c2_102 = arith.constant 2 : index
    %c0_103 = arith.constant 0 : index
    %91 = vector.load %arg7[%c0_100, %c0_101, %c2_102, %c0_103] : memref<2x10x10x128xf32, #tpu.memory_space<vmem>>, vector<2x8x8x128xf32>
    %92 = vector.shape_cast %91 : vector<2x8x8x128xf32> to vector<128x128xf32>
    %93 = arith.truncf %92 : vector<128x128xf32> to vector<128x128xbf16>
    %c2_104 = arith.constant 2 : index
    %c0_105 = arith.constant 0 : index
    %c0_106 = arith.constant 0 : index
    %94 = vector.load %arg3[%c2_104, %c0_105, %c0_106] : memref<9x128x128xbf16, #tpu.memory_space<vmem>>, vector<1x128x128xbf16>
    %95 = vector.shape_cast %94 : vector<1x128x128xbf16> to vector<128x128xbf16>
    %cst_107 = arith.constant dense<0.000000e+00> : vector<128x128xf32>
    %96 = tpu.matmul %93, %95, %cst_107 {dimension_numbers = #tpu.dot_dimension_numbers<[1], [0], [0], [1], [0, 0, 1, 1], [], []>} : vector<128x128xbf16>, vector<128x128xbf16>, vector<128x128xf32> -> vector<128x128xf32>
    %97 = arith.addf %90, %96 : vector<128x128xf32>
    %c0_108 = arith.constant 0 : index
    %c1_109 = arith.constant 1 : index
    %c0_110 = arith.constant 0 : index
    %c0_111 = arith.constant 0 : index
    %98 = vector.load %arg7[%c0_108, %c1_109, %c0_110, %c0_111] : memref<2x10x10x128xf32, #tpu.memory_space<vmem>>, vector<2x8x8x128xf32>
    %99 = vector.shape_cast %98 : vector<2x8x8x128xf32> to vector<128x128xf32>
    %100 = arith.truncf %99 : vector<128x128xf32> to vector<128x128xbf16>
    %c3_112 = arith.constant 3 : index
    %c0_113 = arith.constant 0 : index
    %c0_114 = arith.constant 0 : index
    %101 = vector.load %arg3[%c3_112, %c0_113, %c0_114] : memref<9x128x128xbf16, #tpu.memory_space<vmem>>, vector<1x128x128xbf16>
    %102 = vector.shape_cast %101 : vector<1x128x128xbf16> to vector<128x128xbf16>
    %cst_115 = arith.constant dense<0.000000e+00> : vector<128x128xf32>
    %103 = tpu.matmul %100, %102, %cst_115 {dimension_numbers = #tpu.dot_dimension_numbers<[1], [0], [0], [1], [0, 0, 1, 1], [], []>} : vector<128x128xbf16>, vector<128x128xbf16>, vector<128x128xf32> -> vector<128x128xf32>
    %104 = arith.addf %97, %103 : vector<128x128xf32>
    %c0_116 = arith.constant 0 : index
    %c1_117 = arith.constant 1 : index
    %c1_118 = arith.constant 1 : index
    %c0_119 = arith.constant 0 : index
    %105 = vector.load %arg7[%c0_116, %c1_117, %c1_118, %c0_119] : memref<2x10x10x128xf32, #tpu.memory_space<vmem>>, vector<2x8x8x128xf32>
    %106 = vector.shape_cast %105 : vector<2x8x8x128xf32> to vector<128x128xf32>
    %107 = arith.truncf %106 : vector<128x128xf32> to vector<128x128xbf16>
    %c4_120 = arith.constant 4 : index
    %c0_121 = arith.constant 0 : index
    %c0_122 = arith.constant 0 : index
    %108 = vector.load %arg3[%c4_120, %c0_121, %c0_122] : memref<9x128x128xbf16, #tpu.memory_space<vmem>>, vector<1x128x128xbf16>
    %109 = vector.shape_cast %108 : vector<1x128x128xbf16> to vector<128x128xbf16>
    %cst_123 = arith.constant dense<0.000000e+00> : vector<128x128xf32>
    %110 = tpu.matmul %107, %109, %cst_123 {dimension_numbers = #tpu.dot_dimension_numbers<[1], [0], [0], [1], [0, 0, 1, 1], [], []>} : vector<128x128xbf16>, vector<128x128xbf16>, vector<128x128xf32> -> vector<128x128xf32>
    %111 = arith.addf %104, %110 : vector<128x128xf32>
    %c0_124 = arith.constant 0 : index
    %c1_125 = arith.constant 1 : index
    %c2_126 = arith.constant 2 : index
    %c0_127 = arith.constant 0 : index
    %112 = vector.load %arg7[%c0_124, %c1_125, %c2_126, %c0_127] : memref<2x10x10x128xf32, #tpu.memory_space<vmem>>, vector<2x8x8x128xf32>
    %113 = vector.shape_cast %112 : vector<2x8x8x128xf32> to vector<128x128xf32>
    %114 = arith.truncf %113 : vector<128x128xf32> to vector<128x128xbf16>
    %c5_128 = arith.constant 5 : index
    %c0_129 = arith.constant 0 : index
    %c0_130 = arith.constant 0 : index
    %115 = vector.load %arg3[%c5_128, %c0_129, %c0_130] : memref<9x128x128xbf16, #tpu.memory_space<vmem>>, vector<1x128x128xbf16>
    %116 = vector.shape_cast %115 : vector<1x128x128xbf16> to vector<128x128xbf16>
    %cst_131 = arith.constant dense<0.000000e+00> : vector<128x128xf32>
    %117 = tpu.matmul %114, %116, %cst_131 {dimension_numbers = #tpu.dot_dimension_numbers<[1], [0], [0], [1], [0, 0, 1, 1], [], []>} : vector<128x128xbf16>, vector<128x128xbf16>, vector<128x128xf32> -> vector<128x128xf32>
    %118 = arith.addf %111, %117 : vector<128x128xf32>
    %c0_132 = arith.constant 0 : index
    %c2_133 = arith.constant 2 : index
    %c0_134 = arith.constant 0 : index
    %c0_135 = arith.constant 0 : index
    %119 = vector.load %arg7[%c0_132, %c2_133, %c0_134, %c0_135] : memref<2x10x10x128xf32, #tpu.memory_space<vmem>>, vector<2x8x8x128xf32>
    %120 = vector.shape_cast %119 : vector<2x8x8x128xf32> to vector<128x128xf32>
    %121 = arith.truncf %120 : vector<128x128xf32> to vector<128x128xbf16>
    %c6_136 = arith.constant 6 : index
    %c0_137 = arith.constant 0 : index
    %c0_138 = arith.constant 0 : index
    %122 = vector.load %arg3[%c6_136, %c0_137, %c0_138] : memref<9x128x128xbf16, #tpu.memory_space<vmem>>, vector<1x128x128xbf16>
    %123 = vector.shape_cast %122 : vector<1x128x128xbf16> to vector<128x128xbf16>
    %cst_139 = arith.constant dense<0.000000e+00> : vector<128x128xf32>
    %124 = tpu.matmul %121, %123, %cst_139 {dimension_numbers = #tpu.dot_dimension_numbers<[1], [0], [0], [1], [0, 0, 1, 1], [], []>} : vector<128x128xbf16>, vector<128x128xbf16>, vector<128x128xf32> -> vector<128x128xf32>
    %125 = arith.addf %118, %124 : vector<128x128xf32>
    %c0_140 = arith.constant 0 : index
    %c2_141 = arith.constant 2 : index
    %c1_142 = arith.constant 1 : index
    %c0_143 = arith.constant 0 : index
    %126 = vector.load %arg7[%c0_140, %c2_141, %c1_142, %c0_143] : memref<2x10x10x128xf32, #tpu.memory_space<vmem>>, vector<2x8x8x128xf32>
    %127 = vector.shape_cast %126 : vector<2x8x8x128xf32> to vector<128x128xf32>
    %128 = arith.truncf %127 : vector<128x128xf32> to vector<128x128xbf16>
    %c7_144 = arith.constant 7 : index
    %c0_145 = arith.constant 0 : index
    %c0_146 = arith.constant 0 : index
    %129 = vector.load %arg3[%c7_144, %c0_145, %c0_146] : memref<9x128x128xbf16, #tpu.memory_space<vmem>>, vector<1x128x128xbf16>
    %130 = vector.shape_cast %129 : vector<1x128x128xbf16> to vector<128x128xbf16>
    %cst_147 = arith.constant dense<0.000000e+00> : vector<128x128xf32>
    %131 = tpu.matmul %128, %130, %cst_147 {dimension_numbers = #tpu.dot_dimension_numbers<[1], [0], [0], [1], [0, 0, 1, 1], [], []>} : vector<128x128xbf16>, vector<128x128xbf16>, vector<128x128xf32> -> vector<128x128xf32>
    %132 = arith.addf %125, %131 : vector<128x128xf32>
    %c0_148 = arith.constant 0 : index
    %c2_149 = arith.constant 2 : index
    %c2_150 = arith.constant 2 : index
    %c0_151 = arith.constant 0 : index
    %133 = vector.load %arg7[%c0_148, %c2_149, %c2_150, %c0_151] : memref<2x10x10x128xf32, #tpu.memory_space<vmem>>, vector<2x8x8x128xf32>
    %134 = vector.shape_cast %133 : vector<2x8x8x128xf32> to vector<128x128xf32>
    %135 = arith.truncf %134 : vector<128x128xf32> to vector<128x128xbf16>
    %c8_152 = arith.constant 8 : index
    %c0_153 = arith.constant 0 : index
    %c0_154 = arith.constant 0 : index
    %136 = vector.load %arg3[%c8_152, %c0_153, %c0_154] : memref<9x128x128xbf16, #tpu.memory_space<vmem>>, vector<1x128x128xbf16>
    %137 = vector.shape_cast %136 : vector<1x128x128xbf16> to vector<128x128xbf16>
    %cst_155 = arith.constant dense<0.000000e+00> : vector<128x128xf32>
    %138 = tpu.matmul %135, %137, %cst_155 {dimension_numbers = #tpu.dot_dimension_numbers<[1], [0], [0], [1], [0, 0, 1, 1], [], []>} : vector<128x128xbf16>, vector<128x128xbf16>, vector<128x128xf32> -> vector<128x128xf32>
    %139 = arith.addf %132, %138 : vector<128x128xf32>
    %c0_156 = arith.constant 0 : index
    %c0_157 = arith.constant 0 : index
    %c0_158 = arith.constant 0 : index
    %c0_159 = arith.constant 0 : index
    %140 = vector.load %arg1[%c0_156, %c0_157, %c0_158, %c0_159] : memref<2x8x8x128xf32, #tpu.memory_space<vmem>>, vector<2x8x8x128xf32>
    %141 = vector.shape_cast %140 : vector<2x8x8x128xf32> to vector<128x128xf32>
    %142 = arith.addf %139, %141 : vector<128x128xf32>
    %cst_160 = arith.constant 0.000000e+00 : f32
    %143 = vector.broadcast %cst_160 : f32 to vector<128x128xf32>
    %144 = arith.maximumf %142, %143 : vector<128x128xf32>
    %145 = vector.shape_cast %144 : vector<128x128xf32> to vector<2x8x8x128xf32>
    %c0_161 = arith.constant 0 : index
    %c0_162 = arith.constant 0 : index
    %c0_163 = arith.constant 0 : index
    %c0_164 = arith.constant 0 : index
    %146 = vector.load %arg6[%c0_161, %c0_162, %c0_163, %c0_164] : memref<2x8x8x128xf32, #tpu.memory_space<vmem>>, vector<2x8x8x128xf32>
    tpu.vector_store %arg6[%c0_161, %c0_162, %c0_163, %c0_164], %145 {strides = array<i32>} : memref<2x8x8x128xf32, #tpu.memory_space<vmem>>, vector<2x8x8x128xf32>,
    return
  }
  func.func @transform_0(%arg0: i32) -> (i32, i32, i32, i32) {
    %c0_i32 = arith.constant 0 : i32
    %c0_i32_0 = arith.constant 0 : i32
    %c0_i32_1 = arith.constant 0 : i32
    %c0_i32_2 = arith.constant 0 : i32
    return %arg0, %c0_i32, %c0_i32_0, %c0_i32_1 : i32, i32, i32, i32
  }
  func.func @transform_1(%arg0: i32) -> (i32, i32, i32) {
    %c0_i32 = arith.constant 0 : i32
    %c0_i32_0 = arith.constant 0 : i32
    %c0_i32_1 = arith.constant 0 : i32
    %c0_i32_2 = arith.constant 0 : i32
    return %c0_i32, %c0_i32_0, %c0_i32_1 : i32, i32, i32
  }
  func.func @transform_2(%arg0: i32) -> (i32, i32, i32) {
    %c0_i32 = arith.constant 0 : i32
    %c0_i32_0 = arith.constant 0 : i32
    %c0_i32_1 = arith.constant 0 : i32
    %c0_i32_2 = arith.constant 0 : i32
    return %c0_i32, %c0_i32_0, %c0_i32_1 : i32, i32, i32
  }
  func.func @transform_3(%arg0: i32) -> (i32, i32) {
    %c0_i32 = arith.constant 0 : i32
    %c0_i32_0 = arith.constant 0 : i32
    %c0_i32_1 = arith.constant 0 : i32
    return %c0_i32, %c0_i32_0 : i32, i32
  }
  func.func @transform_4(%arg0: i32) -> (i32, i32) {
    %c0_i32 = arith.constant 0 : i32
    %c0_i32_0 = arith.constant 0 : i32
    %c0_i32_1 = arith.constant 0 : i32
    return %c0_i32, %c0_i32_0 : i32, i32
  }
  func.func @transform_5(%arg0: i32) -> (i32, i32, i32, i32) {
    %c0_i32 = arith.constant 0 : i32
    %c0_i32_0 = arith.constant 0 : i32
    %c0_i32_1 = arith.constant 0 : i32
    %c0_i32_2 = arith.constant 0 : i32
    return %arg0, %c0_i32, %c0_i32_0, %c0_i32_1 : i32, i32, i32, i32
  }
}

</mosaic_0001>

<bundles_post_ra>
// kernel: tpu_custom_call.1
= control target key start
LH: loop header
LB: loop body
LE: loop exit
PB: predicated region body
PF: predicated region fallthrough
CT: control target
= control target key end

     0   :  { %10 = vsyncpa [#allocation4], 0  ;;  %s7074_s0 = inlined_call_operand.hbm [shape: f32[4,8,8,128], index: 0, kind: input, shape index: {}]   ;;  %s7075_s1 = inlined_call_operand.hbm [shape: bf16[9,128,128], index: 1, kind: input, shape index: {}]   ;;  %s7076_s2 = inlined_call_operand.hbm [shape: bf16[9,128,128], index: 2, kind: input, shape index: {}]   ;;  %s7077_s3 = inlined_call_operand.vmem [shape: f32[1,128], index: 3, kind: input, shape index: {}]   ;;  %s7078_s4 = inlined_call_operand.vmem [shape: f32[1,128], index: 4, kind: input, shape index: {}]   ;;  %s7079_s5 = inlined_call_operand.hbm [shape: f32[4,8,8,128], index: 5, kind: output, shape index: {}]  }
   0x1   :  { %12 = vsyncpa [#allocation4 + $0x1], 0 }
   0x2   :  { %13 = vsyncpa [#allocation7], 0 }
   0x3   :  { %14 = vsyncpa [#allocation5], 0 }
   0x4   :  { %16 = vsyncpa [#allocation5 + $0x1], 0  ;;  %s5646_s18 = smov 0   ;;  %s5648_s19 = smov 0  }
   0x5   :  { %s5650_s20 = smov 0   ;;  %s5652_s21 = smov 0  }
   0x6 LB: > { %s5667_s22 = sadd.s32 4294967295, %s5603_s21   ;;  %s4201_s23 = sadd.s32 4294967294, %s5603_s21   ;;  %s5603_s21 = sphi %s5652_s21, %s7237_s21   ;;  %s5599_s20 = sphi %s5650_s20, %s7236_s20   ;;  %s5595_s19 = sphi %s5648_s19, %s7235_s19   ;;  %s5591_s18 = sphi %s5646_s18, %s7234_s18  }
   0x7   : > { %p42_p0 = scmp.ne.s32.totalorder %s5595_s19, %s5591_s18  ;;  %p7080_p1 = scmp.eq.s32.totalorder %s5667_s22, 0 }
   0x8   : > { %p156_p3 = scmp.eq.s32.totalorder %s4201_s23, 1  ;;  %p4202_p5 = scmp.ge.s32.totalorder %s5603_s21, 1 }
   0x9   : > { %p5676_p4 = por %p7080_p1, %p42_p0  ;;  %p163_p7 = scmp.lt.s32.totalorder %s5603_s21, 3 }
   0xa   : > { %p5681_p6 = por %p156_p3, %p42_p0  ;;  %s5605_s27 = smov [#allocation6]  }
   0xb   : > { %s7088_s24 = scalar_select %p5676_p4, 1, 0 }
   0xc   : > { %s7089_s25 = scalar_select %p5681_p6, 1, 0 }
   0xd   : > { %p5686_p8 = pnand %p4202_p5, %p163_p7  ;;  %s175_s28 = sshll.u32 %s5605_s27, 4  ;;  %s176_s28 = int_to_ptr.vmem [resolvable:$true] %s175_s28 }
   0xe   : > { %s5606_s30 = smov [#allocation8]   ;;  %s5466_s7 = scalar_lea.vmem %s176_s28, 9216 }
   0xf   : > { %s7090_s26 = scalar_select %p5686_p8, 1, 0 }
  0x10   : > { %p5247_p9 = pneg %p5686_p8  ;;  %s188_s6 = sshll.u32 %s5606_s30, 4  ;;  %s189_s6 = int_to_ptr.vmem [resolvable:$true] %s188_s6 }
  0x11   : > { %p5467_p13 = scmp.ne.s32.totalorder %s176_s28, %s5466_s7  ;;  %p5474_p5 = scmp.lt.s32.totalorder %s176_s28, %s176_s28 }
  0x12   : > { %p5695_p11 = pnand %p5247_p9, %p7080_p1  ;;  %p5475_p7 = scmp.lt.s32.totalorder %s5466_s7, %s5466_s7 }
  0x14   : > { %p5457_p12 = pneg %p5695_p11  ;;  %p5476_p10 = por %p5475_p7, %p5474_p5 }
  0x16   : > { %p5469_p0 = pnand %p5467_p13, %p5457_p12 }
  0x18   : > { %p5470_p3 = pneg %p5469_p0 }
  0x1a   : > { %p5477_p9 = pnand %p5476_p10, %p5470_p3 }
  0x1c   : > { %5480 = shalt.err (!%p5477_p9)
}
  0x1d   : > { %s5607_s8 = smov 64   ;;  %s5608_s9 = smov 4  }
  0x1e   : > { %5250 = dma.hbm_to_vmem [thread:$0]  (!%p5695_p11), %s7075_s1, 9216, %s176_s28, [#allocation7], %s5607_s8, %s5607_s8, %s5608_s9  }
  0x1f   : > { %s5492_s12 = scalar_lea.vmem %s189_s6, 9216  ;;  %p5500_p2 = scmp.lt.s32.totalorder %s189_s6, %s189_s6 }
  0x20   : > { %p5493_p1 = scmp.ne.s32.totalorder %s189_s6, %s5492_s12  ;;  %p5501_p6 = scmp.lt.s32.totalorder %s5492_s12, %s5492_s12 }
  0x22   : > { %p5495_p13 = pnand %p5493_p1, %p5457_p12  ;;  %p5502_p5 = por %p5501_p6, %p5500_p2 }
  0x24   : > { %p5496_p0 = pneg %p5495_p13 }
  0x26   : > { %p5503_p10 = pnand %p5502_p5, %p5496_p0 }
  0x28   : > { %5506 = shalt.err (!%p5503_p10)
}
  0x29   : > { %5253 = dma.hbm_to_vmem [thread:$0]  (!%p5695_p11), %s7076_s2, 9216, %s189_s6, [#allocation7], %s5607_s8, %s5607_s8, %s5608_s9  }
  0x2a   : > { %s5718_s15 = sadd.s32 1, %s5603_s21   ;;  %s29_s16 = sadd.s32 1, %s5599_s20 }
  0x2b   : > { %s26_s17 = ssub.s32 %s5603_s21, %s5718_s15  ;;  %p36_p1 = scmp.ne.s32.totalorder %s5599_s20, %s5595_s19 }
  0x2c   : > { %p27_p2 = scmp.eq.s32.totalorder %s26_s17, 0  ;;  %p37_p6 = scmp.eq.s32.totalorder %s5603_s21, 0 }
  0x2d   : > { %p7092_p12 = scmp.eq.s32.totalorder %s5667_s22, 1  ;;  %p5264_p7 = scmp.lt.s32.totalorder %s5603_s21, 2 }
  0x2e   : > { %s5734_s27 = scalar_select %p27_p2, %s5599_s20, %s29_s16  }
  0x2f   : > { %p5728_p3 = por %p7092_p12, %p36_p1  ;;  %p38_p9 = por %p37_p6, %p36_p1 }
  0x30   : > { %s208_s28 = sand.u32 1, %s5599_s20   ;;  %s4368_s30 = sshll.u32 %s5603_s21, 11 }
  0x31   : > { %s7093_s23 = scalar_select %p5728_p3, 1, 0 }
  0x32   : > { %s4206_s29 = sshll.u32 %s208_s28, 7  ;;  %s5741_s8 = scalar_lea.hbm %s7074_s0, %s4368_s30 }
  0x33   : > { %s212_s9 = scalar_lea.vmem [#allocation3], %s4206_s29  ;;  %p5745_p11 = pnand %p5264_p7, %p38_p9 }
  0x34   : > { %s220_s10 = sshll.u32 %s212_s9, 4  ;;  %s5749_s12 = scalar_lea.sflag [#allocation4], %s208_s28  ;;  %s5743_s10 = int_to_ptr.vmem [resolvable:$true] %s220_s10 }
  0x35   : > { %s5507_s13 = scalar_lea.hbm %s5741_s8, 2048  ;;  %p5509_p0 = pneg %p5745_p11 }
  0x36   : > { %p5508_p13 = scmp.ne.s32.totalorder %s5741_s8, %s5507_s13  ;;  %s5512_s17 = scalar_lea.hbm %s7074_s0, 4096 }
  0x37   : > { %p5513_p1 = scmp.lt.s32.totalorder %s5741_s8, %s7074_s0  ;;  %p5514_p2 = scmp.lt.s32.totalorder %s5512_s17, %s5507_s13 }
  0x38   : > { %p5510_p5 = pnand %p5509_p0, %p5508_p13 }
  0x39   : > { %p5515_p6 = por %p5514_p2, %p5513_p1 }
  0x3a   : > { %p5511_p10 = pneg %p5510_p5 }
  0x3c   : > { %p5516_p12 = pnand %p5515_p6, %p5511_p10 }
  0x3e   : > { %5519 = shalt.err (!%p5516_p12)
}
  0x3f   : > { %s5520_s28 = scalar_lea.vmem %s5743_s10, 2048  ;;  %s5609_s6 = smov [#allocation3]  }
  0x40   : > { %p5521_p7 = scmp.ne.s32.totalorder %s5743_s10, %s5520_s28  ;;  %s5525_s7 = sshll.u32 %s5609_s6, 4  ;;  %s5526_s7 = int_to_ptr.vmem [resolvable:$false] %s5525_s7 }
  0x41   : > { %s5527_s9 = scalar_lea.vmem %s5526_s7, 4096  ;;  %p5528_p5 = scmp.lt.s32.totalorder %s5743_s10, %s5526_s7 }
  0x42   : > { %p5523_p9 = pnand %p5521_p7, %p5509_p0  ;;  %p5529_p3 = scmp.lt.s32.totalorder %s5527_s9, %s5520_s28 }
  0x44   : > { %p5524_p13 = pneg %p5523_p9  ;;  %p5530_p4 = por %p5529_p3, %p5528_p5 }
  0x46   : > { %p5531_p8 = pnand %p5530_p4, %p5524_p13 }
  0x48   : > { %5534 = shalt.err (!%p5531_p8)
}
  0x49   : > { %s5610_s13 = smov 128   ;;  %s5611_s14 = smov 8  }
  0x4a   : > { %5257 = dma.hbm_to_vmem [thread:$0]  (!%p5745_p11), %s5741_s8, 2048, %s5743_s10, %s5749_s12, %s5610_s13, %s5610_s13, %s5611_s14  }
  0x4b   : > { %p7095_p0 = scmp.ne.s32.totalorder %s7090_s26, 0 }
  0x4d   : > { %232 = sbr.rel (%p7095_p0) target bundleno = 834 (0x342), region = 40 }
  0x52   : > { %s5773_s16 = sand.u32 1, %s5595_s19   ;;  %p7096_p4 = scmp.ne.s32.totalorder %s7088_s24, 0 }
  0x53   : > { %s4211_s17 = sshll.u32 %s5773_s16, 7  ;;  %s235_s29 = scalar_lea.sflag [#allocation4], %s5773_s16 }
  0x54   : > { %s5779_s30 = scalar_lea.vmem [#allocation3], %s4211_s17 }
  0x55   : > { %5578 = dma.done.wait (%p7096_p4), %s235_s29, 2048  }
  0x56   : > { %5580 = vsyncadd (%p7096_p4), %s235_s29, 4294965248  ;;  %p7097_p8 = scmp.eq.s32.totalorder %s5667_s22, 0 }
  0x58   : > { %5582 = dma.done.wait (%p7097_p8), [#allocation7], 18432   ;;  %p7098_p3 = pmov %p7097_p8 }
  0x59   : > { %v5612_v0 = vmov 0.0   ;;  %v5309_v1 = vld [vmem:[#allocation6 + $0x38] sm:$0xff]   ;;  %v5311_v3 = vld [vmem:[#allocation6 + $0x30] sm:$0xff]   ;;  %v5313_v5 = vld [vmem:[#allocation6 + $0x28] sm:$0xff]   ;;  %s6956_s11 = scalar_lea.vmem [#allocation9], %s4211_s17  ;;  %s4370_s12 = sshll.u32 %s5667_s22, 11 }
  0x5a   : > { %5584 = vsyncadd (%p7098_p3), [#allocation7], 4294948864  ;;  %276 = vst [vmem:[#allocation2] sm:$0xff] %v5612_v0  ;;  %v5310_v2 = vld [vmem:[#allocation6 + $0x78] sm:$0xff]   ;;  %4659 = vmatprep.subr.bf16.mxu0 %v5309_v1  ;;  %v5312_v4 = vld [vmem:[#allocation6 + $0x70] sm:$0xff]   ;;  %s4109_s28 = sshll.u32 %s6956_s11, 4  ;;  %s7027_s9 = scalar_lea.hbm %s7079_s5, %s4370_s12  ;;  %s7029_s28 = int_to_ptr.vmem [resolvable:$true] %s4109_s28 }
  0x5b   : > { %278 = vst [vmem:[#allocation2 + $0x10] sm:$0xff] %v5612_v0  ;;  %279 = vst [vmem:[#allocation2 + $0x18] sm:$0x3] %v5612_v0  ;;  %4660 = vmatpush3.bf16.msra.mxu0 %v5309_v1  ;;  %4691 = vmatprep.subr.bf16.mxu1 %v5310_v2  ;;  %v5314_v6 = vld [vmem:[#allocation6 + $0x68] sm:$0xff]   ;;  %v5315_v7 = vld [vmem:[#allocation6 + $0x20] sm:$0xff]   ;;  %s4095_s13 = scalar_lea.sflag [#allocation5], %s5773_s16 }
  0x5c   : > { %277 = vst [vmem:[#allocation2 + $0x8] sm:$0x3] %v5612_v0  ;;  %280 = vst [vmem:[#allocation2 + $0x20] sm:$0xff] %v5612_v0  ;;  %4692 = vmatpush3.bf16.msra.mxu1 %v5310_v2  ;;  %4661 = vmatprep.subr.bf16.mxu0 %v5311_v3  ;;  %v5316_v8 = vld [vmem:[#allocation6 + $0x60] sm:$0xff]   ;;  %v5317_v9 = vld [vmem:[#allocation6 + $0x18] sm:$0xff]   ;;  %s5535_s14 = scalar_lea.vmem %s7029_s28, 2048 }
  0x5d   : > { %281 = vst [vmem:[#allocation2 + $0x28] sm:$0x3] %v5612_v0  ;;  %282 = vst [vmem:[#allocation2 + $0x30] sm:$0xff] %v5612_v0  ;;  %4693 = vmatprep.subr.bf16.mxu1 %v5312_v4  ;;  %v5318_v10 = vld [vmem:[#allocation6 + $0x58] sm:$0xff]   ;;  %v5319_v11 = vld [vmem:[#allocation6 + $0x10] sm:$0xff]   ;;  %p5536_p11 = scmp.ne.s32.totalorder %s7029_s28, %s5535_s14  ;;  %p7231_p10 = scmp.ne.s32.totalorder %s7093_s23, 0 }
  0x5e   : > { %283 = vst [vmem:[#allocation2 + $0x38] sm:$0x3] %v5612_v0  ;;  %284 = vst [vmem:[#allocation2 + $0x40] sm:$0xff] %v5612_v0  ;;  %v5830_v12 = vld [vmem:[%s5779_s30] sm:$0xff]  ;;  %v5833_v13 = vld [vmem:[%s5779_s30 + $0x8] sm:$0xff]  ;;  %s5613_s22 = smov [#allocation9]  }
  0x5f   : > { %285 = vst [vmem:[#allocation2 + $0x48] sm:$0x3] %v5612_v0  ;;  %286 = vst [vmem:[#allocation2 + $0x50] sm:$0xff] %v5612_v0  ;;  %4662 = vmatpush3.bf16.msra.mxu0 %v5311_v3  ;;  %v5836_v14 = vld [vmem:[%s5779_s30 + $0x10] sm:$0xff]  ;;  %v1179_v16 = vpack.c.bf16 %v5833_v13, %v5830_v12  ;;  %v5321_v19 = vld [vmem:[#allocation6 + $0x8] sm:$0xff]   ;;  %p5537_p1 = pnand %p5536_p11, %p7231_p10  ;;  %s5539_s17 = sshll.u32 %s5613_s22, 4  ;;  %s5540_s17 = int_to_ptr.vmem [resolvable:$false] %s5539_s17 }
  0x60   : > { %287 = vst [vmem:[#allocation2 + $0x58] sm:$0x3] %v5612_v0  ;;  %288 = vst [vmem:[#allocation2 + $0x60] sm:$0xff] %v5612_v0  ;;  %4694 = vmatpush3.bf16.msra.mxu1 %v5312_v4  ;;  %4663 = vmatprep.subr.bf16.mxu0 %v5313_v5  ;;  %v5320_v15 = vld [vmem:[#allocation6 + $0x50] sm:$0xff]   ;;  %v5322_v20 = vld [vmem:[#allocation6 + $0x48] sm:$0xff]   ;;  %v5896_v42 = vpack.c.bf16 %v5836_v14, %v5833_v13  ;;  %s5541_s29 = scalar_lea.vmem %s5540_s17, 4096  ;;  %p5542_p6 = scmp.lt.s32.totalorder %s7029_s28, %s5540_s17 }
  0x61   : > { %289 = vst [vmem:[#allocation2 + $0x68] sm:$0x3] %v5612_v0  ;;  %290 = vst [vmem:[#allocation2 + $0x70] sm:$0xff] %v5612_v0  ;;  %4695 = vmatprep.subr.bf16.mxu1 %v5314_v6  ;;  %v5845_v21 = vld [vmem:[%s5779_s30 + $0x18] sm:$0xff]  ;;  %v5848_v22 = vld [vmem:[%s5779_s30 + $0x20] sm:$0xff]  ;;  %p5538_p2 = pneg %p5537_p1  ;;  %p5543_p12 = scmp.lt.s32.totalorder %s5541_s29, %s5535_s14 }
  0x62   : > { %291 = vst [vmem:[#allocation2 + $0x78] sm:$0x3] %v5612_v0  ;;  %292 = vst [vmem:[#allocation2 + $0x80] sm:$0xff] %v5612_v0  ;;  %v5853_v23 = vld [vmem:[%s5779_s30 + $0x28] sm:$0xff]  ;;  %v5856_v24 = vld [vmem:[%s5779_s30 + $0x30] sm:$0xff]  ;;  %v1180_v25 = vpack.c.bf16 %v5845_v21, %v5836_v14  ;;  %v5907_v47 = vpack.c.bf16 %v5848_v22, %v5845_v21 }
  0x63   : > { %293 = vst [vmem:[#allocation2 + $0x88] sm:$0x3] %v5612_v0  ;;  %294 = vst [vmem:[#allocation2 + $0x90] sm:$0xff] %v5612_v0  ;;  %4664 = vmatpush3.bf16.msra.mxu0 %v5313_v5  ;;  %v557_v17 = vld [vmem:[#allocation2 + $0x1] sm:$0xff]  ;;  %v5325_v32 = vld [vmem:[#allocation6 + $0xb8] sm:$0xff]   ;;  %v5942_v59 = vpack.c.bf16 %v5856_v24, %v5853_v23  ;;  %p5544_p7 = por %p5543_p12, %p5542_p6 }
  0x64   : > { %295 = vst [vmem:[#allocation2 + $0x98] sm:$0x3] %v5612_v0  ;;  %296 = vst [vmem:[#allocation2 + $0xa0] sm:$0xff] %v5612_v0  ;;  %4696 = vmatpush3.bf16.msra.mxu1 %v5314_v6  ;;  %4665 = vmatprep.subr.bf16.mxu0 %v5315_v7  ;;  %v573_v18 = vpack.c.bf16 %v5830_v12, %v557_v17  ;;  %v5323_v27 = vld [vmem:[#allocation6] sm:$0xff]   ;;  %v5877_v35 = vld [vmem:[%s5779_s30 + $0x48] sm:$0xff] }
  0x65   : > { %297 = vst [vmem:[#allocation2 + $0xa8] sm:$0x3] %v5612_v0  ;;  %298 = vst [vmem:[#allocation2 + $0xb0] sm:$0xff] %v5612_v0  ;;  %4697 = vmatprep.subr.bf16.mxu1 %v5316_v8  ;;  %v5324_v29 = vld [vmem:[#allocation6 + $0x40] sm:$0xff]   ;;  %v5880_v36 = vld [vmem:[%s5779_s30 + $0x50] sm:$0xff]  ;;  %p5545_p9 = pnand %p5544_p7, %p5538_p2 }
  0x66   : > { %299 = vst [vmem:[#allocation2 + $0xb8] sm:$0x3] %v5612_v0  ;;  %300 = vst [vmem:[#allocation2 + $0xc0] sm:$0xff] %v5612_v0  ;;  %4707 = vmatprep.mubr.bf16.mxu1 %v573_v18  ;;  %v5873_v34 = vld [vmem:[%s5779_s30 + $0x40] sm:$0xff]  ;;  %v5326_v37 = vld [vmem:[#allocation6 + $0xf8] sm:$0xff]  }
  0x67   : > { %301 = vst [vmem:[#allocation2 + $0xc8] sm:$0x3] %v5612_v0  ;;  %302 = vst [vmem:[#allocation2 + $0xd0] sm:$0xff] %v5612_v0  ;;  %4666 = vmatpush3.bf16.msra.mxu0 %v5315_v7  ;;  %v5327_v43 = vld [vmem:[#allocation6 + $0xb0] sm:$0xff]   ;;  %v5910_v48 = vld [vmem:[%s5779_s30 + $0x58] sm:$0xff] }
  0x68   : > { %303 = vst [vmem:[#allocation2 + $0xd8] sm:$0x3] %v5612_v0  ;;  %304 = vst [vmem:[#allocation2 + $0xe0] sm:$0xff] %v5612_v0  ;;  %4698 = vmatpush3.bf16.msra.mxu1 %v5316_v8  ;;  %4667 = vmatprep.subr.bf16.mxu0 %v5317_v9  ;;  %v5328_v44 = vld [vmem:[#allocation6 + $0xf0] sm:$0xff]   ;;  %v5913_v49 = vld [vmem:[%s5779_s30 + $0x60] sm:$0xff]  ;;  %v5963_v8 = vpack.c.bf16 %v5880_v36, %v5877_v35 }
  0x69   : > { %305 = vst [vmem:[#allocation2 + $0xe8] sm:$0x3] %v5612_v0  ;;  %306 = vst [vmem:[#allocation2 + $0xf0] sm:$0xff] %v5612_v0  ;;  %4699 = vmatprep.subr.bf16.mxu1 %v5318_v10  ;;  %v5921_v51 = vld [vmem:[%s5779_s30 + $0x68] sm:$0xff]  ;;  %v5924_v52 = vld [vmem:[%s5779_s30 + $0x70] sm:$0xff]  ;;  %v5977_v18 = vpack.c.bf16 %v5913_v49, %v5910_v48 }
  0x6a   : > { %307 = vst [vmem:[#allocation2 + $0xf8] sm:$0x3] %v5612_v0  ;;  %308 = vst [vmem:[#allocation2 + $0x100] sm:$0xff] %v5612_v0  ;;  %v5329_v54 = vld [vmem:[#allocation6 + $0xa8] sm:$0xff]   ;;  %v5331_v61 = vld [vmem:[#allocation6 + $0xa0] sm:$0xff]  }
  0x6b   : > { %309 = vst [vmem:[#allocation2 + $0x108] sm:$0x3] %v5612_v0  ;;  %310 = vst [vmem:[#allocation2 + $0x110] sm:$0xff] %v5612_v0  ;;  %4668 = vmatpush3.bf16.msra.mxu0 %v5317_v9  ;;  %v5330_v56 = vld [vmem:[#allocation6 + $0xe8] sm:$0xff]   ;;  %v5332_v62 = vld [vmem:[#allocation6 + $0xe0] sm:$0xff]  }
  0x6c   : > { %311 = vst [vmem:[#allocation2 + $0x118] sm:$0x3] %v5612_v0  ;;  %312 = vst [vmem:[#allocation2 + $0x120] sm:$0xff] %v5612_v0  ;;  %4700 = vmatpush3.bf16.msra.mxu1 %v5318_v10  ;;  %4669 = vmatprep.subr.bf16.mxu0 %v5319_v11  ;;  %v565_v60 = vld [vmem:[#allocation2 + $0xa1] sm:$0xff]  ;;  %v5333_v1 = vld [vmem:[#allocation6 + $0x98] sm:$0xff]  }
  0x6d   : > { %313 = vst [vmem:[#allocation2 + $0x128] sm:$0x3] %v5612_v0  ;;  %314 = vst [vmem:[#allocation2 + $0x130] sm:$0xff] %v5612_v0  ;;  %4701 = vmatprep.subr.bf16.mxu1 %v5320_v15  ;;  %v577_v2 = vpack.c.bf16 %v5873_v34, %v565_v60  ;;  %v5334_v5 = vld [vmem:[#allocation6 + $0xd8] sm:$0xff]   ;;  %v5335_v9 = vld [vmem:[#allocation6 + $0x90] sm:$0xff]  }
  0x6e   : > { %315 = vst [vmem:[#allocation2 + $0x138] sm:$0x3] %v5612_v0  ;;  %333 = vst [vmem:[#allocation2 + $0x11] sm:$0xff] %v5830_v12  ;;  %v5336_v10 = vld [vmem:[#allocation6 + $0xd0] sm:$0xff]   ;;  %v5358_v26 = vld [vmem:[#allocation6 + $0x1f8] sm:$0xff]  }
  0x6f   : > { %334 = vst [vmem:[#allocation2 + $0x21] sm:$0xff] %v5833_v13  ;;  %335 = vst [vmem:[#allocation2 + $0x31] sm:$0xff] %v5836_v14  ;;  %4670 = vmatpush3.bf16.msra.mxu0 %v5319_v11  ;;  %v5362_v13 = vld [vmem:[#allocation6 + $0x1e8] sm:$0xff]  }
  0x70   : > { %336 = vst [vmem:[#allocation2 + $0x41] sm:$0xff] %v5845_v21  ;;  %337 = vst [vmem:[#allocation2 + $0x51] sm:$0xff] %v5848_v22  ;;  %4702 = vmatpush3.bf16.msra.mxu1 %v5320_v15  ;;  %4671 = vmatprep.subr.bf16.mxu0 %v5321_v19  ;;  %v5970_v15 = vld [vmem:[%s5779_s30 + $0x38] sm:$0xff]  ;;  %v5363_v21 = vld [vmem:[#allocation6 + $0x1a0] sm:$0xff]  }
  0x71   : > { %338 = vst [vmem:[#allocation2 + $0x61] sm:$0xff] %v5853_v23  ;;  %339 = vst [vmem:[#allocation2 + $0x71] sm:$0xff] %v5856_v24  ;;  %4703 = vmatprep.subr.bf16.mxu1 %v5322_v20  ;;  %v1182_v14 = vpack.c.bf16 %v5970_v15, %v5856_v24  ;;  %v5367_v24 = vld [vmem:[#allocation6 + $0x190] sm:$0xff]  }
  0x72   : > { %341 = vst [vmem:[#allocation2 + $0xb1] sm:$0xff] %v5873_v34  ;;  %342 = vst [vmem:[#allocation2 + $0xc1] sm:$0xff] %v5877_v35 }
  0x73   : > { %4672 = vmatpush3.bf16.msra.mxu0 %v5321_v19  ;;  %343 = vst [vmem:[#allocation2 + $0xd1] sm:$0xff] %v5880_v36  ;;  %344 = vst [vmem:[#allocation2 + $0xe1] sm:$0xff] %v5910_v48 }
  0x74   : > { %4704 = vmatpush3.bf16.msra.mxu1 %v5322_v20  ;;  %4673 = vmatprep.subr.bf16.mxu0 %v5323_v27  ;;  %345 = vst [vmem:[#allocation2 + $0xf1] sm:$0xff] %v5913_v49  ;;  %346 = vst [vmem:[#allocation2 + $0x101] sm:$0xff] %v5921_v51  ;;  %v5337_v20 = vld [vmem:[#allocation6 + $0x88] sm:$0xff]  }
  0x75   : > { %v5864_v28 = vld [vmem:[#allocation2 + $0x10] sm:$0xff]  ;;  %4705 = vmatprep.subr.bf16.mxu1 %v5324_v29  ;;  %347 = vst [vmem:[#allocation2 + $0x111] sm:$0xff] %v5924_v52  ;;  %340 = vst [vmem:[#allocation2 + $0x81] sm:$0xff] %v5970_v15 }
  0x76   : > { %v372_v30 = vpack.c.bf16 %v5864_v28, %v5612_v0  ;;  %v5868_v31 = vld [vmem:[#allocation2 + $0x20] sm:$0xff]  ;;  %v5870_v33 = vld [vmem:[#allocation2 + $0x30] sm:$0xff] }
  0x77   : > { %v5888_v39 = vpack.c.bf16 %v5870_v33, %v5868_v31  ;;  %v5890_v40 = vld [vmem:[#allocation2 + $0x40] sm:$0xff]  ;;  %v5892_v41 = vld [vmem:[#allocation2 + $0x50] sm:$0xff]  ;;  %4674 = vmatpush3.bf16.msra.mxu0 %v5323_v27  ;;  %v5338_v27 = vld [vmem:[#allocation6 + $0xc8] sm:$0xff]   ;;  %v977_v60 = vpack.c.bf16 %v5868_v31, %v5864_v28 }
  0x78   : > { %4675 = vmatprep.mubr.bf16.mxu0 %v372_v30  ;;  %4706 = vmatpush3.bf16.msra.mxu1 %v5324_v29  ;;  %v5900_v45 = vpack.c.bf16 %v5892_v41, %v5890_v40  ;;  %v5903_v46 = vld [vmem:[#allocation2 + $0x60] sm:$0xff]  ;;  %v5916_v50 = vld [vmem:[#allocation2 + $0x70] sm:$0xff]  ;;  %v978_v31 = vpack.c.bf16 %v5890_v40, %v5870_v33  ;;  %v5345_v33 = vld [vmem:[#allocation6 + $0x128] sm:$0xff]  }
  0x79   : > { %4723 = vmatprep.subr.bf16.mxu0 %v5325_v32  ;;  %4755 = vmatprep.subr.bf16.mxu1 %v5326_v37  ;;  %v5935_v57 = vpack.c.bf16 %v5916_v50, %v5903_v46  ;;  %v5938_v58 = vld [vmem:[#allocation2 + $0xb0] sm:$0xff]  ;;  %v5949_v3 = vld [vmem:[#allocation2 + $0xc0] sm:$0xff] }
  0x7a   : > { %4676 = vmatmul.mubr.bf16.vlgmr.msra.gmra.mxu0 %v5888_v39  ;;  %v376_v63 = vpack.c.bf16 %v5938_v58, %v5612_v0  ;;  %v5951_v4 = vld [vmem:[#allocation2 + $0xd0] sm:$0xff]  ;;  %v5953_v6 = vld [vmem:[#allocation2 + $0xe0] sm:$0xff] }
  0x7b   : > { %4724 = vmatpush3.bf16.msra.mxu0 %v5325_v32  ;;  %4708 = vmatmul.mubr.bf16.vlgmr.msra.gmra.mxu1 %v5896_v42  ;;  %v5957_v0 = vpack.c.bf16 %v5951_v4, %v5949_v3  ;;  %v5959_v7 = vld [vmem:[#allocation2 + $0xf0] sm:$0xff]  ;;  %v5973_v17 = vld [vmem:[#allocation2 + $0x100] sm:$0xff] }
  0x7c   : > { %4756 = vmatpush3.bf16.msra.mxu1 %v5326_v37  ;;  %4725 = vmatprep.subr.bf16.mxu0 %v5327_v43  ;;  %v5967_v11 = vpack.c.bf16 %v5959_v7, %v5953_v6  ;;  %v5981_v19 = vld [vmem:[#allocation2 + $0x110] sm:$0xff]  ;;  %v759_v29 = vld [vmem:[#allocation2 + $0x2] sm:$0xff]  ;;  %v5993_v37 = vpack.c.bf16 %v5924_v52, %v5921_v51 }
  0x7d   : > { %4757 = vmatprep.subr.bf16.mxu1 %v5328_v44  ;;  %4679 = vmatprep.mubr.bf16.mxu0 %v5900_v45  ;;  %v5986_v30 = vpack.c.bf16 %v5981_v19, %v5973_v17  ;;  %v5989_v32 = vld [vmem:[#allocation2 + $0x12] sm:$0xff]  ;;  %v6029_v40 = vld [vmem:[#allocation2 + $0x80] sm:$0xff] }
  0x7e   : > { %4711 = vmatprep.mubr.bf16.mxu1 %v5907_v47  ;;  %v6013_v28 = vld [vmem:[#allocation2 + $0x52] sm:$0xff]  ;;  %v6091_v12 = vld [vmem:[#allocation2 + $0x82] sm:$0xff] }
  0x7f   : > { %4726 = vmatpush3.bf16.msra.mxu0 %v5327_v43  ;;  %v5339_v43 = vld [vmem:[#allocation6 + $0x80] sm:$0xff]   ;;  %v6036_v55 = vld [vmem:[#allocation2 + $0xb2] sm:$0xff] }
  0x80   : > { %4758 = vmatpush3.bf16.msra.mxu1 %v5328_v44  ;;  %4727 = vmatprep.subr.bf16.mxu0 %v5329_v54  ;;  %v5340_v44 = vld [vmem:[#allocation6 + $0xc0] sm:$0xff]   ;;  %v6044_v53 = vld [vmem:[#allocation2 + $0xd2] sm:$0xff] }
  0x81   : > { %4759 = vmatprep.subr.bf16.mxu1 %v5330_v56  ;;  %v6054_v38 = vld [vmem:[#allocation2 + $0xf2] sm:$0xff] }
  0x82   : > { %4680 = vmatmul.mubr.bf16.gmra.mxu0 %v5935_v57 }
  0x83   : > { %4728 = vmatpush3.bf16.msra.mxu0 %v5329_v54  ;;  %4712 = vmatmul.mubr.bf16.gmra.mxu1 %v5942_v59  ;;  %v775_v54 = vpack.c.bf16 %v5989_v32, %v759_v29  ;;  %v6025_v29 = vld [vmem:[#allocation2 + $0x72] sm:$0xff] }
  0x84   : > { %4760 = vmatpush3.bf16.msra.mxu1 %v5330_v56  ;;  %4729 = vmatprep.subr.bf16.mxu0 %v5331_v61  ;;  %v5997_v56 = vld [vmem:[#allocation2 + $0x22] sm:$0xff] }
  0x85   : > { %4761 = vmatprep.subr.bf16.mxu1 %v5332_v62  ;;  %4683 = vmatprep.mubr.bf16.mxu0 %v376_v63  ;;  %v5342_v63 = vld [vmem:[#allocation6 + $0x178] sm:$0xff]  }
  0x86   : > { %4715 = vmatprep.mubr.bf16.mxu1 %v577_v2  ;;  %v6007_v2 = vld [vmem:[%s5779_s30 + $0x78] sm:$0xff] }
  0x87   : > { %4730 = vmatpush3.bf16.msra.mxu0 %v5331_v61  ;;  %v6002_v61 = vld [vmem:[#allocation2 + $0x32] sm:$0xff]  ;;  %348 = vst [vmem:[#allocation2 + $0x121] sm:$0xff] %v6007_v2 }
  0x88   : > { %4762 = vmatpush3.bf16.msra.mxu1 %v5332_v62  ;;  %4731 = vmatprep.subr.bf16.mxu0 %v5333_v1  ;;  %v5341_v62 = vld [vmem:[#allocation6 + $0x138] sm:$0xff]  }
  0x89   : > { %4763 = vmatprep.subr.bf16.mxu1 %v5334_v5 }
  0x8a   : > { %4684 = vmatmul.mubr.bf16.gmra.mxu0 %v5957_v0 }
  0x8b   : > { %4732 = vmatpush3.bf16.msra.mxu0 %v5333_v1  ;;  %4716 = vmatmul.mubr.bf16.gmra.mxu1 %v5963_v8  ;;  %v6004_v1 = vld [vmem:[#allocation2 + $0x42] sm:$0xff] }
  0x8c   : > { %4764 = vmatpush3.bf16.msra.mxu1 %v5334_v5  ;;  %4733 = vmatprep.subr.bf16.mxu0 %v5335_v9  ;;  %v6011_v5 = vpack.c.bf16 %v6002_v61, %v5997_v56 }
  0x8d   : > { %4765 = vmatprep.subr.bf16.mxu1 %v5336_v10  ;;  %4687 = vmatprep.mubr.bf16.mxu0 %v5967_v11 }
  0x8e   : > { %4719 = vmatprep.mubr.bf16.mxu1 %v5977_v18 }
  0x8f   : > { %4734 = vmatpush3.bf16.msra.mxu0 %v5335_v9  ;;  %v5343_v9 = vld [vmem:[#allocation6 + $0x130] sm:$0xff]  }
  0x90   : > { %4766 = vmatpush3.bf16.msra.mxu1 %v5336_v10  ;;  %4735 = vmatprep.subr.bf16.mxu0 %v5337_v20  ;;  %v5344_v10 = vld [vmem:[#allocation6 + $0x170] sm:$0xff]  }
  0x91   : > { %4767 = vmatprep.subr.bf16.mxu1 %v5338_v27 }
  0x92   : > { %4688 = vmatmul.mubr.bf16.gmra.mxu0 %v5986_v30 }
  0x93   : > { %4736 = vmatpush3.bf16.msra.mxu0 %v5337_v20  ;;  %4720 = vmatmul.mubr.bf16.gmra.mxu1 %v5993_v37  ;;  %v6020_v20 = vpack.c.bf16 %v6013_v28, %v6004_v1 }
  0x94   : > { %4768 = vmatpush3.bf16.msra.mxu1 %v5338_v27  ;;  %4737 = vmatprep.subr.bf16.mxu0 %v5339_v43  ;;  %v6022_v27 = vld [vmem:[#allocation2 + $0x62] sm:$0xff] }
  0x95   : > { %4769 = vmatprep.subr.bf16.mxu1 %v5340_v44  ;;  %4739 = vmatprep.mubr.bf16.mxu0 %v775_v54  ;;  %v767_v54 = vld [vmem:[#allocation2 + $0xa2] sm:$0xff] }
  0x96   : > { %4771 = vmatprep.mubr.bf16.mxu1 %v977_v60  ;;  %v6034_v60 = vpack.c.bf16 %v6025_v29, %v6022_v27 }
  0x97   : > { %4738 = vmatpush3.bf16.msra.mxu0 %v5339_v43  ;;  %v979_v43 = vpack.c.bf16 %v5903_v46, %v5892_v41  ;;  %v980_v41 = vpack.c.bf16 %v6029_v40, %v5916_v50  ;;  %v5347_v46 = vld [vmem:[#allocation6 + $0x120] sm:$0xff]   ;;  %v5350_v50 = vld [vmem:[#allocation6 + $0x158] sm:$0xff]  }
  0x98   : > { %4770 = vmatpush3.bf16.msra.mxu1 %v5340_v44  ;;  %4787 = vmatprep.subr.bf16.mxu0 %v5341_v62  ;;  %v5346_v44 = vld [vmem:[#allocation6 + $0x168] sm:$0xff]  }
  0x99   : > { %4819 = vmatprep.subr.bf16.mxu1 %v5342_v63 }
  0x9a   : > { %4740 = vmatmul.mubr.bf16.vlgmr.msra.gmra.mxu0 %v6011_v5 }
  0x9b   : > { %4788 = vmatpush3.bf16.msra.mxu0 %v5341_v62  ;;  %4772 = vmatmul.mubr.bf16.vlgmr.msra.gmra.mxu1 %v978_v31  ;;  %v5348_v62 = vld [vmem:[#allocation6 + $0x160] sm:$0xff]  }
  0x9c   : > { %4820 = vmatpush3.bf16.msra.mxu1 %v5342_v63  ;;  %4789 = vmatprep.subr.bf16.mxu0 %v5343_v9  ;;  %v779_v63 = vpack.c.bf16 %v6036_v55, %v767_v54  ;;  %v6041_v31 = vld [vmem:[#allocation2 + $0xc2] sm:$0xff] }
  0x9d   : > { %4821 = vmatprep.subr.bf16.mxu1 %v5344_v10  ;;  %4743 = vmatprep.mubr.bf16.mxu0 %v6020_v20  ;;  %v6052_v54 = vpack.c.bf16 %v6044_v53, %v6041_v31 }
  0x9e   : > { %4775 = vmatprep.mubr.bf16.mxu1 %v979_v43  ;;  %v981_v43 = vpack.c.bf16 %v5949_v3, %v5938_v58  ;;  %v982_v58 = vpack.c.bf16 %v5953_v6, %v5951_v4  ;;  %v5351_v3 = vld [vmem:[#allocation6 + $0x110] sm:$0xff]   ;;  %v5353_v4 = vld [vmem:[#allocation6 + $0x108] sm:$0xff]   ;;  %v6069_v6 = vld [vmem:[#allocation2 + $0x120] sm:$0xff] }
  0x9f   : > { %4790 = vmatpush3.bf16.msra.mxu0 %v5343_v9  ;;  %v5349_v9 = vld [vmem:[#allocation6 + $0x118] sm:$0xff]  }
  0xa0   : > { %4822 = vmatpush3.bf16.msra.mxu1 %v5344_v10  ;;  %4791 = vmatprep.subr.bf16.mxu0 %v5345_v33  ;;  %v6048_v10 = vld [vmem:[#allocation2 + $0xe2] sm:$0xff] }
  0xa1   : > { %4823 = vmatprep.subr.bf16.mxu1 %v5346_v44 }
  0xa2   : > { %4744 = vmatmul.mubr.bf16.gmra.mxu0 %v6034_v60 }
  0xa3   : > { %4792 = vmatpush3.bf16.msra.mxu0 %v5345_v33  ;;  %4776 = vmatmul.mubr.bf16.gmra.mxu1 %v980_v41  ;;  %v5352_v33 = vld [vmem:[#allocation6 + $0x150] sm:$0xff]   ;;  %v6063_v41 = vld [vmem:[#allocation2 + $0x102] sm:$0xff] }
  0xa4   : > { %4824 = vmatpush3.bf16.msra.mxu1 %v5346_v44  ;;  %4793 = vmatprep.subr.bf16.mxu0 %v5347_v46  ;;  %v6060_v44 = vpack.c.bf16 %v6054_v38, %v6048_v10 }
  0xa5   : > { %4825 = vmatprep.subr.bf16.mxu1 %v5348_v62  ;;  %4747 = vmatprep.mubr.bf16.mxu0 %v779_v63  ;;  %v983_v63 = vpack.c.bf16 %v5973_v17, %v5959_v7  ;;  %v984_v7 = vpack.c.bf16 %v6069_v6, %v5981_v19  ;;  %v5355_v17 = vld [vmem:[#allocation6 + $0x100] sm:$0xff]   ;;  %v5359_v19 = vld [vmem:[#allocation6 + $0x1b0] sm:$0xff]  }
  0xa6   : > { %4779 = vmatprep.mubr.bf16.mxu1 %v981_v43 }
  0xa7   : > { %4794 = vmatpush3.bf16.msra.mxu0 %v5347_v46  ;;  %v6067_v46 = vld [vmem:[#allocation2 + $0x112] sm:$0xff] }
  0xa8   : > { %4826 = vmatpush3.bf16.msra.mxu1 %v5348_v62  ;;  %4795 = vmatprep.subr.bf16.mxu0 %v5349_v9  ;;  %v5354_v62 = vld [vmem:[#allocation6 + $0x148] sm:$0xff]   ;;  %v6074_v43 = vpack.c.bf16 %v6067_v46, %v6063_v41 }
  0xa9   : > { %4827 = vmatprep.subr.bf16.mxu1 %v5350_v50 }
  0xaa   : > { %4748 = vmatmul.mubr.bf16.gmra.mxu0 %v6052_v54 }
  0xab   : > { %4796 = vmatpush3.bf16.msra.mxu0 %v5349_v9  ;;  %4780 = vmatmul.mubr.bf16.gmra.mxu1 %v982_v58  ;;  %v5356_v9 = vld [vmem:[#allocation6 + $0x140] sm:$0xff]   ;;  %v1381_v58 = vpack.c.bf16 %v5997_v56, %v5989_v32  ;;  %v5361_v32 = vld [vmem:[#allocation6 + $0x1a8] sm:$0xff]   ;;  %v1383_v56 = vpack.c.bf16 %v6022_v27, %v6013_v28  ;;  %v1386_v28 = vpack.c.bf16 %v6048_v10, %v6044_v53  ;;  %v5368_v27 = vld [vmem:[#allocation6 + $0x1d0] sm:$0xff]  }
  0xac   : > { %4828 = vmatpush3.bf16.msra.mxu1 %v5350_v50  ;;  %4797 = vmatprep.subr.bf16.mxu0 %v5351_v3  ;;  %v5357_v50 = vld [vmem:[#allocation6 + $0x1b8] sm:$0xff]   ;;  %v7102_v53 = vpack.c.bf16 %v5921_v51, %v5913_v49  ;;  %v5372_v10 = vld [vmem:[#allocation6 + $0x1c0] sm:$0xff]   ;;  %v5374_v49 = vld [vmem:[#allocation6 + $0x230] sm:$0xff]  }
  0xad   : > { %4829 = vmatprep.subr.bf16.mxu1 %v5352_v33  ;;  %4751 = vmatprep.mubr.bf16.mxu0 %v6060_v44  ;;  %v5375_v51 = vld [vmem:[#allocation6 + $0x228] sm:$0xff]  }
  0xae   : > { %4783 = vmatprep.mubr.bf16.mxu1 %v983_v63  ;;  %v6127_v63 = vld [vmem:[#allocation2] sm:$0xff] }
  0xaf   : > { %4798 = vmatpush3.bf16.msra.mxu0 %v5351_v3  ;;  %v1382_v3 = vpack.c.bf16 %v6004_v1, %v6002_v61  ;;  %v5364_v61 = vld [vmem:[#allocation6 + $0x1e0] sm:$0xff]   ;;  %v1385_v1 = vpack.c.bf16 %v6041_v31, %v6036_v55  ;;  %v7101_v55 = vpack.c.bf16 %v5910_v48, %v5880_v36  ;;  %v1387_v31 = vpack.c.bf16 %v6063_v41, %v6054_v38  ;;  %v5373_v41 = vld [vmem:[#allocation6 + $0x238] sm:$0xff]  }
  0xb0   : > { %4830 = vmatpush3.bf16.msra.mxu1 %v5352_v33  ;;  %4799 = vmatprep.subr.bf16.mxu0 %v5353_v4  ;;  %v5360_v33 = vld [vmem:[#allocation6 + $0x1f0] sm:$0xff]   ;;  %v1186_v36 = vpack.c.bf16 %v6007_v2, %v5924_v52  ;;  %v5371_v48 = vld [vmem:[#allocation6 + $0x180] sm:$0xff]   ;;  %7103 = vst [vmem:[#allocation13_spill] sm:$0xff] %v6127_v63 }
  0xb1   : > { %4831 = vmatprep.subr.bf16.mxu1 %v5354_v62  ;;  %v1777_v52 = vld [vmem:[#allocation2 + $0x91] sm:$0xff] }
  0xb2   : > { %4752 = vmatmul.mubr.bf16.gmra.mxu0 %v6074_v43 }
  0xb3   : > { %4800 = vmatpush3.bf16.msra.mxu0 %v5353_v4  ;;  %4784 = vmatmul.mubr.bf16.gmra.mxu1 %v984_v7  ;;  %v5390_v4 = vld [vmem:[#allocation8 + $0x58] sm:$0xff]  }
  0xb4   : > { %4832 = vmatpush3.bf16.msra.mxu1 %v5354_v62  ;;  %4801 = vmatprep.subr.bf16.mxu0 %v5355_v17  ;;  %v5387_v62 = vld [vmem:[#allocation8 + $0x20] sm:$0xff]  }
  0xb5   : > { %4833 = vmatprep.subr.bf16.mxu1 %v5356_v9  ;;  %4803 = vmatprep.mubr.bf16.mxu0 %v1179_v16  ;;  %v7099_v16 = vpack.c.bf16 %v5853_v23, %v5848_v22  ;;  %v5366_v22 = vld [vmem:[#allocation6 + $0x1d8] sm:$0xff]   ;;  %v7100_v23 = vpack.c.bf16 %v5877_v35, %v5873_v34  ;;  %v6112_v34 = vld [vmem:[#allocation2 + $0x122] sm:$0xff] }
  0xb6   : > { %4835 = vmatprep.mubr.bf16.mxu1 %v1381_v58  ;;  %v5370_v35 = vld [vmem:[#allocation6 + $0x1c8] sm:$0xff]   ;;  %v1388_v38 = vpack.c.bf16 %v6112_v34, %v6067_v46  ;;  %v1789_v46 = vpack.c.bf16 %v1777_v52, %v5970_v15  ;;  %v5380_v15 = vld [vmem:[#allocation6 + $0x200] sm:$0xff]  }
  0xb7   : > { %4802 = vmatpush3.bf16.msra.mxu0 %v5355_v17 }
  0xb8   : > { %4834 = vmatpush3.bf16.msra.mxu1 %v5356_v9  ;;  %4851 = vmatprep.subr.bf16.mxu0 %v5357_v50 }
  0xb9   : > { %4883 = vmatprep.subr.bf16.mxu1 %v5358_v26 }
  0xba   : > { %4804 = vmatmul.mubr.bf16.vlgmr.msra.gmra.mxu0 %v1180_v25  ;;  %v1384_v25 = vpack.c.bf16 %v6091_v12, %v6025_v29  ;;  %v5369_v29 = vld [vmem:[#allocation6 + $0x188] sm:$0xff]  }
  0xbb   : > { %4852 = vmatpush3.bf16.msra.mxu0 %v5357_v50  ;;  %4836 = vmatmul.mubr.bf16.vlgmr.msra.gmra.mxu1 %v1382_v3 }
  0xbc   : > { %4884 = vmatpush3.bf16.msra.mxu1 %v5358_v26  ;;  %4853 = vmatprep.subr.bf16.mxu0 %v5359_v19  ;;  %v5365_v26 = vld [vmem:[#allocation6 + $0x198] sm:$0xff]  }
  0xbd   : > { %4885 = vmatprep.subr.bf16.mxu1 %v5360_v33  ;;  %4807 = vmatprep.mubr.bf16.mxu0 %v7099_v16 }
  0xbe   : > { %4839 = vmatprep.mubr.bf16.mxu1 %v1383_v56 }
  0xbf   : > { %4854 = vmatpush3.bf16.msra.mxu0 %v5359_v19 }
  0xc0   : > { %4886 = vmatpush3.bf16.msra.mxu1 %v5360_v33  ;;  %4855 = vmatprep.subr.bf16.mxu0 %v5361_v32  ;;  %v5389_v33 = vld [vmem:[#allocation8 + $0x18] sm:$0xff]  }
  0xc1   : > { %4887 = vmatprep.subr.bf16.mxu1 %v5362_v13 }
  0xc2   : > { %4808 = vmatmul.mubr.bf16.gmra.mxu0 %v1182_v14 }
  0xc3   : > { %4856 = vmatpush3.bf16.msra.mxu0 %v5361_v32  ;;  %4840 = vmatmul.mubr.bf16.gmra.mxu1 %v1384_v25  ;;  %v5394_v32 = vld [vmem:[#allocation8 + $0x48] sm:$0xff]  }
  0xc4   : > { %4888 = vmatpush3.bf16.msra.mxu1 %v5362_v13  ;;  %4857 = vmatprep.subr.bf16.mxu0 %v5363_v21 }
  0xc5   : > { %4889 = vmatprep.subr.bf16.mxu1 %v5364_v61  ;;  %4811 = vmatprep.mubr.bf16.mxu0 %v7100_v23 }
  0xc6   : > { %4843 = vmatprep.mubr.bf16.mxu1 %v1385_v1 }
  0xc7   : > { %4858 = vmatpush3.bf16.msra.mxu0 %v5363_v21 }
  0xc8   : > { %4890 = vmatpush3.bf16.msra.mxu1 %v5364_v61  ;;  %4859 = vmatprep.subr.bf16.mxu0 %v5365_v26  ;;  %v5391_v61 = vld [vmem:[#allocation8 + $0x10] sm:$0xff]  }
  0xc9   : > { %4891 = vmatprep.subr.bf16.mxu1 %v5366_v22 }
  0xca   : > { %4812 = vmatmul.mubr.bf16.gmra.mxu0 %v7101_v55 }
  0xcb   : > { %4860 = vmatpush3.bf16.msra.mxu0 %v5365_v26  ;;  %4844 = vmatmul.mubr.bf16.gmra.mxu1 %v1386_v28  ;;  %v5396_v26 = vld [vmem:[#allocation8 + $0x40] sm:$0xff]  }
  0xcc   : > { %4892 = vmatpush3.bf16.msra.mxu1 %v5366_v22  ;;  %4861 = vmatprep.subr.bf16.mxu0 %v5367_v24 }
  0xcd   : > { %4893 = vmatprep.subr.bf16.mxu1 %v5368_v27  ;;  %4815 = vmatprep.mubr.bf16.mxu0 %v7102_v53 }
  0xce   : > { %4847 = vmatprep.mubr.bf16.mxu1 %v1387_v31  ;;  %v6169_v31 = vld [vmem:[#allocation8 + $0xf8] sm:$0xff]  }
  0xcf   : > { %4862 = vmatpush3.bf16.msra.mxu0 %v5367_v24  ;;  %7104 = vst [vmem:[#allocation14_spill] sm:$0xff] %v6169_v31 }
  0xd0   : > { %4894 = vmatpush3.bf16.msra.mxu1 %v5368_v27  ;;  %4863 = vmatprep.subr.bf16.mxu0 %v5369_v29 }
  0xd1   : > { %4895 = vmatprep.subr.bf16.mxu1 %v5370_v35 }
  0xd2   : > { %4816 = vmatmul.mubr.bf16.gmra.mxu0 %v1186_v36 }
  0xd3   : > { %4864 = vmatpush3.bf16.msra.mxu0 %v5369_v29  ;;  %4848 = vmatmul.mubr.bf16.gmra.mxu1 %v1388_v38  ;;  %v5393_v29 = vld [vmem:[#allocation8 + $0x8] sm:$0xff]  }
  0xd4   : > { %4896 = vmatpush3.bf16.msra.mxu1 %v5370_v35  ;;  %4865 = vmatprep.subr.bf16.mxu0 %v5371_v48 }
  0xd5   : > { %4897 = vmatprep.subr.bf16.mxu1 %v5372_v10  ;;  %4867 = vmatprep.mubr.bf16.mxu0 %v5888_v39  ;;  %v1587_v39 = vpack.c.bf16 %v6127_v63, %v6029_v40  ;;  %v5386_v40 = vld [vmem:[#allocation8 + $0x68] sm:$0xff]  }
  0xd6   : > { %4899 = vmatprep.mubr.bf16.mxu1 %v5896_v42  ;;  %v5376_v42 = vld [vmem:[#allocation6 + $0x220] sm:$0xff]  }
  0xd7   : > { %4866 = vmatpush3.bf16.msra.mxu0 %v5371_v48 }
  0xd8   : > { %4898 = vmatpush3.bf16.msra.mxu1 %v5372_v10  ;;  %4915 = vmatprep.subr.bf16.mxu0 %v5373_v41 }
  0xda   : > { %4868 = vmatmul.mubr.bf16.vlgmr.msra.gmra.mxu0 %v5900_v45  ;;  %v5377_v45 = vld [vmem:[#allocation6 + $0x218] sm:$0xff]  }
  0xdb   : > { %4916 = vmatpush3.bf16.msra.mxu0 %v5373_v41  ;;  %4900 = vmatmul.mubr.bf16.vlgmr.msra.gmra.mxu1 %v5907_v47  ;;  %v5378_v47 = vld [vmem:[#allocation6 + $0x210] sm:$0xff]   ;;  %v5395_v41 = vld [vmem:[#allocation8] sm:$0xff]  }
  0xdc   : > { %4917 = vmatprep.subr.bf16.mxu0 %v5374_v49  ;;  %4871 = vmatprep.mubr.bf16.mxu0 %v5935_v57  ;;  %v5379_v57 = vld [vmem:[#allocation6 + $0x208] sm:$0xff]  }
  0xdd   : > { %4903 = vmatprep.mubr.bf16.mxu1 %v5942_v59  ;;  %v1785_v59 = vld [vmem:[#allocation2 + $0x131] sm:$0xff] }
  0xdf   : > { %4918 = vmatpush3.bf16.msra.mxu0 %v5374_v49 }
  0xe0   : > { %4919 = vmatprep.subr.bf16.mxu0 %v5375_v51 }
  0xe2   : > { %4872 = vmatmul.mubr.bf16.gmra.mxu0 %v1587_v39 }
  0xe3   : > { %4920 = vmatpush3.bf16.msra.mxu0 %v5375_v51  ;;  %4904 = vmatmul.mubr.bf16.gmra.mxu1 %v1789_v46 }
  0xe4   : > { %4921 = vmatprep.subr.bf16.mxu0 %v5376_v42  ;;  %4875 = vmatprep.mubr.bf16.mxu0 %v5957_v0  ;;  %v1591_v0 = vpack.c.bf16 %v6127_v63, %v6069_v6  ;;  %v6152_v6 = vld [vmem:[%s7077_s3] ss:$0 sm:$0xff] }
  0xe5   : > { %4907 = vmatprep.mubr.bf16.mxu1 %v5963_v8  ;;  %v1793_v8 = vpack.c.bf16 %v1785_v59, %v6007_v2  ;;  %v5382_v2 = vld [vmem:[#allocation8 + $0x78] sm:$0xff]  }
  0xe7   : > { %4922 = vmatpush3.bf16.msra.mxu0 %v5376_v42 }
  0xe8   : > { %4923 = vmatprep.subr.bf16.mxu0 %v5377_v45 }
  0xea   : > { %4876 = vmatmul.mubr.bf16.gmra.mxu0 %v5967_v11  ;;  %v1979_v11 = vld [vmem:[#allocation2 + $0x92] sm:$0xff] }
  0xeb   : > { %4924 = vmatpush3.bf16.msra.mxu0 %v5377_v45  ;;  %4908 = vmatmul.mubr.bf16.gmra.mxu1 %v5977_v18  ;;  %v1991_v18 = vpack.c.bf16 %v1979_v11, %v6091_v12 }
  0xec   : > { %4925 = vmatprep.subr.bf16.mxu0 %v5378_v47  ;;  %4879 = vmatprep.mubr.bf16.mxu0 %v5986_v30  ;;  %v1987_v30 = vld [vmem:[#allocation2 + $0x132] sm:$0xff] }
  0xed   : > { %4911 = vmatprep.mubr.bf16.mxu1 %v5993_v37  ;;  %v1995_v37 = vpack.c.bf16 %v1987_v30, %v6112_v34 }
  0xef   : > { %4926 = vmatpush3.bf16.msra.mxu0 %v5378_v47  ;;  %v6179_v47 = vld [vmem:[#allocation8 + $0xb8] sm:$0xff]  }
  0xf0   : > { %4927 = vmatprep.subr.bf16.mxu0 %v5379_v57  ;;  %7105 = vst [vmem:[#allocation15_spill] sm:$0xff] %v6179_v47 }
  0xf2   : > { %4880 = vmatmul.mubr.bf16.gmra.mxu0 %v1591_v0 }
  0xf3   : > { %4928 = vmatpush3.bf16.msra.mxu0 %v5379_v57  ;;  %4912 = vmatmul.mubr.bf16.gmra.mxu1 %v1793_v8 }
  0xf4   : > { %4929 = vmatprep.subr.bf16.mxu0 %v5380_v15  ;;  %4931 = vmatprep.mubr.bf16.mxu0 %v6011_v5  ;;  %v5384_v5 = vld [vmem:[#allocation8 + $0x70] sm:$0xff]  }
  0xf7   : > { %4930 = vmatpush3.bf16.msra.mxu0 %v5380_v15 }
  0xf8   : > { %4979 = vmatprep.subr.bf16.mxu0 %v5382_v2 }
  0xfa   : > { %4932 = vmatmul.mubr.bf16.vlgmr.msra.gmra.mxu0 %v6020_v20  ;;  %v5381_v20 = vld [vmem:[#allocation8 + $0x38] sm:$0xff]  }
  0xfb   : > { %4935 = vmatprep.mubr.bf16.mxu0 %v6034_v60  ;;  %4980 = vmatpush3.bf16.msra.mxu0 %v5382_v2  ;;  %v5383_v60 = vld [vmem:[#allocation8 + $0x30] sm:$0xff]  }
  0xfc   : > { %4981 = vmatprep.subr.bf16.mxu0 %v5384_v5  ;;  %4947 = vmatprep.subr.bf16.mxu1 %v5381_v20 }
  0xfd   : > { %4948 = vmatpush3.bf16.msra.mxu1 %v5381_v20 }
  0xfe   : > { %4949 = vmatprep.subr.bf16.mxu1 %v5383_v60 }
  0xff   : > { %4982 = vmatpush3.bf16.msra.mxu0 %v5384_v5 }
 0x100   : > { %4983 = vmatprep.subr.bf16.mxu0 %v5386_v40 }
 0x101   : > { %4950 = vmatpush3.bf16.msra.mxu1 %v5383_v60 }
 0x102   : > { %4936 = vmatmul.mubr.bf16.gmra.mxu0 %v1991_v18 }
 0x103   : > { %4939 = vmatprep.mubr.bf16.mxu0 %v6052_v54  ;;  %4984 = vmatpush3.bf16.msra.mxu0 %v5386_v40  ;;  %v5388_v54 = vld [vmem:[#allocation8 + $0x60] sm:$0xff]  }
 0x104   : > { %4985 = vmatprep.subr.bf16.mxu0 %v5388_v54 }
 0x107   : > { %4986 = vmatpush3.bf16.msra.mxu0 %v5388_v54 }
 0x108   : > { %4987 = vmatprep.subr.bf16.mxu0 %v5390_v4 }
 0x10a   : > { %4940 = vmatmul.mubr.bf16.gmra.mxu0 %v6060_v44  ;;  %v5385_v44 = vld [vmem:[#allocation8 + $0x28] sm:$0xff]  }
 0x10b   : > { %4943 = vmatprep.mubr.bf16.mxu0 %v6074_v43  ;;  %4951 = vmatprep.subr.bf16.mxu1 %v5385_v44  ;;  %v5392_v43 = vld [vmem:[#allocation8 + $0x50] sm:$0xff]  }
 0x10c   : > { %4952 = vmatpush3.bf16.msra.mxu1 %v5385_v44  ;;  %4988 = vmatpush3.bf16.msra.mxu0 %v5390_v4 }
 0x10d   : > { %4953 = vmatprep.subr.bf16.mxu1 %v5387_v62  ;;  %4989 = vmatprep.subr.bf16.mxu0 %v5392_v43 }
 0x110   : > { %4954 = vmatpush3.bf16.msra.mxu1 %v5387_v62  ;;  %4990 = vmatpush3.bf16.msra.mxu0 %v5392_v43 }
 0x111   : > { %4955 = vmatprep.subr.bf16.mxu1 %v5389_v33  ;;  %4991 = vmatprep.subr.bf16.mxu0 %v5394_v32 }
 0x112   : > { %4944 = vmatmul.mubr.bf16.gmra.mxu0 %v1995_v37 }
 0x114   : > { %4956 = vmatpush3.bf16.msra.mxu1 %v5389_v33  ;;  %4992 = vmatpush3.bf16.msra.mxu0 %v5394_v32 }
 0x115   : > { %4957 = vmatprep.subr.bf16.mxu1 %v5391_v61  ;;  %4993 = vmatprep.subr.bf16.mxu0 %v5396_v26 }
 0x118   : > { %4958 = vmatpush3.bf16.msra.mxu1 %v5391_v61  ;;  %4994 = vmatpush3.bf16.msra.mxu0 %v5396_v26 }
 0x119   : > { %4959 = vmatprep.subr.bf16.mxu1 %v5393_v29  ;;  %5043 = vmatprep.subr.bf16.mxu0 %v6169_v31 }
 0x11c   : > { %4960 = vmatpush3.bf16.msra.mxu1 %v5393_v29 }
 0x11d   : > { %4961 = vmatprep.subr.bf16.mxu1 %v5395_v41 }
 0x120   : > { %4962 = vmatpush3.bf16.msra.mxu1 %v5395_v41 }
 0x121   : > { %5011 = vmatprep.subr.bf16.mxu1 %v6179_v47 }
 0x13a   : > { %v4677_v7 = vpop.f32.mrf.mxu0 }
 0x13b   : > { %v543_v17 = vadd.f32 %v4677_v7, %v6152_v6  ;;  %v4709_v9 = vpop.f32.mrf.mxu1 }
 0x13c   : > { %v478_v50 = vpop.f32.mrf.mxu0 }
 0x13d   : > { %v541_v58 = vadd.f32 %v6152_v6, %v478_v50  ;;  %v6156_v19 = vadd.f32 %v4709_v9, %v543_v17  ;;  %v680_v3 = vpop.f32.mrf.mxu1 }
 0x13e   : > { %v4678_v56 = vpop.f32.mrf.mxu0 }
 0x13f   : > { %v544_v12 = vadd.f32 %v4678_v56, %v6152_v6  ;;  %v6159_v13 = vadd.f32 %v680_v3, %v541_v58  ;;  %v4710_v16 = vpop.f32.mrf.mxu1 }
 0x140   : > { %v6161_v14 = vpop.f32.mrf.mxu0 }
 0x141   : > { %v6163_v21 = vadd.f32 %v4710_v16, %v544_v12  ;;  %v6165_v25 = vpop.f32.mrf.mxu1 }
 0x142   : > { %v4681_v1 = vpop.f32.mrf.mxu0 }
 0x143   : > { %v547_v22 = vadd.f32 %v4681_v1, %v6152_v6  ;;  %v4713_v23 = vpop.f32.mrf.mxu1 }
 0x144   : > { %v494_v24 = vpop.f32.mrf.mxu0 }
 0x145   : > { %v545_v28 = vadd.f32 %v6152_v6, %v494_v24  ;;  %v749_v27 = vadd.f32 %v4713_v23, %v547_v22  ;;  %v696_v55 = vpop.f32.mrf.mxu1 }
 0x146   : > { %v4682_v34 = vpop.f32.mrf.mxu0 }
 0x147   : > { %v548_v35 = vadd.f32 %v4682_v34, %v6152_v6  ;;  %v747_v53 = vadd.f32 %v696_v55, %v545_v28  ;;  %v4714_v36 = vpop.f32.mrf.mxu1 }
 0x148   : > { %v6173_v48 = vpop.f32.mrf.mxu0 }
 0x149   : > { %v750_v38 = vadd.f32 %v4714_v36, %v548_v35  ;;  %v6175_v10 = vpop.f32.mrf.mxu1 }
 0x14a   : > { %v4685_v49 = vpop.f32.mrf.mxu0 }
 0x14b   : > { %v551_v51 = vadd.f32 %v4685_v49, %v6152_v6  ;;  %v4717_v52 = vpop.f32.mrf.mxu1 }
 0x14c   : > { %v510_v39 = vpop.f32.mrf.mxu0 }
 0x14d   : > { %v549_v42 = vadd.f32 %v6152_v6, %v510_v39  ;;  %v753_v46 = vadd.f32 %v4717_v52, %v551_v51  ;;  %v712_v45 = vpop.f32.mrf.mxu1 }
 0x14e   : > { %v4686_v57 = vpop.f32.mrf.mxu0 }
 0x14f   : > { %v552_v59 = vadd.f32 %v4686_v57, %v6152_v6  ;;  %v751_v0 = vadd.f32 %v712_v45, %v549_v42  ;;  %v4718_v8 = vpop.f32.mrf.mxu1 }
 0x150   : > { %v6183_v15 = vpop.f32.mrf.mxu0 }
 0x151   : > { %v754_v11 = vadd.f32 %v4718_v8, %v552_v59  ;;  %v6185_v18 = vpop.f32.mrf.mxu1 }
 0x152   : > { %v4689_v30 = vpop.f32.mrf.mxu0 }
 0x153   : > { %v555_v37 = vadd.f32 %v4689_v30, %v6152_v6  ;;  %v4721_v2 = vpop.f32.mrf.mxu1 }
 0x154   : > { %v526_v5 = vpop.f32.mrf.mxu0 }
 0x155   : > { %v553_v20 = vadd.f32 %v6152_v6, %v526_v5  ;;  %v757_v40 = vadd.f32 %v4721_v2, %v555_v37  ;;  %v728_v60 = vpop.f32.mrf.mxu1 }
 0x156   : > { %v4690_v54 = vpop.f32.mrf.mxu0 }
 0x157   : > { %v556_v44 = vadd.f32 %v4690_v54, %v6152_v6  ;;  %v755_v4 = vadd.f32 %v728_v60, %v553_v20  ;;  %v4722_v62 = vpop.f32.mrf.mxu1 }
 0x158   : > { %v6190_v43 = vpop.f32.mrf.mxu0 }
 0x159   : > { %v758_v7 = vadd.f32 %v4722_v62, %v556_v44  ;;  %v6192_v17 = vpop.f32.mrf.mxu1 }
 0x15a   : > { %v4741_v9 = vpop.f32.mrf.mxu0 }
 0x15b   : > { %v6195_v50 = vadd.f32 %v4741_v9, %v6156_v19  ;;  %v6197_v58 = vpop.f32.mrf.mxu1 }
 0x15c   : > { %v882_v3 = vpop.f32.mrf.mxu0 }
 0x15d   : > { %v6200_v33 = vadd.f32 %v882_v3, %v6159_v13  ;;  %v6202_v32 = vpop.f32.mrf.mxu1 }
 0x15e   : > { %v4742_v56 = vpop.f32.mrf.mxu0 }
 0x15f   : > { %v6205_v12 = vadd.f32 %v4742_v56, %v6163_v21  ;;  %v6207_v16 = vpop.f32.mrf.mxu1 }
 0x160   : > { %v6209_v61 = vpop.f32.mrf.mxu0 }
 0x161   : > { %v6211_v26 = vpop.f32.mrf.mxu1 }
 0x162   : > { %v4745_v19 = vpop.f32.mrf.mxu0 }
 0x163   : > { %v6213_v1 = vadd.f32 %v4745_v19, %v749_v27  ;;  %v6215_v22 = vpop.f32.mrf.mxu1 }
 0x164   : > { %v898_v23 = vpop.f32.mrf.mxu0 }
 0x165   : > { %v6217_v13 = vadd.f32 %v898_v23, %v747_v53  ;;  %v6219_v24 = vpop.f32.mrf.mxu1 }
 0x166   : > { %v4746_v28 = vpop.f32.mrf.mxu0 }
 0x167   : > { %v6221_v55 = vadd.f32 %v4746_v28, %v750_v38  ;;  %v6223_v21 = vpop.f32.mrf.mxu1 }
 0x168   : > { %v6225_v29 = vpop.f32.mrf.mxu0 }
 0x169   : > { %v6227_v34 = vpop.f32.mrf.mxu1 }
 0x16a   : > { %v4749_v35 = vpop.f32.mrf.mxu0 }
 0x16b   : > { %v6229_v36 = vadd.f32 %v4749_v35, %v753_v46  ;;  %v6231_v27 = vpop.f32.mrf.mxu1 }
 0x16c   : > { %v914_v41 = vpop.f32.mrf.mxu0 }
 0x16d   : > { %v6233_v49 = vadd.f32 %v914_v41, %v751_v0  ;;  %v6235_v53 = vpop.f32.mrf.mxu1 }
 0x16e   : > { %v4750_v51 = vpop.f32.mrf.mxu0 }
 0x16f   : > { %v6237_v52 = vadd.f32 %v4750_v51, %v754_v11  ;;  %v6239_v38 = vpop.f32.mrf.mxu1 }
 0x170   : > { %v6241_v39 = vpop.f32.mrf.mxu0 }
 0x171   : > { %v6243_v42 = vpop.f32.mrf.mxu1 }
 0x172   : > { %7106 = vst [vmem:[#allocation16_spill] sm:$0xff] %v6243_v42  ;;  %v4753_v45 = vpop.f32.mrf.mxu0 }
 0x173   : > { %v6245_v57 = vadd.f32 %v4753_v45, %v757_v40  ;;  %v6247_v46 = vpop.f32.mrf.mxu1 }
 0x174   : > { %7108 = vst [vmem:[#allocation18_spill] sm:$0xff] %v6247_v46  ;;  %v930_v59 = vpop.f32.mrf.mxu0 }
 0x175   : > { %7107 = vst [vmem:[#allocation17_spill] sm:$0xff] %v6245_v57  ;;  %v6249_v8 = vadd.f32 %v930_v59, %v755_v4  ;;  %v6251_v0 = vpop.f32.mrf.mxu1 }
 0x176   : > { %7110 = vst [vmem:[#allocation20_spill] sm:$0xff] %v6251_v0  ;;  %v4754_v30 = vpop.f32.mrf.mxu0 }
 0x177   : > { %7109 = vst [vmem:[#allocation19_spill] sm:$0xff] %v6249_v8  ;;  %v6253_v37 = vadd.f32 %v4754_v30, %v758_v7  ;;  %v6255_v11 = vpop.f32.mrf.mxu1 }
 0x178   : > { %7112 = vst [vmem:[#allocation22_spill] sm:$0xff] %v6255_v11  ;;  %v6257_v2 = vpop.f32.mrf.mxu0 }
 0x179   : > { %7111 = vst [vmem:[#allocation21_spill] sm:$0xff] %v6253_v37  ;;  %7113 = vst [vmem:[#allocation23_spill] sm:$0xff] %v6257_v2  ;;  %v6259_v5 = vpop.f32.mrf.mxu1 }
 0x17a   : > { %7114 = vst [vmem:[#allocation24_spill] sm:$0xff] %v6259_v5  ;;  %v4805_v20 = vpop.f32.mrf.mxu0 }
 0x17b   : > { %v4837_v60 = vpop.f32.mrf.mxu1 }
 0x17c   : > { %v1286_v40 = vpop.f32.mrf.mxu0 }
 0x17d   : > { %v6261_v54 = vpop.f32.mrf.mxu1 }
 0x17e   : > { %v4806_v44 = vpop.f32.mrf.mxu0 }
 0x17f   : > { %v6263_v62 = vpop.f32.mrf.mxu1 }
 0x180   : > { %v6265_v4 = vpop.f32.mrf.mxu0 }
 0x181   : > { %v6267_v9 = vpop.f32.mrf.mxu1 }
 0x182   : > { %v6269_v7 = vpop.f32.mrf.mxu0 }
 0x183   : > { %v6271_v3 = vpop.f32.mrf.mxu1 }
 0x184   : > { %v6273_v56 = vpop.f32.mrf.mxu0 }
 0x185   : > { %v6275_v19 = vpop.f32.mrf.mxu1 }
 0x186   : > { %v6277_v23 = vpop.f32.mrf.mxu0 }
 0x187   : > { %v6279_v28 = vpop.f32.mrf.mxu1 }
 0x188   : > { %7115 = vst [vmem:[#allocation25_spill] sm:$0xff] %v6279_v28  ;;  %v6281_v35 = vpop.f32.mrf.mxu0 }
 0x189   : > { %v6283_v41 = vpop.f32.mrf.mxu1 }
 0x18a   : > { %7116 = vst [vmem:[#allocation26_spill] sm:$0xff] %v6283_v41  ;;  %v6285_v51 = vpop.f32.mrf.mxu0 }
 0x18b   : > { %7117 = vst [vmem:[#allocation27_spill] sm:$0xff] %v6285_v51  ;;  %v6287_v45 = vpop.f32.mrf.mxu1 }
 0x18c   : > { %7118 = vst [vmem:[#allocation28_spill] sm:$0xff] %v6287_v45  ;;  %v6289_v59 = vpop.f32.mrf.mxu0 }
 0x18d   : > { %7119 = vst [vmem:[#allocation29_spill] sm:$0xff] %v6289_v59  ;;  %v6291_v30 = vpop.f32.mrf.mxu1 }
 0x18e   : > { %7120 = vst [vmem:[#allocation30_spill] sm:$0xff] %v6291_v30  ;;  %v6293_v47 = vpop.f32.mrf.mxu0 }
 0x18f   : > { %7121 = vst [vmem:[#allocation31_spill] sm:$0xff] %v6293_v47  ;;  %v6295_v5 = vpop.f32.mrf.mxu1 }
 0x190   : > { %7122 = vst [vmem:[#allocation32_spill] sm:$0xff] %v6295_v5  ;;  %v6297_v63 = vpop.f32.mrf.mxu0 }
 0x191   : > { %7123 = vst [vmem:[#allocation33_spill] sm:$0xff] %v6297_v63  ;;  %v6299_v31 = vpop.f32.mrf.mxu1 }
 0x192   : > { %7124 = vst [vmem:[#allocation34_spill] sm:$0xff] %v6299_v31  ;;  %v6301_v11 = vpop.f32.mrf.mxu0 }
 0x193   : > { %7125 = vst [vmem:[#allocation35_spill] sm:$0xff] %v6301_v11  ;;  %v6303_v37 = vpop.f32.mrf.mxu1 }
 0x194   : > { %7126 = vst [vmem:[#allocation36_spill] sm:$0xff] %v6303_v37  ;;  %v6305_v2 = vpop.f32.mrf.mxu0 }
 0x195   : > { %7127 = vst [vmem:[#allocation37_spill] sm:$0xff] %v6305_v2  ;;  %v6307_v0 = vpop.f32.mrf.mxu1 }
 0x196   : > { %7128 = vst [vmem:[#allocation38_spill] sm:$0xff] %v6307_v0  ;;  %v6309_v45 = vpop.f32.mrf.mxu0 }
 0x197   : > { %7129 = vst [vmem:[#allocation39_spill] sm:$0xff] %v6309_v45  ;;  %v6311_v8 = vpop.f32.mrf.mxu1 }
 0x198   : > { %7130 = vst [vmem:[#allocation40_spill] sm:$0xff] %v6311_v8  ;;  %v6313_v30 = vpop.f32.mrf.mxu0 }
 0x199   : > { %7131 = vst [vmem:[#allocation41_spill] sm:$0xff] %v6313_v30  ;;  %v6315_v47 = vpop.f32.mrf.mxu1 }
 0x19a   : > { %7132 = vst [vmem:[#allocation42_spill] sm:$0xff] %v6315_v47  ;;  %v4869_v5 = vpop.f32.mrf.mxu0  ;;  %v542_v47 = vadd.f32 %v6152_v6, %v6161_v14  ;;  %v546_v14 = vadd.f32 %v6152_v6, %v6173_v48 }
 0x19b   : > { %v4901_v63 = vpop.f32.mrf.mxu1 }
 0x19c   : > { %v1691_v59 = vpop.f32.mrf.mxu0  ;;  %v744_v28 = vadd.f32 %v6165_v25, %v542_v47  ;;  %v1150_v25 = vadd.f32 %v6207_v16, %v6205_v12 }
 0x19d   : > { %v1893_v31 = vpop.f32.mrf.mxu1 }
 0x19e   : > { %v4870_v41 = vpop.f32.mrf.mxu0 }
 0x19f   : > { %v6317_v46 = vpop.f32.mrf.mxu1 }
 0x1a0   : > { %v1694_v11 = vpop.f32.mrf.mxu0 }
 0x1a1   : > { %v6321_v2 = vpop.f32.mrf.mxu1 }
 0x1a2   : > { %v6319_v37 = vpop.f32.mrf.mxu0  ;;  %7133 = vst [vmem:[#allocation43_spill] sm:$0xff] %v6321_v2  ;;  %v1149_v2 = vadd.f32 %v6197_v58, %v6195_v50 }
 0x1a3   : > { %v6327_v8 = vpop.f32.mrf.mxu1 }
 0x1a4   : > { %v6323_v0 = vpop.f32.mrf.mxu0  ;;  %7136 = vst [vmem:[#allocation46_spill] sm:$0xff] %v6327_v8  ;;  %v1147_v8 = vadd.f32 %v6202_v32, %v6200_v33  ;;  %v1352_v33 = vadd.f32 %v4806_v44, %v1150_v25  ;;  %v748_v32 = vadd.f32 %v6175_v10, %v546_v14  ;;  %v1151_v10 = vadd.f32 %v6219_v24, %v6217_v13  ;;  %v7144_v14 = vld [vmem:[#allocation16_spill] sm:$0xff] }
 0x1a5   : > { %7134 = vst [vmem:[#allocation44_spill] sm:$0xff] %v6323_v0  ;;  %v6335_v42 = vpop.f32.mrf.mxu1 }
 0x1a6   : > { %v6325_v45 = vpop.f32.mrf.mxu0  ;;  %7139 = vst [vmem:[#allocation49_spill] sm:$0xff] %v6335_v42  ;;  %v1349_v47 = vadd.f32 %v1286_v40, %v1147_v8  ;;  %v1554_v40 = vadd.f32 %v6263_v62, %v1352_v33  ;;  %v7146_v33 = vld [vmem:[#allocation17_spill] sm:$0xff] }
 0x1a7   : > { %7135 = vst [vmem:[#allocation45_spill] sm:$0xff] %v6325_v45  ;;  %v1351_v45 = vadd.f32 %v4805_v20, %v1149_v2  ;;  %v1153_v20 = vadd.f32 %v6215_v22, %v6213_v1 }
 0x1a8   : > { %v6329_v30 = vpop.f32.mrf.mxu0  ;;  %v1551_v12 = vadd.f32 %v6261_v54, %v1349_v47 }
 0x1a9   : > { %7137 = vst [vmem:[#allocation47_spill] sm:$0xff] %v6329_v30  ;;  %v946_v30 = vadd.f32 %v6209_v61, %v744_v28  ;;  %v550_v61 = vadd.f32 %v6152_v6, %v6183_v15  ;;  %v950_v15 = vadd.f32 %v6225_v29, %v748_v32  ;;  %v1355_v44 = vadd.f32 %v6269_v7, %v1153_v20  ;;  %v7145_v47 = vld [vmem:[#allocation43_spill] sm:$0xff]  ;;  %v7147_v32 = vld [vmem:[#allocation18_spill] sm:$0xff]  ;;  %v7149_v20 = vld [vmem:[#allocation29_spill] sm:$0xff] }
 0x1aa   : > { %v6333_v57 = vpop.f32.mrf.mxu0  ;;  %v1754_v1 = vadd.f32 %v1691_v59, %v1551_v12  ;;  %v1757_v29 = vadd.f32 %v4870_v41, %v1554_v40 }
 0x1ab   : > { %7138 = vst [vmem:[#allocation48_spill] sm:$0xff] %v6333_v57  ;;  %v6349_v57 = vpop.f32.mrf.mxu1  ;;  %v1148_v58 = vadd.f32 %v6211_v26, %v946_v30  ;;  %v554_v26 = vadd.f32 %v6152_v6, %v6190_v43  ;;  %v752_v22 = vadd.f32 %v6185_v18, %v550_v61  ;;  %v1152_v62 = vadd.f32 %v6227_v34, %v950_v15  ;;  %v2414_v30 = vld [vmem:[#allocation2 + $0x1] sm:$0xff] }
 0x1ac   : > { %v6337_v51 = vpop.f32.mrf.mxu0  ;;  %v1956_v7 = vadd.f32 %v1893_v31, %v1754_v1  ;;  %v7151_v15 = vld [vmem:[#allocation46_spill] sm:$0xff] }
 0x1ad   : > { %v6361_v48 = vpop.f32.mrf.mxu1  ;;  %v1350_v16 = vadd.f32 %v6265_v4, %v1148_v58  ;;  %v6388_v54 = vadd.f32 %v6192_v17, %v554_v26  ;;  %v954_v18 = vadd.f32 %v6241_v39, %v752_v22  ;;  %v1354_v34 = vadd.f32 %v6281_v35, %v1152_v62  ;;  %v7155_v62 = vld [vmem:[#allocation31_spill] sm:$0xff] }
 0x1ae   : > { %v6342_v0 = vpop.f32.mrf.mxu0 }
 0x1af   : > { %7140 = vst [vmem:[#allocation50_spill] sm:$0xff] %v6342_v0  ;;  %v1553_v0 = vadd.f32 %v4837_v60, %v1351_v45  ;;  %v6382_v6 = vpop.f32.mrf.mxu1  ;;  %v1552_v13 = vadd.f32 %v6267_v9, %v1350_v16  ;;  %v1157_v9 = vadd.f32 %v6231_v27, %v6229_v36  ;;  %v1158_v36 = vadd.f32 %v6239_v38, %v6237_v52  ;;  %v7141_v27 = vld [vmem:[#allocation25_spill] sm:$0xff]  ;;  %v7148_v38 = vld [vmem:[#allocation26_spill] sm:$0xff] }
 0x1b0   : > { %v6351_v42 = vpop.f32.mrf.mxu0  ;;  %v1156_v25 = vadd.f32 %v7144_v14, %v954_v18  ;;  %v1161_v52 = vadd.f32 %v7147_v32, %v7146_v33  ;;  %v1556_v61 = vadd.f32 %v7148_v38, %v1354_v34  ;;  %v7150_v16 = vld [vmem:[#allocation45_spill] sm:$0xff]  ;;  %v7162_v14 = vld [vmem:[#allocation32_spill] sm:$0xff] }
 0x1b1   : > { %v1756_v8 = vadd.f32 %v4869_v5, %v1553_v0  ;;  %v1154_v0 = vadd.f32 %v6223_v21, %v6221_v55  ;;  %v1353_v5 = vadd.f32 %v6273_v56, %v1151_v10  ;;  %v1557_v21 = vadd.f32 %v6271_v3, %v1355_v44  ;;  %v6400_v41 = vpop.f32.mrf.mxu1 }
 0x1b2   : > { %v6355_v50 = vpop.f32.mrf.mxu0  ;;  %v1755_v56 = vadd.f32 %v1694_v11, %v1552_v13  ;;  %v1360_v18 = vadd.f32 %v7155_v62, %v1158_v36 }
 0x1b3   : > { %v1958_v24 = vadd.f32 %v4901_v63, %v1756_v8  ;;  %v1356_v4 = vadd.f32 %v6277_v23, %v1154_v0  ;;  %v1155_v63 = vadd.f32 %v6235_v53, %v6233_v49  ;;  %v1555_v17 = vadd.f32 %v6275_v19, %v1353_v5  ;;  %v7142_v49 = vld [vmem:[#allocation27_spill] sm:$0xff]  ;;  %v7143_v19 = vld [vmem:[#allocation44_spill] sm:$0xff]  ;;  %v6421_v26 = vpop.f32.mrf.mxu1 }
 0x1b4   : > { %v6363_v2 = vpop.f32.mrf.mxu0  ;;  %v1959_v23 = vadd.f32 %v6317_v46, %v1757_v29  ;;  %v1760_v3 = vadd.f32 %v6319_v37, %v1557_v21  ;;  %v1359_v53 = vadd.f32 %v7142_v49, %v1157_v9  ;;  %v1957_v46 = vadd.f32 %v7145_v47, %v1755_v56  ;;  %v7152_v0 = vld [vmem:[#allocation19_spill] sm:$0xff]  ;;  %v7153_v5 = vld [vmem:[#allocation20_spill] sm:$0xff] }
 0x1b5   : > { %v1558_v45 = vadd.f32 %v7141_v27, %v1356_v4  ;;  %v1758_v59 = vadd.f32 %v7143_v19, %v1555_v17  ;;  %v1357_v12 = vadd.f32 %v7149_v20, %v1155_v63  ;;  %v1159_v13 = vadd.f32 %v7153_v5, %v7152_v0  ;;  %v7156_v4 = vld [vmem:[#allocation49_spill] sm:$0xff]  ;;  %v7158_v17 = vld [vmem:[#allocation30_spill] sm:$0xff]  ;;  %v6443_v27 = vpop.f32.mrf.mxu1  ;;  %v7163_v47 = vld [vmem:[#allocation35_spill] sm:$0xff] }
 0x1b6   : > { %v6374_v60 = vpop.f32.mrf.mxu0  ;;  %v1962_v40 = vadd.f32 %v7151_v15, %v1760_v3 }
 0x1b7   : > { %v1761_v8 = vadd.f32 %v7150_v16, %v1558_v45  ;;  %v1559_v34 = vadd.f32 %v7158_v17, %v1357_v12  ;;  %v7165_v16 = vld [vmem:[#allocation21_spill] sm:$0xff] }
 0x1b8   : > { %v6384_v43 = vpop.f32.mrf.mxu0 }
 0x1b9   : > { %v1963_v3 = vadd.f32 %v6349_v57, %v1761_v8  ;;  %v7166_v8 = vld [vmem:[#allocation22_spill] sm:$0xff] }
 0x1ba   : > { %v4933_v55 = vpop.f32.mrf.mxu0 }
 0x1bb   : > { %v2160_v28 = vadd.f32 %v4933_v55, %v1958_v24  ;;  %v7154_v24 = vld [vmem:[#allocation28_spill] sm:$0xff]  ;;  %v1960_v55 = vadd.f32 %v7156_v4, %v1758_v59  ;;  %v5400_v59 = vld [vmem:[#allocation8 + $0xf0] sm:$0xff]  }
 0x1bc   : > { %v2095_v39 = vpop.f32.mrf.mxu0  ;;  %v1561_v29 = vadd.f32 %v7154_v24, %v1359_v53  ;;  %v7170_v24 = vld [vmem:[#allocation13_spill] sm:$0xff] }
 0x1bd   : > { %v6404_v31 = vmax.f32 %v2160_v28, 0.0  ;;  %v2158_v11 = vadd.f32 %v2095_v39, %v1956_v7  ;;  %v7157_v7 = vld [vmem:[#allocation47_spill] sm:$0xff]  ;;  %v7159_v39 = vld [vmem:[#allocation33_spill] sm:$0xff] }
 0x1be   : > { %v4934_v35 = vpop.f32.mrf.mxu0  ;;  %v1759_v56 = vadd.f32 %v7157_v7, %v1556_v61  ;;  %v1762_v61 = vadd.f32 %v6337_v51, %v1559_v34  ;;  %v7169_v51 = vld [vmem:[#allocation14_spill] sm:$0xff]  ;;  %v7173_v7 = vld [vmem:[#allocation39_spill] sm:$0xff] }
 0x1bf   : > { %2192 = vst [vmem:[#allocation2 + $0x31] sm:$0xff] %v6404_v31  ;;  %v6414_v37 = vmax.f32 %v2158_v11, 0.0  ;;  %v2161_v58 = vadd.f32 %v4934_v35, %v1959_v23  ;;  %v1358_v23 = vadd.f32 %v7159_v39, %v1156_v25  ;;  %v7160_v11 = vld [vmem:[#allocation48_spill] sm:$0xff]  ;;  %v1562_v25 = vadd.f32 %v7162_v14, %v1360_v18 }
 0x1c0   : > { %v2098_v10 = vpop.f32.mrf.mxu0  ;;  %v1764_v36 = vadd.f32 %v7160_v11, %v1561_v29  ;;  %v1961_v38 = vadd.f32 %v6361_v48, %v1759_v56  ;;  %v7171_v18 = vld [vmem:[#allocation24_spill] sm:$0xff]  ;;  %v1964_v39 = vadd.f32 %v6400_v41, %v1762_v61 }
 0x1c1   : > { %2190 = vst [vmem:[#allocation2 + $0x11] sm:$0xff] %v6414_v37  ;;  %v6425_v44 = vmax.f32 %v2161_v58, 0.0  ;;  %v2159_v1 = vadd.f32 %v2098_v10, %v1957_v46  ;;  %v2430_v22 = vpack.c.bf16 %v6414_v37, %v2414_v30  ;;  %v7161_v30 = vld [vmem:[#allocation23_spill] sm:$0xff]  ;;  %v1363_v46 = vadd.f32 %v7163_v47, %v1161_v52  ;;  %v7164_v58 = vld [vmem:[#allocation37_spill] sm:$0xff]  ;;  %v7167_v10 = vld [vmem:[#allocation34_spill] sm:$0xff] }
 0x1c2   : > { %v4937_v21 = vpop.f32.mrf.mxu0  ;;  %v958_v57 = vadd.f32 %v7161_v30, %v6388_v54  ;;  %v1361_v33 = vadd.f32 %v7164_v58, %v1159_v13  ;;  %v1162_v54 = vadd.f32 %v7166_v8, %v7165_v16  ;;  %v1560_v15 = vadd.f32 %v7167_v10, %v1358_v23  ;;  %v5404_v58 = vld [vmem:[#allocation8 + $0xe0] sm:$0xff]  }
 0x1c3   : > { %2193 = vst [vmem:[#allocation2 + $0x41] sm:$0xff] %v6425_v44  ;;  %v6435_v28 = vmax.f32 %v2159_v1, 0.0  ;;  %v2164_v9 = vadd.f32 %v4937_v21, %v1962_v40  ;;  %4995 = vmatprep.mubr.bf16.mxu0 %v2430_v22  ;;  %v3037_v63 = vpack.c.bf16 %v6425_v44, %v6404_v31  ;;  %v1966_v52 = vadd.f32 %v6382_v6, %v1764_v36  ;;  %v7168_v40 = vld [vmem:[#allocation50_spill] sm:$0xff]  ;;  %v4913_v22 = vpop.f32.mrf.mxu1  ;;  %v7175_v36 = vld [vmem:[#allocation41_spill] sm:$0xff] }
 0x1c4   : > { %v2111_v45 = vpop.f32.mrf.mxu0  ;;  %v1765_v1 = vadd.f32 %v7168_v40, %v1562_v25  ;;  %v5402_v6 = vld [vmem:[#allocation8 + $0xe8] sm:$0xff]   ;;  %v1160_v4 = vadd.f32 %v7171_v18, %v958_v57  ;;  %v1364_v56 = vadd.f32 %v7173_v7, %v1162_v54  ;;  %v1763_v23 = vadd.f32 %v6351_v42, %v1560_v15 }
 0x1c5   : > { %2191 = vst [vmem:[#allocation2 + $0x21] sm:$0xff] %v6435_v28  ;;  %v6446_v49 = vmax.f32 %v2164_v9, 0.0  ;;  %v2162_v53 = vadd.f32 %v2111_v45, %v1960_v55  ;;  %v2431_v19 = vpack.c.bf16 %v6404_v31, %v6435_v28  ;;  %v3036_v35 = vpack.c.bf16 %v6435_v28, %v6414_v37  ;;  %v7172_v55 = vld [vmem:[#allocation36_spill] sm:$0xff]  ;;  %v7174_v9 = vld [vmem:[#allocation38_spill] sm:$0xff]  ;;  %v1941_v30 = vpop.f32.mrf.mxu1 }
 0x1c6   : > { %v4938_v32 = vpop.f32.mrf.mxu0  ;;  %v1565_v21 = vadd.f32 %v7172_v55, %v1363_v46  ;;  %v1563_v17 = vadd.f32 %v7174_v9, %v1361_v33  ;;  %v1362_v45 = vadd.f32 %v7175_v36, %v1160_v4  ;;  %v6488_v25 = vld [vmem:[#allocation2 + $0x30] sm:$0xff]  ;;  %v7176_v33 = vld [vmem:[#allocation40_spill] sm:$0xff] }
 0x1c7   : > { %2196 = vst [vmem:[#allocation2 + $0x71] sm:$0xff] %v6446_v49  ;;  %v6460_v20 = vmax.f32 %v2162_v53, 0.0  ;;  %v2165_v12 = vadd.f32 %v4938_v32, %v1963_v3  ;;  %4996 = vmatmul.mubr.bf16.vlgmr.msra.gmra.mxu0 %v2431_v19  ;;  %v1967_v53 = vadd.f32 %v6421_v26, %v1765_v1  ;;  %v4914_v40 = vpop.f32.mrf.mxu1  ;;  %v5438_v31 = vld [vmem:[#allocation8 + $0x1d8] sm:$0xff]  }
 0x1c8   : > { %v2114_v0 = vpop.f32.mrf.mxu0  ;;  %v6467_v48 = vld [vmem:[#allocation2 + $0x10] sm:$0xff]  ;;  %5044 = vmatpush3.bf16.msra.mxu0 %v7169_v51  ;;  %v1768_v19 = vadd.f32 %v6355_v50, %v1565_v21  ;;  %v1766_v16 = vadd.f32 %v6363_v2, %v1563_v17 }
 0x1c9   : > { %2194 = vst [vmem:[#allocation2 + $0x51] sm:$0xff] %v6460_v20  ;;  %v2181_v5 = vmax.f32 %v2165_v12, 0.0  ;;  %v2163_v13 = vadd.f32 %v2114_v0, %v1961_v38  ;;  %v2229_v29 = vpack.c.bf16 %v6467_v48, %v7170_v24  ;;  %v2432_v62 = vpack.c.bf16 %v6460_v20, %v6425_v44  ;;  %5045 = vmatprep.subr.bf16.mxu0 %v5400_v59  ;;  %v5399_v50 = vld [vmem:[#allocation8 + $0xb0] sm:$0xff]   ;;  %v2422_v38 = vld [vmem:[#allocation2 + $0xa1] sm:$0xff]  ;;  %v1944_v7 = vpop.f32.mrf.mxu1 }
 0x1ca   : > { %v4941_v34 = vpop.f32.mrf.mxu0  ;;  %v1965_v12 = vadd.f32 %v6443_v27, %v1763_v23  ;;  %v1970_v15 = vadd.f32 %v4913_v22, %v1768_v19  ;;  %v7178_v0 = vld [vmem:[#allocation15_spill] sm:$0xff]  ;;  %v6514_v27 = vld [vmem:[#allocation2 + $0x40] sm:$0xff]  ;;  %v1968_v18 = vadd.f32 %v1941_v30, %v1766_v16 }
 0x1cb   : > { %2197 = vst [vmem:[#allocation2 + $0x81] sm:$0xff] %v2181_v5  ;;  %v6481_v3 = vmax.f32 %v2163_v13, 0.0  ;;  %v2168_v11 = vadd.f32 %v4941_v34, %v1966_v52  ;;  %4963 = vmatprep.mubr.bf16.mxu1 %v2229_v29  ;;  %4999 = vmatprep.mubr.bf16.mxu0 %v2432_v62  ;;  %v6491_v42 = vpack.c.bf16 %v2181_v5, %v6446_v49  ;;  %v5406_v29 = vld [vmem:[#allocation8 + $0xd8] sm:$0xff]   ;;  %v5435_v44 = vld [vmem:[#allocation8 + $0x1a0] sm:$0xff]  }
 0x1cc   : > { %v2127_v57 = vpop.f32.mrf.mxu0  ;;  %v6486_v14 = vld [vmem:[#allocation2 + $0x20] sm:$0xff]  ;;  %5046 = vmatpush3.bf16.msra.mxu0 %v5400_v59  ;;  %v1566_v59 = vadd.f32 %v7176_v33, %v1364_v56 }
 0x1cd   : > { %2195 = vst [vmem:[#allocation2 + $0x61] sm:$0xff] %v6481_v3  ;;  %v6494_v41 = vmax.f32 %v2168_v11, 0.0  ;;  %v2166_v47 = vadd.f32 %v2127_v57, %v1964_v39  ;;  %v6498_v26 = vpack.c.bf16 %v6488_v25, %v6486_v14  ;;  %v2433_v46 = vpack.c.bf16 %v6446_v49, %v6481_v3  ;;  %5047 = vmatprep.subr.bf16.mxu0 %v5402_v6  ;;  %v7177_v49 = vld [vmem:[#allocation42_spill] sm:$0xff]  ;;  %v5403_v11 = vld [vmem:[#allocation8 + $0xa0] sm:$0xff]  }
 0x1ce   : > { %v4942_v32 = vpop.f32.mrf.mxu0  ;;  %v3038_v61 = vpack.c.bf16 %v6481_v3, %v6460_v20  ;;  %v1564_v10 = vadd.f32 %v7177_v49, %v1362_v45  ;;  %v1769_v52 = vadd.f32 %v6374_v60, %v1566_v59  ;;  %v5401_v60 = vld [vmem:[#allocation8 + $0xa8] sm:$0xff]   ;;  %v6533_v17 = vld [vmem:[#allocation2 + $0x70] sm:$0xff] }
 0x1cf   : > { %2200 = vst [vmem:[#allocation2 + $0xd1] sm:$0xff] %v6494_v41  ;;  %v6508_v8 = vmax.f32 %v2166_v47, 0.0  ;;  %v2169_v54 = vadd.f32 %v4942_v32, %v1967_v53  ;;  %4964 = vmatmul.mubr.bf16.vlgmr.msra.gmra.mxu1 %v6498_v26  ;;  %5000 = vmatmul.mubr.bf16.gmra.mxu0 %v2433_v46  ;;  %v5408_v45 = vld [vmem:[#allocation8 + $0xd0] sm:$0xff]   ;;  %v5405_v32 = vld [vmem:[#allocation8 + $0x98] sm:$0xff]  }
 0x1d0   : > { %v2130_v1 = vpop.f32.mrf.mxu0  ;;  %5012 = vmatpush3.bf16.msra.mxu1 %v7178_v0  ;;  %v6516_v2 = vld [vmem:[#allocation2 + $0x50] sm:$0xff]  ;;  %5048 = vmatpush3.bf16.msra.mxu0 %v5402_v6  ;;  %v1767_v4 = vadd.f32 %v6384_v43, %v1564_v10  ;;  %v1971_v21 = vadd.f32 %v4914_v40, %v1769_v52  ;;  %v5412_v40 = vld [vmem:[#allocation8 + $0xc0] sm:$0xff]   ;;  %v2834_v0 = vpack.c.bf16 %v6486_v14, %v6467_v48 }
 0x1d1   : > { %2198 = vst [vmem:[#allocation2 + $0xb1] sm:$0xff] %v6508_v8  ;;  %v6519_v51 = vmax.f32 %v2169_v54, 0.0  ;;  %v2167_v5 = vadd.f32 %v2130_v1, %v1965_v12  ;;  %v6523_v13 = vpack.c.bf16 %v6516_v2, %v6514_v27  ;;  %5013 = vmatprep.subr.bf16.mxu1 %v5399_v50  ;;  %v2434_v22 = vpack.c.bf16 %v6508_v8, %v2422_v38  ;;  %v5410_v12 = vld [vmem:[#allocation8 + $0xc8] sm:$0xff]  }
 0x1d2   : > { %5049 = vmatprep.subr.bf16.mxu0 %v5404_v58  ;;  %v4945_v62 = vpop.f32.mrf.mxu0  ;;  %v1969_v30 = vadd.f32 %v1944_v7, %v1767_v4  ;;  %v6597_v4 = vld [vmem:[#allocation2 + $0x12] sm:$0xff]  ;;  %v2835_v7 = vpack.c.bf16 %v6514_v27, %v6488_v25 }
 0x1d3   : > { %2201 = vst [vmem:[#allocation2 + $0xe1] sm:$0xff] %v6519_v51  ;;  %v6528_v6 = vmax.f32 %v2167_v5, 0.0  ;;  %v2172_v55 = vadd.f32 %v4945_v62, %v1970_v15  ;;  %4967 = vmatprep.mubr.bf16.mxu1 %v6523_v13  ;;  %5003 = vmatprep.mubr.bf16.mxu0 %v2434_v22  ;;  %v3041_v43 = vpack.c.bf16 %v6519_v51, %v6494_v41  ;;  %v5407_v15 = vld [vmem:[#allocation8 + $0x90] sm:$0xff]   ;;  %v5414_v62 = vld [vmem:[#allocation8 + $0x178] sm:$0xff]  }
 0x1d4   : > { %v2143_v56 = vpop.f32.mrf.mxu0  ;;  %5014 = vmatpush3.bf16.msra.mxu1 %v5399_v50  ;;  %v6531_v9 = vld [vmem:[#allocation2 + $0x60] sm:$0xff]  ;;  %5050 = vmatpush3.bf16.msra.mxu0 %v5404_v58  ;;  %v6617_v25 = vld [vmem:[#allocation2 + $0x52] sm:$0xff] }
 0x1d5   : > { %2199 = vst [vmem:[#allocation2 + $0xc1] sm:$0xff] %v6528_v6  ;;  %v6538_v34 = vmax.f32 %v2172_v55, 0.0  ;;  %v2170_v39 = vadd.f32 %v2143_v56, %v1968_v18  ;;  %v6542_v23 = vpack.c.bf16 %v6533_v17, %v6531_v9  ;;  %5015 = vmatprep.subr.bf16.mxu1 %v5401_v60  ;;  %v2435_v36 = vpack.c.bf16 %v6494_v41, %v6528_v6  ;;  %v2616_v18 = vld [vmem:[#allocation2 + $0x2] sm:$0xff]  ;;  %v6619_v27 = vld [vmem:[#allocation2 + $0x32] sm:$0xff] }
 0x1d6   : > { %5051 = vmatprep.subr.bf16.mxu0 %v5406_v29  ;;  %v4946_v53 = vpop.f32.mrf.mxu0  ;;  %v3040_v19 = vpack.c.bf16 %v6528_v6, %v6508_v8  ;;  %v6571_v49 = vld [vmem:[#allocation2 + $0xd0] sm:$0xff]  ;;  %v2632_v56 = vpack.c.bf16 %v6597_v4, %v2616_v18  ;;  %v3628_v41 = vld [vmem:[#allocation2 + $0x41] sm:$0xff] }
 0x1d7   : > { %2204 = vst [vmem:[#allocation2 + $0x111] sm:$0xff] %v6538_v34  ;;  %v6549_v57 = vmax.f32 %v2170_v39, 0.0  ;;  %v2173_v47 = vadd.f32 %v4946_v53, %v1971_v21  ;;  %4968 = vmatmul.mubr.bf16.gmra.mxu1 %v6542_v23  ;;  %5004 = vmatmul.mubr.bf16.gmra.mxu0 %v2435_v36  ;;  %v5411_v21 = vld [vmem:[#allocation8 + $0x80] sm:$0xff]   ;;  %v2836_v39 = vpack.c.bf16 %v6531_v9, %v6516_v2  ;;  %v5413_v36 = vld [vmem:[#allocation8 + $0x138] sm:$0xff]  }
 0x1d8   : > { %v2146_v50 = vpop.f32.mrf.mxu0  ;;  %5016 = vmatpush3.bf16.msra.mxu1 %v5401_v60  ;;  %v6552_v46 = vld [vmem:[#allocation2 + $0xb0] sm:$0xff]  ;;  %5052 = vmatpush3.bf16.msra.mxu0 %v5406_v29  ;;  %v5409_v29 = vld [vmem:[#allocation8 + $0x88] sm:$0xff]   ;;  %v6615_v53 = vld [vmem:[#allocation2 + $0x80] sm:$0xff] }
 0x1d9   : > { %2202 = vst [vmem:[#allocation2 + $0xf1] sm:$0xff] %v6549_v57  ;;  %v6555_v58 = vmax.f32 %v2173_v47, 0.0  ;;  %v2171_v33 = vadd.f32 %v2146_v50, %v1969_v30  ;;  %v2233_v59 = vpack.c.bf16 %v6552_v46, %v7170_v24  ;;  %5017 = vmatprep.subr.bf16.mxu1 %v5403_v11  ;;  %v6561_v38 = vpack.c.bf16 %v6549_v57, %v6519_v51  ;;  %v6625_v9 = vld [vmem:[#allocation2 + $0x42] sm:$0xff]  ;;  %v5415_v30 = vld [vmem:[#allocation8 + $0x130] sm:$0xff]  }
 0x1da   : > { %5053 = vmatprep.subr.bf16.mxu0 %v5408_v45  ;;  %v6588_v5 = vld [vmem:[#allocation2 + $0xe0] sm:$0xff]  ;;  %v2837_v47 = vpack.c.bf16 %v6615_v53, %v6533_v17  ;;  %v5418_v50 = vld [vmem:[#allocation8 + $0x168] sm:$0xff]  }
 0x1db   : > { %2205 = vst [vmem:[#allocation2 + $0x121] sm:$0xff] %v6555_v58  ;;  %v6564_v16 = vmax.f32 %v2171_v33, 0.0  ;;  %4971 = vmatprep.mubr.bf16.mxu1 %v2233_v59  ;;  %5007 = vmatprep.mubr.bf16.mxu0 %v6561_v38  ;;  %v3043_v54 = vpack.c.bf16 %v6555_v58, %v6538_v34  ;;  %v6631_v33 = vpack.c.bf16 %v6617_v25, %v6625_v9  ;;  %v5420_v59 = vld [vmem:[#allocation8 + $0x160] sm:$0xff]  }
 0x1dc   : > { %5018 = vmatpush3.bf16.msra.mxu1 %v5403_v11  ;;  %v6569_v24 = vld [vmem:[#allocation2 + $0xc0] sm:$0xff]  ;;  %5054 = vmatpush3.bf16.msra.mxu0 %v5408_v45  ;;  %v5416_v11 = vld [vmem:[#allocation8 + $0x170] sm:$0xff]  }
 0x1dd   : > { %2203 = vst [vmem:[#allocation2 + $0x101] sm:$0xff] %v6564_v16  ;;  %v6576_v10 = vpack.c.bf16 %v6571_v49, %v6569_v24  ;;  %5019 = vmatprep.subr.bf16.mxu1 %v5405_v32  ;;  %v6580_v52 = vpack.c.bf16 %v6538_v34, %v6564_v16  ;;  %5055 = vmatprep.subr.bf16.mxu0 %v5410_v12  ;;  %v6613_v45 = vld [vmem:[#allocation2 + $0x22] sm:$0xff] }
 0x1de   : > { %v3042_v1 = vpack.c.bf16 %v6564_v16, %v6549_v57  ;;  %v6601_v14 = vld [vmem:[#allocation2 + $0x110] sm:$0xff]  ;;  %v6623_v2 = vpack.c.bf16 %v6619_v27, %v6613_v45  ;;  %v6637_v17 = vld [vmem:[#allocation2 + $0x62] sm:$0xff]  ;;  %v3643_v57 = vpack.c.bf16 %v6460_v20, %v3628_v41  ;;  %v5445_v16 = vld [vmem:[#allocation8 + $0x238] sm:$0xff]  }
 0x1df   : > { %4972 = vmatmul.mubr.bf16.gmra.mxu1 %v6576_v10  ;;  %5008 = vmatmul.mubr.bf16.gmra.mxu0 %v6580_v52  ;;  %v5443_v51 = vld [vmem:[#allocation8 + $0x180] sm:$0xff]  }
 0x1e0   : > { %5020 = vmatpush3.bf16.msra.mxu1 %v5405_v32  ;;  %v6590_v60 = vld [vmem:[#allocation2 + $0xf0] sm:$0xff]  ;;  %5056 = vmatpush3.bf16.msra.mxu0 %v5410_v12  ;;  %v2838_v32 = vpack.c.bf16 %v6569_v24, %v6552_v46  ;;  %v5417_v12 = vld [vmem:[#allocation8 + $0x128] sm:$0xff]   ;;  %v5419_v46 = vld [vmem:[#allocation8 + $0x120] sm:$0xff]   ;;  %v2839_v24 = vpack.c.bf16 %v6588_v5, %v6571_v49 }
 0x1e1   : > { %v6594_v22 = vpack.c.bf16 %v6590_v60, %v6588_v5  ;;  %5021 = vmatprep.subr.bf16.mxu1 %v5407_v15  ;;  %5059 = vmatprep.mubr.bf16.mxu0 %v2834_v0  ;;  %v6641_v0 = vld [vmem:[#allocation2 + $0x72] sm:$0xff] }
 0x1e2   : > { %5057 = vmatprep.subr.bf16.mxu0 %v5412_v40  ;;  %v6655_v49 = vld [vmem:[#allocation2 + $0x120] sm:$0xff]  ;;  %v6657_v5 = vld [vmem:[#allocation2 + $0xf2] sm:$0xff] }
 0x1e3   : > { %4975 = vmatprep.mubr.bf16.mxu1 %v6594_v22 }
 0x1e4   : > { %5022 = vmatpush3.bf16.msra.mxu1 %v5407_v15  ;;  %v6599_v48 = vld [vmem:[#allocation2 + $0x100] sm:$0xff]  ;;  %5058 = vmatpush3.bf16.msra.mxu0 %v5412_v40  ;;  %v6639_v40 = vld [vmem:[#allocation2 + $0xb2] sm:$0xff] }
 0x1e5   : > { %v6605_v55 = vpack.c.bf16 %v6601_v14, %v6599_v48  ;;  %5023 = vmatprep.subr.bf16.mxu1 %v5409_v29  ;;  %5107 = vmatprep.subr.bf16.mxu0 %v5414_v62  ;;  %v2624_v15 = vld [vmem:[#allocation2 + $0xa2] sm:$0xff] }
 0x1e6   : > { %v2636_v18 = vpack.c.bf16 %v6639_v40, %v2624_v15  ;;  %v5430_v15 = vld [vmem:[#allocation8 + $0x1f8] sm:$0xff]  }
 0x1e7   : > { %4976 = vmatmul.mubr.bf16.gmra.mxu1 %v6605_v55  ;;  %5060 = vmatmul.mubr.bf16.vlgmr.msra.gmra.mxu0 %v2835_v7  ;;  %v2840_v7 = vpack.c.bf16 %v6599_v48, %v6590_v60  ;;  %v6665_v60 = vld [vmem:[#allocation2 + $0xe2] sm:$0xff]  ;;  %v5423_v48 = vld [vmem:[#allocation8 + $0x110] sm:$0xff]  }
 0x1e8   : > { %5024 = vmatpush3.bf16.msra.mxu1 %v5409_v29  ;;  %5027 = vmatprep.mubr.bf16.mxu1 %v2632_v56  ;;  %v6645_v29 = vpack.c.bf16 %v6641_v0, %v6637_v17  ;;  %v5421_v56 = vld [vmem:[#allocation8 + $0x118] sm:$0xff]  }
 0x1e9   : > { %5025 = vmatprep.subr.bf16.mxu1 %v5411_v21  ;;  %5063 = vmatprep.mubr.bf16.mxu0 %v2836_v39  ;;  %v6653_v39 = vld [vmem:[#allocation2 + $0xc2] sm:$0xff] }
 0x1ea   : > { %5108 = vmatpush3.bf16.msra.mxu0 %v5414_v62  ;;  %v5422_v62 = vld [vmem:[#allocation8 + $0x158] sm:$0xff]  }
 0x1eb   : > { %5109 = vmatprep.subr.bf16.mxu0 %v5416_v11 }
 0x1ec   : > { %5026 = vmatpush3.bf16.msra.mxu1 %v5411_v21  ;;  %v5424_v21 = vld [vmem:[#allocation8 + $0x150] sm:$0xff]  }
 0x1ed   : > { %5075 = vmatprep.subr.bf16.mxu1 %v5413_v36 }
 0x1ee   : > { %5110 = vmatpush3.bf16.msra.mxu0 %v5416_v11  ;;  %v6659_v11 = vld [vmem:[#allocation2 + $0xd2] sm:$0xff] }
 0x1ef   : > { %5028 = vmatmul.mubr.bf16.vlgmr.msra.gmra.mxu1 %v6623_v2  ;;  %5064 = vmatmul.mubr.bf16.gmra.mxu0 %v2837_v47  ;;  %v5426_v47 = vld [vmem:[#allocation8 + $0x148] sm:$0xff]  }
 0x1f0   : > { %5031 = vmatprep.mubr.bf16.mxu1 %v6631_v33  ;;  %5076 = vmatpush3.bf16.msra.mxu1 %v5413_v36  ;;  %v6663_v36 = vpack.c.bf16 %v6659_v11, %v6653_v39 }
 0x1f1   : > { %5077 = vmatprep.subr.bf16.mxu1 %v5415_v30  ;;  %5111 = vmatprep.subr.bf16.mxu0 %v5418_v50 }
 0x1f2   : > { %5067 = vmatprep.mubr.bf16.mxu0 %v2838_v32  ;;  %5112 = vmatpush3.bf16.msra.mxu0 %v5418_v50  ;;  %v6671_v50 = vpack.c.bf16 %v6657_v5, %v6665_v60  ;;  %v3238_v32 = vpack.c.bf16 %v6613_v45, %v6597_v4  ;;  %v3239_v4 = vpack.c.bf16 %v6625_v9, %v6619_v27  ;;  %v5432_v45 = vld [vmem:[#allocation8 + $0x1f0] sm:$0xff]   ;;  %v5433_v9 = vld [vmem:[#allocation8 + $0x1a8] sm:$0xff]  }
 0x1f3   : > { %5113 = vmatprep.subr.bf16.mxu0 %v5420_v59  ;;  %v5431_v27 = vld [vmem:[#allocation8 + $0x1b0] sm:$0xff]  }
 0x1f4   : > { %5078 = vmatpush3.bf16.msra.mxu1 %v5415_v30  ;;  %v2841_v30 = vpack.c.bf16 %v6655_v49, %v6601_v14  ;;  %v2630_v14 = vld [vmem:[#allocation2 + $0x102] sm:$0xff] }
 0x1f5   : > { %5079 = vmatprep.subr.bf16.mxu1 %v5417_v12 }
 0x1f6   : > { %5114 = vmatpush3.bf16.msra.mxu0 %v5420_v59  ;;  %v5428_v59 = vld [vmem:[#allocation8 + $0x140] sm:$0xff]  }
 0x1f7   : > { %5032 = vmatmul.mubr.bf16.gmra.mxu1 %v6645_v29  ;;  %5068 = vmatmul.mubr.bf16.gmra.mxu0 %v2839_v24 }
 0x1f8   : > { %5035 = vmatprep.mubr.bf16.mxu1 %v2636_v18  ;;  %5080 = vmatpush3.bf16.msra.mxu1 %v5417_v12  ;;  %v5425_v12 = vld [vmem:[#allocation8 + $0x108] sm:$0xff]   ;;  %v3240_v18 = vpack.c.bf16 %v6637_v17, %v6617_v25  ;;  %v3242_v25 = vpack.c.bf16 %v6653_v39, %v6639_v40  ;;  %v3244_v17 = vpack.c.bf16 %v2630_v14, %v6657_v5  ;;  %v5437_v40 = vld [vmem:[#allocation8 + $0x198] sm:$0xff]   ;;  %v5439_v39 = vld [vmem:[#allocation8 + $0x190] sm:$0xff]  }
 0x1f9   : > { %5081 = vmatprep.subr.bf16.mxu1 %v5419_v46  ;;  %5115 = vmatprep.subr.bf16.mxu0 %v5422_v62 }
 0x1fa   : > { %5071 = vmatprep.mubr.bf16.mxu0 %v2840_v7  ;;  %5116 = vmatpush3.bf16.msra.mxu0 %v5422_v62  ;;  %v5427_v62 = vld [vmem:[#allocation8 + $0x100] sm:$0xff]   ;;  %v5434_v7 = vld [vmem:[#allocation8 + $0x1e8] sm:$0xff]  }
 0x1fb   : > { %5117 = vmatprep.subr.bf16.mxu0 %v5424_v21 }
 0x1fc   : > { %5082 = vmatpush3.bf16.msra.mxu1 %v5419_v46  ;;  %v6677_v46 = vld [vmem:[#allocation2 + $0x112] sm:$0xff] }
 0x1fd   : > { %5083 = vmatprep.subr.bf16.mxu1 %v5421_v56  ;;  %v6680_v24 = vpack.c.bf16 %v6677_v46, %v2630_v14 }
 0x1fe   : > { %5118 = vmatpush3.bf16.msra.mxu0 %v5424_v21  ;;  %v5429_v21 = vld [vmem:[#allocation8 + $0x1b8] sm:$0xff]  }
 0x1ff   : > { %5036 = vmatmul.mubr.bf16.gmra.mxu1 %v6663_v36  ;;  %5072 = vmatmul.mubr.bf16.gmra.mxu0 %v2841_v30  ;;  %v5446_v30 = vld [vmem:[#allocation8 + $0x230] sm:$0xff]  }
 0x200   : > { %5039 = vmatprep.mubr.bf16.mxu1 %v6671_v50  ;;  %5084 = vmatpush3.bf16.msra.mxu1 %v5421_v56  ;;  %v6690_v56 = vld [vmem:[#allocation2 + $0x82] sm:$0xff] }
 0x201   : > { %5085 = vmatprep.subr.bf16.mxu1 %v5423_v48  ;;  %5119 = vmatprep.subr.bf16.mxu0 %v5426_v47  ;;  %v3241_v37 = vpack.c.bf16 %v6690_v56, %v6641_v0  ;;  %v5442_v0 = vld [vmem:[#allocation8 + $0x1c8] sm:$0xff]  }
 0x202   : > { %5120 = vmatpush3.bf16.msra.mxu0 %v5426_v47  ;;  %5123 = vmatprep.mubr.bf16.mxu0 %v3238_v32  ;;  %v3635_v47 = vld [vmem:[#allocation2 + $0xd1] sm:$0xff]  ;;  %v5452_v32 = vld [vmem:[#allocation8 + $0x200] sm:$0xff]  }
 0x203   : > { %5121 = vmatprep.subr.bf16.mxu0 %v5428_v59  ;;  %v3646_v20 = vpack.c.bf16 %v3635_v47, %v6528_v6  ;;  %v3641_v6 = vld [vmem:[#allocation2 + $0x131] sm:$0xff] }
 0x204   : > { %5086 = vmatpush3.bf16.msra.mxu1 %v5423_v48  ;;  %v3633_v48 = vld [vmem:[#allocation2 + $0x91] sm:$0xff] }
 0x205   : > { %5087 = vmatprep.subr.bf16.mxu1 %v5425_v12 }
 0x206   : > { %5122 = vmatpush3.bf16.msra.mxu0 %v5428_v59  ;;  %v5448_v59 = vld [vmem:[#allocation8 + $0x220] sm:$0xff]  }
 0x207   : > { %5040 = vmatmul.mubr.bf16.gmra.mxu1 %v6680_v24  ;;  %5171 = vmatprep.subr.bf16.mxu0 %v5430_v15 }
 0x208   : > { %5088 = vmatpush3.bf16.msra.mxu1 %v5425_v12  ;;  %5091 = vmatprep.mubr.bf16.mxu1 %v3036_v35  ;;  %v5436_v35 = vld [vmem:[#allocation8 + $0x1e0] sm:$0xff]  }
 0x209   : > { %5089 = vmatprep.subr.bf16.mxu1 %v5427_v62  ;;  %5124 = vmatmul.mubr.bf16.vlgmr.msra.gmra.mxu0 %v3239_v4 }
 0x20a   : > { %5127 = vmatprep.mubr.bf16.mxu0 %v3240_v18  ;;  %5172 = vmatpush3.bf16.msra.mxu0 %v5430_v15 }
 0x20b   : > { %5173 = vmatprep.subr.bf16.mxu0 %v5432_v45 }
 0x20c   : > { %5090 = vmatpush3.bf16.msra.mxu1 %v5427_v62 }
 0x20d   : > { %5139 = vmatprep.subr.bf16.mxu1 %v5429_v21 }
 0x20e   : > { %5174 = vmatpush3.bf16.msra.mxu0 %v5432_v45 }
 0x20f   : > { %5092 = vmatmul.mubr.bf16.vlgmr.msra.gmra.mxu1 %v3037_v63  ;;  %5175 = vmatprep.subr.bf16.mxu0 %v5434_v7  ;;  %v3243_v63 = vpack.c.bf16 %v6665_v60, %v6659_v11  ;;  %v3627_v11 = vld [vmem:[#allocation2 + $0x31] sm:$0xff]  ;;  %v5441_v60 = vld [vmem:[#allocation8 + $0x188] sm:$0xff]  }
 0x210   : > { %5095 = vmatprep.mubr.bf16.mxu1 %v3038_v61  ;;  %5140 = vmatpush3.bf16.msra.mxu1 %v5429_v21  ;;  %v5440_v61 = vld [vmem:[#allocation8 + $0x1d0] sm:$0xff]   ;;  %v3642_v5 = vpack.c.bf16 %v3627_v11, %v6435_v28 }
 0x211   : > { %5141 = vmatprep.subr.bf16.mxu1 %v5431_v27  ;;  %5128 = vmatmul.mubr.bf16.gmra.mxu0 %v3241_v37 }
 0x212   : > { %5131 = vmatprep.mubr.bf16.mxu0 %v3242_v25  ;;  %5176 = vmatpush3.bf16.msra.mxu0 %v5434_v7 }
 0x213   : > { %5177 = vmatprep.subr.bf16.mxu0 %v5436_v35 }
 0x214   : > { %5142 = vmatpush3.bf16.msra.mxu1 %v5431_v27 }
 0x215   : > { %5143 = vmatprep.subr.bf16.mxu1 %v5433_v9 }
 0x216   : > { %5178 = vmatpush3.bf16.msra.mxu0 %v5436_v35 }
 0x217   : > { %5096 = vmatmul.mubr.bf16.gmra.mxu1 %v6491_v42  ;;  %5179 = vmatprep.subr.bf16.mxu0 %v5438_v31  ;;  %v6709_v42 = vld [vmem:[#allocation2 + $0x122] sm:$0xff] }
 0x218   : > { %5099 = vmatprep.mubr.bf16.mxu1 %v3040_v19  ;;  %5144 = vmatpush3.bf16.msra.mxu1 %v5433_v9  ;;  %v3245_v8 = vpack.c.bf16 %v6709_v42, %v6677_v46  ;;  %v5444_v19 = vld [vmem:[#allocation8 + $0x1c0] sm:$0xff]  }
 0x219   : > { %5145 = vmatprep.subr.bf16.mxu1 %v5435_v44  ;;  %5132 = vmatmul.mubr.bf16.gmra.mxu0 %v3243_v63 }
 0x21a   : > { %5135 = vmatprep.mubr.bf16.mxu0 %v3244_v17  ;;  %5180 = vmatpush3.bf16.msra.mxu0 %v5438_v31 }
 0x21b   : > { %5181 = vmatprep.subr.bf16.mxu0 %v5440_v61 }
 0x21c   : > { %5146 = vmatpush3.bf16.msra.mxu1 %v5435_v44 }
 0x21d   : > { %5147 = vmatprep.subr.bf16.mxu1 %v5437_v40 }
 0x21e   : > { %5182 = vmatpush3.bf16.msra.mxu0 %v5440_v61 }
 0x21f   : > { %5100 = vmatmul.mubr.bf16.gmra.mxu1 %v3041_v43  ;;  %5183 = vmatprep.subr.bf16.mxu0 %v5442_v0  ;;  %v3631_v43 = vld [vmem:[#allocation2 + $0x71] sm:$0xff] }
 0x220   : > { %5103 = vmatprep.mubr.bf16.mxu1 %v3042_v1  ;;  %5148 = vmatpush3.bf16.msra.mxu1 %v5437_v40  ;;  %v3644_v28 = vpack.c.bf16 %v3631_v43, %v6481_v3  ;;  %v3632_v1 = vld [vmem:[#allocation2 + $0x81] sm:$0xff] }
 0x221   : > { %5149 = vmatprep.subr.bf16.mxu1 %v5439_v39  ;;  %5136 = vmatmul.mubr.bf16.gmra.mxu0 %v3245_v8  ;;  %v3645_v34 = vpack.c.bf16 %v3633_v48, %v3632_v1  ;;  %v5447_v3 = vld [vmem:[#allocation8 + $0x228] sm:$0xff]  }
 0x222   : > { %5184 = vmatpush3.bf16.msra.mxu0 %v5442_v0  ;;  %5187 = vmatprep.mubr.bf16.mxu0 %v3642_v5 }
 0x223   : > { %5185 = vmatprep.subr.bf16.mxu0 %v5444_v19 }
 0x224   : > { %5150 = vmatpush3.bf16.msra.mxu1 %v5439_v39 }
 0x225   : > { %5151 = vmatprep.subr.bf16.mxu1 %v5441_v60 }
 0x226   : > { %5186 = vmatpush3.bf16.msra.mxu0 %v5444_v19 }
 0x227   : > { %5104 = vmatmul.mubr.bf16.gmra.mxu1 %v3043_v54 }
 0x228   : > { %5152 = vmatpush3.bf16.msra.mxu1 %v5441_v60  ;;  %5155 = vmatprep.mubr.bf16.mxu1 %v6498_v26  ;;  %v5454_v26 = vld [vmem:[#allocation2] sm:$0xff] }
 0x229   : > { %5153 = vmatprep.subr.bf16.mxu1 %v5443_v51  ;;  %5188 = vmatmul.mubr.bf16.vlgmr.msra.gmra.mxu0 %v3643_v57  ;;  %v3443_v54 = vpack.c.bf16 %v5454_v26, %v6615_v53  ;;  %v3649_v53 = vpack.c.bf16 %v3641_v6, %v6555_v58  ;;  %v3835_v58 = vld [vmem:[#allocation2 + $0x92] sm:$0xff] }
 0x22a   : > { %5191 = vmatprep.mubr.bf16.mxu0 %v3644_v28 }
 0x22c   : > { %5154 = vmatpush3.bf16.msra.mxu1 %v5443_v51 }
 0x22d   : > { %5203 = vmatprep.subr.bf16.mxu1 %v5445_v16 }
 0x22f   : > { %5156 = vmatmul.mubr.bf16.vlgmr.msra.gmra.mxu1 %v6523_v13  ;;  %v5449_v13 = vld [vmem:[#allocation8 + $0x218] sm:$0xff]  }
 0x230   : > { %5159 = vmatprep.mubr.bf16.mxu1 %v6542_v23  ;;  %5204 = vmatpush3.bf16.msra.mxu1 %v5445_v16  ;;  %v5450_v23 = vld [vmem:[#allocation8 + $0x210] sm:$0xff]  }
 0x231   : > { %5205 = vmatprep.subr.bf16.mxu1 %v5446_v30  ;;  %5192 = vmatmul.mubr.bf16.gmra.mxu0 %v3645_v34 }
 0x232   : > { %5195 = vmatprep.mubr.bf16.mxu0 %v3646_v20 }
 0x234   : > { %5206 = vmatpush3.bf16.msra.mxu1 %v5446_v30 }
 0x235   : > { %5207 = vmatprep.subr.bf16.mxu1 %v5447_v3 }
 0x237   : > { %5160 = vmatmul.mubr.bf16.gmra.mxu1 %v3443_v54 }
 0x238   : > { %5163 = vmatprep.mubr.bf16.mxu1 %v6576_v10  ;;  %5208 = vmatpush3.bf16.msra.mxu1 %v5447_v3  ;;  %v5451_v10 = vld [vmem:[#allocation8 + $0x208] sm:$0xff]  }
 0x239   : > { %5209 = vmatprep.subr.bf16.mxu1 %v5448_v59  ;;  %5196 = vmatmul.mubr.bf16.gmra.mxu0 %v6561_v38  ;;  %v3447_v38 = vpack.c.bf16 %v5454_v26, %v6655_v49 }
 0x23a   : > { %5199 = vmatprep.mubr.bf16.mxu0 %v6580_v52  ;;  %v3847_v52 = vpack.c.bf16 %v3835_v58, %v6690_v56 }
 0x23c   : > { %5210 = vmatpush3.bf16.msra.mxu1 %v5448_v59 }
 0x23d   : > { %5211 = vmatprep.subr.bf16.mxu1 %v5449_v13 }
 0x23f   : > { %5164 = vmatmul.mubr.bf16.gmra.mxu1 %v6594_v22  ;;  %v3843_v22 = vld [vmem:[#allocation2 + $0x132] sm:$0xff] }
 0x240   : > { %5167 = vmatprep.mubr.bf16.mxu1 %v6605_v55  ;;  %5212 = vmatpush3.bf16.msra.mxu1 %v5449_v13  ;;  %v3851_v55 = vpack.c.bf16 %v3843_v22, %v6709_v42 }
 0x241   : > { %5213 = vmatprep.subr.bf16.mxu1 %v5450_v23  ;;  %5200 = vmatmul.mubr.bf16.gmra.mxu0 %v3649_v53 }
 0x244   : > { %5214 = vmatpush3.bf16.msra.mxu1 %v5450_v23 }
 0x245   : > { %5215 = vmatprep.subr.bf16.mxu1 %v5451_v10 }
 0x247   : > { %5168 = vmatmul.mubr.bf16.gmra.mxu1 %v3447_v38 }
 0x248   : > { %5216 = vmatpush3.bf16.msra.mxu1 %v5451_v10  ;;  %5219 = vmatprep.mubr.bf16.mxu1 %v6623_v2 }
 0x249   : > { %5217 = vmatprep.subr.bf16.mxu1 %v5452_v32 }
 0x24c   : > { %5218 = vmatpush3.bf16.msra.mxu1 %v5452_v32 }
 0x24f   : > { %5220 = vmatmul.mubr.bf16.vlgmr.msra.gmra.mxu1 %v6631_v33  ;;  %v6748_v33 = vld [vmem:[%s7078_s4] ss:$0 sm:$0xff] }
 0x250   : > { %5223 = vmatprep.mubr.bf16.mxu1 %v6645_v29 }
 0x257   : > { %5224 = vmatmul.mubr.bf16.gmra.mxu1 %v3847_v52 }
 0x258   : > { %5227 = vmatprep.mubr.bf16.mxu1 %v6663_v36 }
 0x25f   : > { %5228 = vmatmul.mubr.bf16.gmra.mxu1 %v6671_v50 }
 0x260   : > { %5231 = vmatprep.mubr.bf16.mxu1 %v6680_v24 }
 0x267   : > { %5232 = vmatmul.mubr.bf16.gmra.mxu1 %v3851_v55 }
 0x287   : > { %v4997_v2 = vpop.f32.mrf.mxu0 }
 0x289   : > { %v2537_v49 = vpop.f32.mrf.mxu0 }
 0x28b   : > { %v4998_v12 = vpop.f32.mrf.mxu0 }
 0x28d   : > { %v2540_v29 = vpop.f32.mrf.mxu0 }
 0x28f   : > { %v4965_v14 = vpop.f32.mrf.mxu1  ;;  %v5001_v15 = vpop.f32.mrf.mxu0 }
 0x290   : > { %v2400_v36 = vadd.f32 %v4965_v14, %v6748_v33 }
 0x291   : > { %v2335_v50 = vpop.f32.mrf.mxu1  ;;  %v2553_v46 = vpop.f32.mrf.mxu0 }
 0x292   : > { %v2602_v24 = vadd.f32 %v4997_v2, %v2400_v36  ;;  %v2398_v62 = vadd.f32 %v6748_v33, %v2335_v50 }
 0x293   : > { %v4966_v4 = vpop.f32.mrf.mxu1  ;;  %v5002_v45 = vpop.f32.mrf.mxu0 }
 0x294   : > { %v2600_v18 = vadd.f32 %v2537_v49, %v2398_v62  ;;  %v2401_v21 = vadd.f32 %v4966_v4, %v6748_v33 }
 0x295   : > { %v2338_v7 = vpop.f32.mrf.mxu1  ;;  %v2556_v56 = vpop.f32.mrf.mxu0 }
 0x296   : > { %v2603_v27 = vadd.f32 %v4998_v12, %v2401_v21  ;;  %v2399_v37 = vadd.f32 %v6748_v33, %v2338_v7 }
 0x297   : > { %v4969_v35 = vpop.f32.mrf.mxu1  ;;  %v5005_v25 = vpop.f32.mrf.mxu0 }
 0x298   : > { %v2601_v9 = vadd.f32 %v2540_v29, %v2399_v37  ;;  %v2404_v31 = vadd.f32 %v4969_v35, %v6748_v33 }
 0x299   : > { %v2351_v44 = vpop.f32.mrf.mxu1  ;;  %v2569_v63 = vpop.f32.mrf.mxu0 }
 0x29a   : > { %v2606_v61 = vadd.f32 %v5001_v15, %v2404_v31  ;;  %v2402_v17 = vadd.f32 %v6748_v33, %v2351_v44 }
 0x29b   : > { %v4970_v40 = vpop.f32.mrf.mxu1  ;;  %v5006_v0 = vpop.f32.mrf.mxu0 }
 0x29c   : > { %v2604_v42 = vadd.f32 %v2553_v46, %v2402_v17  ;;  %v2405_v39 = vadd.f32 %v4970_v40, %v6748_v33 }
 0x29d   : > { %v2354_v11 = vpop.f32.mrf.mxu1  ;;  %v2572_v8 = vpop.f32.mrf.mxu0 }
 0x29e   : > { %v2607_v19 = vadd.f32 %v5002_v45, %v2405_v39  ;;  %v2403_v5 = vadd.f32 %v6748_v33, %v2354_v11 }
 0x29f   : > { %v4973_v60 = vpop.f32.mrf.mxu1  ;;  %v5009_v41 = vpop.f32.mrf.mxu0 }
 0x2a0   : > { %v2605_v51 = vadd.f32 %v2556_v56, %v2403_v5  ;;  %v2408_v43 = vadd.f32 %v4973_v60, %v6748_v33 }
 0x2a1   : > { %v2367_v57 = vpop.f32.mrf.mxu1  ;;  %v2585_v28 = vpop.f32.mrf.mxu0 }
 0x2a2   : > { %v2610_v16 = vadd.f32 %v5005_v25, %v2408_v43  ;;  %v2406_v1 = vadd.f32 %v6748_v33, %v2367_v57 }
 0x2a3   : > { %v4974_v48 = vpop.f32.mrf.mxu1  ;;  %v5010_v30 = vpop.f32.mrf.mxu0 }
 0x2a4   : > { %v2608_v47 = vadd.f32 %v2569_v63, %v2406_v1  ;;  %v2409_v34 = vadd.f32 %v4974_v48, %v6748_v33 }
 0x2a5   : > { %v2370_v20 = vpop.f32.mrf.mxu1  ;;  %v2588_v3 = vpop.f32.mrf.mxu0 }
 0x2a6   : > { %v2611_v26 = vadd.f32 %v5006_v0, %v2409_v34  ;;  %v2407_v54 = vadd.f32 %v6748_v33, %v2370_v20 }
 0x2a7   : > { %v4977_v59 = vpop.f32.mrf.mxu1  ;;  %v6762_v13 = vpop.f32.mrf.mxu0 }
 0x2a8   : > { %v2609_v6 = vadd.f32 %v2572_v8, %v2407_v54  ;;  %v2412_v23 = vadd.f32 %v4977_v59, %v6748_v33 }
 0x2a9   : > { %v2383_v53 = vpop.f32.mrf.mxu1  ;;  %v6765_v10 = vpop.f32.mrf.mxu0 }
 0x2aa   : > { %v2614_v38 = vadd.f32 %v5009_v41, %v2412_v23  ;;  %v2410_v32 = vadd.f32 %v6748_v33, %v2383_v53 }
 0x2ab   : > { %v4978_v58 = vpop.f32.mrf.mxu1  ;;  %v6768_v52 = vpop.f32.mrf.mxu0 }
 0x2ac   : > { %v2612_v22 = vadd.f32 %v2585_v28, %v2410_v32  ;;  %v2413_v55 = vadd.f32 %v4978_v58, %v6748_v33 }
 0x2ad   : > { %v2386_v2 = vpop.f32.mrf.mxu1  ;;  %v6771_v49 = vpop.f32.mrf.mxu0 }
 0x2ae   : > { %v2615_v12 = vadd.f32 %v5010_v30, %v2413_v55  ;;  %v2411_v29 = vadd.f32 %v6748_v33, %v2386_v2 }
 0x2af   : > { %v5029_v14 = vpop.f32.mrf.mxu1  ;;  %v6774_v15 = vpop.f32.mrf.mxu0 }
 0x2b0   : > { %v2613_v36 = vadd.f32 %v2588_v3, %v2411_v29  ;;  %v6776_v50 = vadd.f32 %v5029_v14, %v2602_v24 }
 0x2b1   : > { %v2739_v46 = vpop.f32.mrf.mxu1  ;;  %v6778_v62 = vpop.f32.mrf.mxu0 }
 0x2b2   : > { %v6780_v4 = vadd.f32 %v2739_v46, %v2600_v18 }
 0x2b3   : > { %v5030_v45 = vpop.f32.mrf.mxu1  ;;  %v6782_v21 = vpop.f32.mrf.mxu0 }
 0x2b4   : > { %v6784_v7 = vadd.f32 %v5030_v45, %v2603_v27 }
 0x2b5   : > { %v2742_v56 = vpop.f32.mrf.mxu1  ;;  %v6786_v37 = vpop.f32.mrf.mxu0 }
 0x2b6   : > { %v6788_v33 = vadd.f32 %v2742_v56, %v2601_v9 }
 0x2b7   : > { %v5033_v35 = vpop.f32.mrf.mxu1  ;;  %v6790_v25 = vpop.f32.mrf.mxu0 }
 0x2b8   : > { %v6792_v24 = vadd.f32 %v5033_v35, %v2606_v61 }
 0x2b9   : > { %v2755_v31 = vpop.f32.mrf.mxu1  ;;  %v6794_v44 = vpop.f32.mrf.mxu0 }
 0x2ba   : > { %v6796_v18 = vadd.f32 %v2755_v31, %v2604_v42 }
 0x2bb   : > { %v5034_v63 = vpop.f32.mrf.mxu1  ;;  %v6798_v17 = vpop.f32.mrf.mxu0 }
 0x2bc   : > { %v6800_v27 = vadd.f32 %v5034_v63, %v2607_v19 }
 0x2bd   : > { %v2758_v40 = vpop.f32.mrf.mxu1  ;;  %v6802_v0 = vpop.f32.mrf.mxu0 }
 0x2be   : > { %v6804_v9 = vadd.f32 %v2758_v40, %v2605_v51 }
 0x2bf   : > { %v5037_v39 = vpop.f32.mrf.mxu1  ;;  %v6806_v11 = vpop.f32.mrf.mxu0 }
 0x2c0   : > { %7179 = vst [vmem:[#allocation25_spill] sm:$0xff] %v6806_v11  ;;  %v6808_v61 = vadd.f32 %v5037_v39, %v2610_v16  ;;  %v3004_v11 = vadd.f32 %v6765_v10, %v6780_v4  ;;  %v3010_v10 = vadd.f32 %v6774_v15, %v6792_v24  ;;  %v3011_v15 = vadd.f32 %v6782_v21, %v6800_v27 }
 0x2c1   : > { %v2771_v8 = vpop.f32.mrf.mxu1  ;;  %v6810_v5 = vpop.f32.mrf.mxu0 }
 0x2c2   : > { %7180 = vst [vmem:[#allocation27_spill] sm:$0xff] %v6810_v5  ;;  %v6812_v42 = vadd.f32 %v2771_v8, %v2608_v47 }
 0x2c3   : > { %v5038_v60 = vpop.f32.mrf.mxu1  ;;  %v6814_v41 = vpop.f32.mrf.mxu0 }
 0x2c4   : > { %7181 = vst [vmem:[#allocation44_spill] sm:$0xff] %v6814_v41  ;;  %v6816_v19 = vadd.f32 %v5038_v60, %v2611_v26 }
 0x2c5   : > { %v2774_v43 = vpop.f32.mrf.mxu1  ;;  %v6818_v57 = vpop.f32.mrf.mxu0 }
 0x2c6   : > { %7182 = vst [vmem:[#allocation16_spill] sm:$0xff] %v6818_v57  ;;  %v6820_v51 = vadd.f32 %v2774_v43, %v2609_v6 }
 0x2c7   : > { %v5041_v28 = vpop.f32.mrf.mxu1 }
 0x2c8   : > { %v6822_v1 = vadd.f32 %v5041_v28, %v2614_v38 }
 0x2c9   : > { %v2787_v16 = vpop.f32.mrf.mxu1  ;;  %v6824_v48 = vpop.f32.mrf.mxu0 }
 0x2ca   : > { %7183 = vst [vmem:[#allocation43_spill] sm:$0xff] %v6822_v1  ;;  %v6826_v30 = vadd.f32 %v2787_v16, %v2612_v22 }
 0x2cb   : > { %v5042_v47 = vpop.f32.mrf.mxu1  ;;  %v6828_v34 = vpop.f32.mrf.mxu0 }
 0x2cc   : > { %7184 = vst [vmem:[#allocation17_spill] sm:$0xff] %v6826_v30  ;;  %v6830_v20 = vadd.f32 %v5042_v47, %v2615_v12 }
 0x2cd   : > { %v2790_v3 = vpop.f32.mrf.mxu1  ;;  %v6832_v26 = vpop.f32.mrf.mxu0 }
 0x2ce   : > { %7185 = vst [vmem:[#allocation18_spill] sm:$0xff] %v6830_v20  ;;  %v6834_v54 = vadd.f32 %v2790_v3, %v2613_v36 }
 0x2cf   : > { %v5093_v59 = vpop.f32.mrf.mxu1  ;;  %v6836_v6 = vpop.f32.mrf.mxu0 }
 0x2d0   : > { %7186 = vst [vmem:[#allocation26_spill] sm:$0xff] %v6834_v54 }
 0x2d1   : > { %v3143_v23 = vpop.f32.mrf.mxu1  ;;  %v6838_v53 = vpop.f32.mrf.mxu0 }
 0x2d3   : > { %v5094_v38 = vpop.f32.mrf.mxu1  ;;  %v6840_v32 = vpop.f32.mrf.mxu0 }
 0x2d5   : > { %v3146_v58 = vpop.f32.mrf.mxu1  ;;  %v6842_v22 = vpop.f32.mrf.mxu0 }
 0x2d7   : > { %v5097_v55 = vpop.f32.mrf.mxu1  ;;  %v6844_v2 = vpop.f32.mrf.mxu0 }
 0x2d9   : > { %v3159_v12 = vpop.f32.mrf.mxu1  ;;  %v6846_v29 = vpop.f32.mrf.mxu0 }
 0x2da   : > { %7187 = vst [vmem:[#allocation29_spill] sm:$0xff] %v6846_v29  ;;  %v3206_v29 = vadd.f32 %v3143_v23, %v3004_v11  ;;  %v3212_v11 = vadd.f32 %v5097_v55, %v3010_v10  ;;  %v4032_v55 = vld [vmem:[%s5779_s30 + $0x10] sm:$0xff]  ;;  %v3015_v10 = vadd.f32 %v6798_v17, %v6816_v19  ;;  %v3013_v19 = vadd.f32 %v6802_v0, %v6820_v51 }
 0x2db   : > { %v6848_v14 = vpop.f32.mrf.mxu1  ;;  %v6850_v36 = vpop.f32.mrf.mxu0 }
 0x2dc   : > { %7188 = vst [vmem:[#allocation45_spill] sm:$0xff] %v6850_v36 }
 0x2dd   : > { %v6852_v46 = vpop.f32.mrf.mxu1  ;;  %v6854_v45 = vpop.f32.mrf.mxu0 }
 0x2de   : > { %7189 = vst [vmem:[#allocation46_spill] sm:$0xff] %v6854_v45 }
 0x2df   : > { %v6856_v56 = vpop.f32.mrf.mxu1  ;;  %v6858_v35 = vpop.f32.mrf.mxu0 }
 0x2e0   : > { %7190 = vst [vmem:[#allocation19_spill] sm:$0xff] %v6858_v35 }
 0x2e1   : > { %v6860_v31 = vpop.f32.mrf.mxu1  ;;  %v6862_v63 = vpop.f32.mrf.mxu0 }
 0x2e2   : > { %7191 = vst [vmem:[#allocation20_spill] sm:$0xff] %v6862_v63 }
 0x2e3   : > { %v6864_v40 = vpop.f32.mrf.mxu1  ;;  %v6866_v39 = vpop.f32.mrf.mxu0  ;;  %v7210_v51 = vld [vmem:[#allocation45_spill] sm:$0xff] }
 0x2e4   : > { %7192 = vst [vmem:[#allocation28_spill] sm:$0xff] %v6864_v40  ;;  %7193 = vst [vmem:[#allocation31_spill] sm:$0xff] %v6866_v39 }
 0x2e5   : > { %v6868_v8 = vpop.f32.mrf.mxu1  ;;  %v6872_v43 = vpop.f32.mrf.mxu0 }
 0x2e6   : > { %7194 = vst [vmem:[#allocation49_spill] sm:$0xff] %v6868_v8  ;;  %7196 = vst [vmem:[#allocation30_spill] sm:$0xff] %v6872_v43 }
 0x2e7   : > { %v6870_v60 = vpop.f32.mrf.mxu1  ;;  %v6878_v47 = vpop.f32.mrf.mxu0 }
 0x2e8   : > { %7195 = vst [vmem:[#allocation47_spill] sm:$0xff] %v6870_v60  ;;  %7199 = vst [vmem:[#allocation23_spill] sm:$0xff] %v6878_v47 }
 0x2e9   : > { %v6874_v28 = vpop.f32.mrf.mxu1  ;;  %v5189_v63 = vpop.f32.mrf.mxu0 }
 0x2ea   : > { %7197 = vst [vmem:[#allocation33_spill] sm:$0xff] %v6874_v28 }
 0x2eb   : > { %v6876_v16 = vpop.f32.mrf.mxu1  ;;  %v3749_v35 = vpop.f32.mrf.mxu0 }
 0x2ec   : > { %7198 = vst [vmem:[#allocation48_spill] sm:$0xff] %v6876_v16 }
 0x2ed   : > { %v6880_v3 = vpop.f32.mrf.mxu1  ;;  %v5190_v20 = vpop.f32.mrf.mxu0 }
 0x2ee   : > { %7200 = vst [vmem:[#allocation32_spill] sm:$0xff] %v6880_v3  ;;  %v3006_v3 = vadd.f32 %v6762_v13, %v6776_v50  ;;  %v3005_v13 = vadd.f32 %v6771_v49, %v6788_v33 }
 0x2ef   : > { %v5157_v57 = vpop.f32.mrf.mxu1  ;;  %v3752_v60 = vpop.f32.mrf.mxu0 }
 0x2f0   : > { %v3208_v1 = vadd.f32 %v5093_v59, %v3006_v3  ;;  %v3408_v59 = vadd.f32 %v6828_v34, %v3206_v29  ;;  %v3207_v3 = vadd.f32 %v3146_v58, %v3005_v13  ;;  %v3213_v58 = vadd.f32 %v6848_v14, %v3011_v15 }
 0x2f1   : > { %v3547_v54 = vpop.f32.mrf.mxu1  ;;  %v6886_v28 = vpop.f32.mrf.mxu0 }
 0x2f2   : > { %v3410_v50 = vadd.f32 %v6824_v48, %v3208_v1  ;;  %v3610_v1 = vadd.f32 %v3547_v54, %v3408_v59 }
 0x2f3   : > { %v5158_v41 = vpop.f32.mrf.mxu1  ;;  %v6894_v8 = vpop.f32.mrf.mxu0 }
 0x2f4   : > { %v3812_v21 = vadd.f32 %v3749_v35, %v3610_v1  ;;  %v3415_v35 = vadd.f32 %v6842_v22, %v3213_v58  ;;  %v7211_v58 = vld [vmem:[#allocation49_spill] sm:$0xff] }
 0x2f5   : > { %v3550_v39 = vpop.f32.mrf.mxu1 }
 0x2f7   : > { %v5161_v45 = vpop.f32.mrf.mxu1 }
 0x2f9   : > { %v3563_v5 = vpop.f32.mrf.mxu1 }
 0x2fb   : > { %v6882_v30 = vpop.f32.mrf.mxu1 }
 0x2fc   : > { %v3617_v59 = vadd.f32 %v6882_v30, %v3415_v35 }
 0x2fd   : > { %v6884_v43 = vpop.f32.mrf.mxu1 }
 0x2fe   : > { %7201 = vst [vmem:[#allocation35_spill] sm:$0xff] %v6884_v43  ;;  %v3007_v43 = vadd.f32 %v6768_v52, %v6784_v7  ;;  %v3612_v52 = vadd.f32 %v5157_v57, %v3410_v50  ;;  %v3008_v7 = vadd.f32 %v6778_v62, %v6796_v18  ;;  %v3409_v57 = vadd.f32 %v6836_v6, %v3207_v3 }
 0x2ff   : > { %v6888_v16 = vpop.f32.mrf.mxu1  ;;  %v3009_v18 = vadd.f32 %v6786_v37, %v6804_v9  ;;  %v3014_v6 = vadd.f32 %v6790_v25, %v6808_v61 }
 0x300   : > { %7202 = vst [vmem:[#allocation37_spill] sm:$0xff] %v6888_v16  ;;  %v6904_v16 = vpop.f32.mrf.mxu0  ;;  %v3210_v24 = vadd.f32 %v3159_v12, %v3008_v7  ;;  %v3814_v34 = vadd.f32 %v5189_v63, %v3612_v52  ;;  %v3611_v27 = vadd.f32 %v3550_v39, %v3409_v57  ;;  %v7206_v52 = vld [vmem:[#allocation28_spill] sm:$0xff] }
 0x301   : > { %v6890_v47 = vpop.f32.mrf.mxu1  ;;  %v3211_v29 = vadd.f32 %v6852_v46, %v3009_v18  ;;  %v3216_v39 = vadd.f32 %v6856_v56, %v3014_v6  ;;  %v4033_v46 = vld [vmem:[%s5779_s30 + $0x18] sm:$0xff]  ;;  %v7209_v18 = vld [vmem:[#allocation25_spill] sm:$0xff] }
 0x302   : > { %7203 = vst [vmem:[#allocation21_spill] sm:$0xff] %v6890_v47  ;;  %v6918_v23 = vpop.f32.mrf.mxu0 }
 0x303   : > { %v6896_v36 = vpop.f32.mrf.mxu1 }
 0x304   : > { %7204 = vst [vmem:[#allocation22_spill] sm:$0xff] %v6896_v36  ;;  %v3209_v36 = vadd.f32 %v5094_v38, %v3007_v43  ;;  %v3414_v38 = vadd.f32 %v6838_v53, %v3212_v11  ;;  %v4030_v53 = vld [vmem:[%s5779_s30] sm:$0xff]  ;;  %v3012_v43 = vadd.f32 %v6794_v44, %v6812_v42  ;;  %v3413_v44 = vadd.f32 %v6844_v2, %v3211_v29 }
 0x305   : > { %v6900_v40 = vpop.f32.mrf.mxu1  ;;  %v7205_v2 = vld [vmem:[#allocation29_spill] sm:$0xff]  ;;  %v7207_v1 = vld [vmem:[#allocation35_spill] sm:$0xff] }
 0x306   : > { %v3411_v33 = vadd.f32 %v6832_v26, %v3209_v36  ;;  %v6932_v26 = vpop.f32.mrf.mxu0  ;;  %v3616_v37 = vadd.f32 %v5161_v45, %v3414_v38  ;;  %v3813_v45 = vadd.f32 %v3752_v60, %v3611_v27  ;;  %v3214_v42 = vadd.f32 %v6860_v31, %v3012_v43  ;;  %v4034_v27 = vld [vmem:[%s5779_s30 + $0x20] sm:$0xff] }
 0x307   : > { %v6906_v47 = vpop.f32.mrf.mxu1  ;;  %v3418_v31 = vadd.f32 %v7205_v2, %v3216_v39  ;;  %v3615_v15 = vadd.f32 %v7207_v1, %v3413_v44  ;;  %v7226_v1 = vld [vmem:[#allocation48_spill] sm:$0xff] }
 0x308   : > { %v3613_v62 = vadd.f32 %v5158_v41, %v3411_v33  ;;  %v3412_v41 = vadd.f32 %v6840_v32, %v3210_v24  ;;  %v6944_v61 = vpop.f32.mrf.mxu0  ;;  %v3818_v22 = vadd.f32 %v6886_v28, %v3616_v37  ;;  %v3217_v28 = vadd.f32 %v7206_v52, %v3015_v10  ;;  %v4036_v33 = vld [vmem:[%s5779_s30 + $0x30] sm:$0xff]  ;;  %v7213_v37 = vld [vmem:[#allocation17_spill] sm:$0xff]  ;;  %v7219_v10 = vld [vmem:[#allocation44_spill] sm:$0xff] }
 0x309   : > { %v6913_v4 = vpop.f32.mrf.mxu1  ;;  %v3416_v38 = vadd.f32 %v7210_v51, %v3214_v42  ;;  %v7217_v35 = vld [vmem:[#allocation21_spill] sm:$0xff]  ;;  %v7220_v42 = vld [vmem:[#allocation19_spill] sm:$0xff]  ;;  %v7223_v52 = vld [vmem:[#allocation26_spill] sm:$0xff] }
 0x30a   : > { %v3815_v36 = vadd.f32 %v5190_v20, %v3613_v62  ;;  %v3614_v25 = vadd.f32 %v3563_v5, %v3412_v41  ;;  %v4031_v5 = vld [vmem:[%s5779_s30 + $0x8] sm:$0xff]  ;;  %v5198_v30 = vpop.f32.mrf.mxu0  ;;  %v7208_v62 = vld [vmem:[#allocation43_spill] sm:$0xff] }
 0x30b   : > { %v6920_v49 = vpop.f32.mrf.mxu1  ;;  %v3018_v0 = vadd.f32 %v7209_v18, %v7208_v62  ;;  %v3618_v39 = vadd.f32 %v7217_v35, %v3416_v38  ;;  %v7227_v38 = vld [vmem:[#allocation31_spill] sm:$0xff] }
 0x30c   : > { %v3816_v7 = vadd.f32 %v6894_v8, %v3614_v25  ;;  %v3784_v25 = vpop.f32.mrf.mxu0 }
 0x30d   : > { %v6925_v48 = vpop.f32.mrf.mxu1 }
 0x30f   : > { %v5221_v54 = vpop.f32.mrf.mxu1 }
 0x310   : > { %v4016_v12 = vadd.f32 %v5221_v54, %v3814_v34  ;;  %v3215_v54 = vadd.f32 %v7211_v58, %v3013_v19 }
 0x311   : > { %v3951_v9 = vpop.f32.mrf.mxu1 }
 0x312   : > { %v4048_v14 = vadd.f32 %v4032_v55, %v4016_v12  ;;  %v4014_v63 = vadd.f32 %v3951_v9, %v3812_v21  ;;  %v7212_v55 = vld [vmem:[#allocation37_spill] sm:$0xff]  ;;  %v3819_v12 = vadd.f32 %v6904_v16, %v3617_v59  ;;  %v7214_v9 = vld [vmem:[#allocation27_spill] sm:$0xff]  ;;  %v3817_v16 = vadd.f32 %v6918_v23, %v3615_v15 }
 0x313   : > { %v5222_v32 = vpop.f32.mrf.mxu1  ;;  %v3620_v8 = vadd.f32 %v7212_v55, %v3418_v31 }
 0x314   : > { %v4064_v13 = vmax.f32 %v4048_v14, 0.0  ;;  %v4046_v50 = vadd.f32 %v4030_v53, %v4014_v63  ;;  %v4017_v20 = vadd.f32 %v5222_v32, %v3815_v36  ;;  %v3016_v53 = vadd.f32 %v7214_v9, %v7213_v37  ;;  %v7215_v36 = vld [vmem:[#allocation46_spill] sm:$0xff]  ;;  %v7216_v63 = vld [vmem:[#allocation47_spill] sm:$0xff] }
 0x315   : > { %v3954_v56 = vpop.f32.mrf.mxu1  ;;  %v3419_v14 = vadd.f32 %v7215_v36, %v3217_v28  ;;  %v3220_v43 = vadd.f32 %v7216_v63, %v3018_v0  ;;  %v3822_v59 = vadd.f32 %v6932_v26, %v3620_v8  ;;  %v7224_v28 = vld [vmem:[#allocation16_spill] sm:$0xff]  ;;  %v3820_v26 = vadd.f32 %v6944_v61, %v3618_v39 }
 0x316   : > { %4080 = vst [vmem:[%s6956_s11 + $0x10] sm:$0xff] %v4064_v13  ;;  %v4062_v60 = vmax.f32 %v4046_v50, 0.0  ;;  %v4049_v3 = vadd.f32 %v4033_v46, %v4017_v20  ;;  %v4015_v17 = vadd.f32 %v3954_v56, %v3813_v45  ;;  %v4037_v46 = vld [vmem:[%s5779_s30 + $0x38] sm:$0xff]  ;;  %v7218_v20 = vld [vmem:[#allocation18_spill] sm:$0xff]  ;;  %v7221_v56 = vld [vmem:[#allocation33_spill] sm:$0xff] }
 0x317   : > { %v5225_v11 = vpop.f32.mrf.mxu1  ;;  %v3019_v44 = vadd.f32 %v7219_v10, %v7218_v20  ;;  %v4041_v36 = vld [vmem:[%s5779_s30 + $0x58] sm:$0xff]  ;;  %v4044_v10 = vld [vmem:[%s5779_s30 + $0x70] sm:$0xff] }
 0x318   : > { %4078 = vst [vmem:[%s6956_s11] sm:$0xff] %v4062_v60  ;;  %v4065_v24 = vmax.f32 %v4049_v3, 0.0  ;;  %v4047_v57 = vadd.f32 %v4031_v5, %v4015_v17  ;;  %v4020_v34 = vadd.f32 %v5225_v11, %v3818_v22  ;;  %v3417_v22 = vadd.f32 %v7220_v42, %v3215_v54  ;;  %v4035_v3 = vld [vmem:[%s5779_s30 + $0x28] sm:$0xff]  ;;  %v7225_v11 = vld [vmem:[#allocation20_spill] sm:$0xff] }
 0x319   : > { %v3967_v21 = vpop.f32.mrf.mxu1  ;;  %v3218_v5 = vadd.f32 %v7221_v56, %v3016_v53  ;;  %v7222_v17 = vld [vmem:[#allocation22_spill] sm:$0xff]  ;;  %v3221_v15 = vadd.f32 %v7226_v1, %v3019_v44  ;;  %v7228_v54 = vld [vmem:[#allocation32_spill] sm:$0xff] }
 0x31a   : > { %4081 = vst [vmem:[%s6956_s11 + $0x18] sm:$0xff] %v4065_v24  ;;  %v4063_v6 = vmax.f32 %v4047_v57, 0.0  ;;  %v4052_v41 = vadd.f32 %v4036_v33, %v4020_v34  ;;  %v4018_v29 = vadd.f32 %v3967_v21, %v3816_v7  ;;  %v3621_v19 = vadd.f32 %v7222_v17, %v3419_v14  ;;  %v5201_v24 = vpop.f32.mrf.mxu0  ;;  %v4040_v34 = vld [vmem:[%s5779_s30 + $0x50] sm:$0xff] }
 0x31b   : > { %v5226_v32 = vpop.f32.mrf.mxu1  ;;  %v3017_v7 = vadd.f32 %v7224_v28, %v7223_v52  ;;  %v3422_v33 = vadd.f32 %v7225_v11, %v3220_v43  ;;  %v3619_v62 = vadd.f32 %v6900_v40, %v3417_v22  ;;  %v3420_v58 = vadd.f32 %v7227_v38, %v3218_v5  ;;  %v7230_v43 = vld [vmem:[#allocation23_spill] sm:$0xff]  ;;  %v4043_v11 = vld [vmem:[%s5779_s30 + $0x68] sm:$0xff] }
 0x31c   : > { %4079 = vst [vmem:[%s6956_s11 + $0x8] sm:$0xff] %v4063_v6  ;;  %v4068_v45 = vmax.f32 %v4052_v41, 0.0  ;;  %v4050_v13 = vadd.f32 %v4034_v27, %v4018_v29  ;;  %v4021_v50 = vadd.f32 %v5226_v32, %v3819_v12  ;;  %v4038_v27 = vld [vmem:[%s5779_s30 + $0x40] sm:$0xff]  ;;  %v3823_v61 = vadd.f32 %v5198_v30, %v3621_v19  ;;  %v7229_v41 = vld [vmem:[#allocation30_spill] sm:$0xff]  ;;  %v3797_v9 = vpop.f32.mrf.mxu0 }
 0x31d   : > { %v3970_v60 = vpop.f32.mrf.mxu1  ;;  %v3219_v55 = vadd.f32 %v7228_v54, %v3017_v7  ;;  %v3624_v8 = vadd.f32 %v6906_v47, %v3422_v33  ;;  %v3423_v29 = vadd.f32 %v7229_v41, %v3221_v15  ;;  %v3622_v37 = vadd.f32 %v6913_v4, %v3420_v58 }
 0x31e   : > { %4084 = vst [vmem:[%s6956_s11 + $0x30] sm:$0xff] %v4068_v45  ;;  %v4066_v23 = vmax.f32 %v4050_v13, 0.0  ;;  %v4053_v2 = vadd.f32 %v4037_v46, %v4021_v50  ;;  %v4019_v31 = vadd.f32 %v3970_v60, %v3817_v16  ;;  %v3821_v14 = vadd.f32 %v3784_v25, %v3619_v62  ;;  %v4039_v46 = vld [vmem:[%s5779_s30 + $0x48] sm:$0xff]  ;;  %v5202_v50 = vpop.f32.mrf.mxu0 }
 0x31f   : > { %v5229_v57 = vpop.f32.mrf.mxu1  ;;  %v3421_v35 = vadd.f32 %v7230_v43, %v3219_v55  ;;  %v3826_v39 = vadd.f32 %v5201_v24, %v3624_v8  ;;  %v3625_v16 = vadd.f32 %v6920_v49, %v3423_v29  ;;  %v3824_v25 = vadd.f32 %v3797_v9, %v3622_v37  ;;  %v4042_v49 = vld [vmem:[%s5779_s30 + $0x60] sm:$0xff] }
 0x320   : > { %4082 = vst [vmem:[%s6956_s11 + $0x20] sm:$0xff] %v4066_v23  ;;  %v4069_v18 = vmax.f32 %v4053_v2, 0.0  ;;  %v4051_v0 = vadd.f32 %v4035_v3, %v4019_v31  ;;  %v4024_v51 = vadd.f32 %v5229_v57, %v3822_v59  ;;  %v3800_v19 = vpop.f32.mrf.mxu0 }
 0x321   : > { %v3983_v21 = vpop.f32.mrf.mxu1  ;;  %v3623_v44 = vadd.f32 %v6925_v48, %v3421_v35  ;;  %v3827_v59 = vadd.f32 %v5202_v50, %v3625_v16  ;;  %v4045_v48 = vld [vmem:[%s5779_s30 + $0x78] sm:$0xff] }
 0x322   : > { %4085 = vst [vmem:[%s6956_s11 + $0x38] sm:$0xff] %v4069_v18  ;;  %v4067_v12 = vmax.f32 %v4051_v0, 0.0  ;;  %v4056_v6 = vadd.f32 %v4040_v34, %v4024_v51  ;;  %v4022_v40 = vadd.f32 %v3983_v21, %v3820_v26 }
 0x323   : > { %v5230_v53 = vpop.f32.mrf.mxu1  ;;  %v3825_v2 = vadd.f32 %v3800_v19, %v3623_v44 }
 0x324   : > { %4083 = vst [vmem:[%s6956_s11 + $0x28] sm:$0xff] %v4067_v12  ;;  %v4072_v47 = vmax.f32 %v4056_v6, 0.0  ;;  %v4054_v63 = vadd.f32 %v4038_v27, %v4022_v40  ;;  %v4025_v30 = vadd.f32 %v5230_v53, %v3823_v61 }
 0x325   : > { %v3986_v32 = vpop.f32.mrf.mxu1 }
 0x326   : > { %4088 = vst [vmem:[%s6956_s11 + $0x50] sm:$0xff] %v4072_v47  ;;  %v4070_v4 = vmax.f32 %v4054_v63, 0.0  ;;  %v4057_v45 = vadd.f32 %v4041_v36, %v4025_v30  ;;  %v4023_v13 = vadd.f32 %v3986_v32, %v3821_v14 }
 0x327   : > { %v5233_v20 = vpop.f32.mrf.mxu1 }
 0x328   : > { %4086 = vst [vmem:[%s6956_s11 + $0x40] sm:$0xff] %v4070_v4  ;;  %v4073_v42 = vmax.f32 %v4057_v45, 0.0  ;;  %v4055_v22 = vadd.f32 %v4039_v46, %v4023_v13  ;;  %v4028_v56 = vadd.f32 %v5233_v20, %v3826_v39 }
 0x329   : > { %v3999_v5 = vpop.f32.mrf.mxu1 }
 0x32a   : > { %4089 = vst [vmem:[%s6956_s11 + $0x58] sm:$0xff] %v4073_v42  ;;  %v4071_v60 = vmax.f32 %v4055_v22, 0.0  ;;  %v4060_v3 = vadd.f32 %v4044_v10, %v4028_v56  ;;  %v4026_v17 = vadd.f32 %v3999_v5, %v3824_v25 }
 0x32b   : > { %v5234_v23 = vpop.f32.mrf.mxu1 }
 0x32c   : > { %4087 = vst [vmem:[%s6956_s11 + $0x48] sm:$0xff] %v4071_v60  ;;  %v4076_v31 = vmax.f32 %v4060_v3, 0.0  ;;  %v4058_v52 = vadd.f32 %v4042_v49, %v4026_v17  ;;  %v4029_v28 = vadd.f32 %v5234_v23, %v3827_v59 }
 0x32d   : > { %v4002_v7 = vpop.f32.mrf.mxu1 }
 0x32e   : > { %4092 = vst [vmem:[%s6956_s11 + $0x70] sm:$0xff] %v4076_v31  ;;  %v4074_v33 = vmax.f32 %v4058_v52, 0.0  ;;  %v4061_v1 = vadd.f32 %v4045_v48, %v4029_v28  ;;  %v4027_v15 = vadd.f32 %v4002_v7, %v3825_v2 }
 0x330   : > { %4090 = vst [vmem:[%s6956_s11 + $0x60] sm:$0xff] %v4074_v33  ;;  %v4077_v26 = vmax.f32 %v4061_v1, 0.0  ;;  %v4059_v24 = vadd.f32 %v4043_v11, %v4027_v15 }
 0x332   : > { %4093 = vst [vmem:[%s6956_s11 + $0x78] sm:$0xff] %v4077_v26  ;;  %v4075_v57 = vmax.f32 %v4059_v24, 0.0 }
 0x334   : > { %4091 = vst [vmem:[%s6956_s11 + $0x68] sm:$0xff] %v4075_v57 }
 0x335   : > { %5548 = shalt.err (!%p5545_p9)
}
 0x336   : > { %s5549_s30 = scalar_lea.hbm %s7027_s9, 2048  ;;  %s5553_s8 = scalar_lea.hbm %s7079_s5, 4096 }
 0x337   : > { %p5550_p13 = scmp.ne.s32.totalorder %s7027_s9, %s5549_s30  ;;  %p5554_p4 = scmp.lt.s32.totalorder %s7027_s9, %s7079_s5 }
 0x338   : > { %p5555_p8 = scmp.lt.s32.totalorder %s5553_s8, %s5549_s30 }
 0x339   : > { %p5551_p5 = pnand %p5550_p13, %p7231_p10 }
 0x33a   : > { %p5556_p3 = por %p5555_p8, %p5554_p4 }
 0x33b   : > { %p5552_p0 = pneg %p5551_p5 }
 0x33d   : > { %p5557_p11 = pnand %p5556_p3, %p5552_p0 }
 0x33f   : > { %5560 = shalt.err (!%p5557_p11)
}
 0x340   : > { %s5614_s12 = smov 128   ;;  %s5615_s6 = smov 8  }
 0x341   : > { %5245 = dma.vmem_to_hbm [thread:$0]  (%p7231_p10), %s7029_s28, 2048, %s7027_s9, %s4095_s13, %s5614_s12, %s5614_s12, %s5615_s6  }
 0x342 PF: > { %s4124_s7 = sand.u32 1, %s5591_s18   ;;  %p7232_p1 = scmp.ne.s32.totalorder %s7089_s25, 0 }
 0x343   : > { %p7233_p2 = scmp.ge.s32.totalorder %s5603_s21, 2  ;;  %s4125_s14 = scalar_lea.sflag [#allocation5], %s4124_s7 }
 0x345   : > { %p5259_p6 = pnand %p7233_p2, %p7232_p1 }
 0x347   : > { %p5260_p12 = pneg %p5259_p6 }
 0x349   : > { %5586 = dma.done.wait (%p5260_p12), %s4125_s14, 2048  }
 0x34a   : > { %5588 = vsyncadd (%p5260_p12), %s4125_s14, 4294965248  ;;  %p19_p7 = scmp.ge.s32.totalorder %s5718_s15, 4   ;;  %s7234_s18 = smov %s5595_s19 }
 0x34b   : > { %s7235_s19 = smov %s5599_s20  ;;  %s7236_s20 = smov %s5734_s27 }
 0x34c   : > { %s7237_s21 = smov %s5718_s15  ;;  %21 = sbr.rel (!%p19_p7) target bundleno = 6 (0x6), region = 111 }
 0x351   :  { %4130 = vsyncpa [#allocation4], 1 }
 0x352   :  { %4132 = vsyncpa [#allocation4 + $0x1], 1 }
 0x353   :  { %4133 = vsyncpa [#allocation7], 1 }
 0x354   :  { %4134 = vsyncpa [#allocation5], 1 }
 0x355   :  { %4136 = vsyncpa [#allocation5 + $0x1], 1 }

</bundles_post_ra>
